<compile_context>
chip_gen: v7x
topology: tpu7x:2x2x1
jax: 0.10.0
libtpu: 0.0.40
codegen_flags: <defaults>
</compile_context>

<pallas_src>
import functools

import jax
import jax.numpy as jnp
from jax import lax
from jax.experimental import pallas as pl
from jax.experimental.pallas import tpu as pltpu

_NEG_BIG = -1e30   # finite "-inf" used to mask padded key columns
_EPS = 1e-12       # matches torch.nn.functional.normalize default eps


def _round_up(x, m):
    return (x + m - 1) // m * m


def _clip_loss_kernel(
    scale_ref,       # SMEM (1,) f32 : logit scale == 1/temperature
    nvalid_ref,      # SMEM (1,) i32 : real (unpadded) batch size
    img_q_ref,       # VMEM (TQ, Dp) : image rows of this query block (raw)
    txt_q_ref,       # VMEM (TQ, Dp) : text  rows of this query block (raw)
    txt_k_ref,       # VMEM (TK, Dp) : text  rows of this key block (raw, mm_dtype)
    img_k_ref,       # VMEM (TK, Dp) : image rows of this key block (raw, mm_dtype)
    out_ref,         # VMEM (TQ, 1) f32 : per-row CE_img + CE_txt contribution
    qn_img, qn_txt,                                   # VMEM (TQ, Dp) mm_dtype scratch
    m_img, l_img, m_txt, l_txt, tgt_img, tgt_txt,     # VMEM (TQ, 1) f32 scratch
    *, mm_dtype, mask_keys,
):
    qi = pl.program_id(0)
    ki = pl.program_id(1)
    nk = pl.num_programs(1)

    tq = img_q_ref.shape[0]
    tk = txt_k_ref.shape[0]

    n_valid = nvalid_ref[0]

    # ---- Per-query-block prep: runs once (ki == 0), not once per key step. --
    @pl.when(ki == 0)
    def _init():
        scale = scale_ref[0]
        img_q = img_q_ref[...].astype(jnp.float32)
        txt_q = txt_q_ref[...].astype(jnp.float32)
        # L2-normalize the local (query) rows; fold in the logit scale.
        inv_img = scale * lax.rsqrt(
            jnp.maximum(jnp.sum(img_q * img_q, axis=-1, keepdims=True), _EPS * _EPS))
        inv_txt = scale * lax.rsqrt(
            jnp.maximum(jnp.sum(txt_q * txt_q, axis=-1, keepdims=True), _EPS * _EPS))
        img_qn = img_q * inv_img          # == logit_scale * F.normalize(image)
        txt_qn = txt_q * inv_txt          # == logit_scale * F.normalize(text)
        qn_img[...] = img_qn.astype(mm_dtype)
        qn_txt[...] = txt_qn.astype(mm_dtype)
        # Diagonal CE targets as f32 row-wise dots (no B x B iota / mask):
        #   target_img[i] = scale * normalize(img[i]) . txt_all[i]   (txt_all raw)
        #   target_txt[i] = scale * normalize(txt[i]) . img_all[i]   (img_all raw)
        # NOTE: the matching diagonal logit inside the LSE is mm_dtype-rounded
        # while these targets are f32 — tiny systematic mismatch, documented.
        tgt_img[...] = jnp.sum(img_qn * txt_q, axis=-1, keepdims=True)
        tgt_txt[...] = jnp.sum(txt_qn * img_q, axis=-1, keepdims=True)
        m_img[...] = jnp.full((tq, 1), -jnp.inf, jnp.float32)
        m_txt[...] = jnp.full((tq, 1), -jnp.inf, jnp.float32)
        l_img[...] = jnp.zeros((tq, 1), jnp.float32)
        l_txt[...] = jnp.zeros((tq, 1), jnp.float32)

    # ---- Steady-state key step: 2 MXU matmuls + online LSE updates. ---------
    # A . B^T via dot_general contracting the last dims (no VMEM transpose).
    dn = (((1,), (1,)), ((), ()))
    s_img = lax.dot_general(qn_img[...], txt_k_ref[...], dn,
                            preferred_element_type=jnp.float32)
    s_txt = lax.dot_general(qn_txt[...], img_k_ref[...], dn,
                            preferred_element_type=jnp.float32)

    if mask_keys:  # static: only traced when the key side actually has padding
        col = lax.broadcasted_iota(jnp.int32, (1, tk), 1) + ki * tk
        bias = jnp.where(col < n_valid, 0.0, _NEG_BIG).astype(jnp.float32)
        s_img = s_img + bias
        s_txt = s_txt + bias

    def update(m_ref, l_ref, s):
        m_old = m_ref[...]
        m_new = jnp.maximum(m_old, jnp.max(s, axis=-1, keepdims=True))
        alpha = jnp.exp(m_old - m_new)
        l_ref[...] = alpha * l_ref[...] + jnp.sum(
            jnp.exp(s - m_new), axis=-1, keepdims=True)
        m_ref[...] = m_new

    update(m_img, l_img, s_img)
    update(m_txt, l_txt, s_txt)

    @pl.when(ki == nk - 1)
    def _finalize():
        lse_img = m_img[...] + jnp.log(l_img[...])
        lse_txt = m_txt[...] + jnp.log(l_txt[...])
        row_loss = (lse_img - tgt_img[...]) + (lse_txt - tgt_txt[...])
        row = lax.broadcasted_iota(jnp.int32, (tq, 1), 0) + qi * tq
        out_ref[...] = jnp.where(row < n_valid, row_loss, 0.0)


def clip_loss(image_embed, text_embed, temperature, *,
              block_q=512, block_k=256, matmul_dtype=jnp.bfloat16,
              vmem_limit_bytes=None):
    """Pallas CLIP loss. image_embed, text_embed: [B, D]. Returns scalar f32.

    block_q/block_k: 128-multiples. Defaults (512, 256) suit v7x; raise
    block_q toward 768-1024 on v6e (128 MiB VMEM), use 256/128 on v5e. Keep
    ceil(B/block_q) >= 2 on v7x so the 'parallel' axis feeds both TensorCores.
    matmul_dtype: MXU operand dtype (default bf16, f32 accumulation); pass
    jnp.float32 for exact-f32 logits.
    """
    B, D = image_embed.shape
    assert text_embed.shape == (B, D)

    mm_dtype = jnp.dtype(matmul_dtype)
    in_dtype = jnp.dtype(image_embed.dtype)

    # Clamp tiles for small batches (keeps them 128-multiples, so f32 (8,128)
    # and bf16 (16,128) min-tile constraints hold on every generation).
    block_q = min(block_q, _round_up(B, 128))
    block_k = min(block_k, _round_up(B, 128))
    assert block_q % 16 == 0 and block_k % 128 == 0

    d_pad = _round_up(D, 128)
    b_q_pad = _round_up(B, block_q)   # queries and keys padded independently:
    b_k_pad = _round_up(B, block_k)   # no lcm blowup, never a fully-padded block
    nq, nk = b_q_pad // block_q, b_k_pad // block_k
    needs_key_mask = (b_k_pad != B)

    def pad(x, rows):
        return jnp.pad(x, ((0, rows - B), (0, d_pad - D)))

    img_q = pad(image_embed, b_q_pad)                    # query side: input dtype
    txt_q = pad(text_embed, b_q_pad)
    txt_k = pad(text_embed, b_k_pad).astype(mm_dtype)    # key side: pre-cast to
    img_k = pad(image_embed, b_k_pad).astype(mm_dtype)   # mm_dtype (halves key DMA)

    # Runtime scalars in SMEM -> no recompile when temperature / batch change.
    scale = jnp.asarray([1.0 / float(temperature)], jnp.float32)  # exp(log(1/T))
    n_valid = jnp.asarray([B], jnp.int32)

    if vmem_limit_bytes is None:
        est = (
            2 * 2 * block_q * d_pad * in_dtype.itemsize   # query inputs (budget 2 bufs)
            + 2 * 2 * block_k * d_pad * mm_dtype.itemsize # double-buffered key inputs
            + 2 * block_q * d_pad * mm_dtype.itemsize     # normalized-query scratch
            + 8 * block_q * 128 * 4                       # (TQ,1) stats + out (lane pad)
            + 4 * block_q * block_k * 4                   # logits / exp temporaries
        )
        vmem_limit_bytes = max(32 << 20, min(int(1.5 * est) + (8 << 20), 128 << 20))

    kernel = functools.partial(_clip_loss_kernel, mm_dtype=mm_dtype,
                               mask_keys=needs_key_mask)

    row_losses = pl.pallas_call(
        kernel,
        out_shape=jax.ShapeDtypeStruct((b_q_pad, 1), jnp.float32),
        grid=(nq, nk),
        in_specs=[
            pl.BlockSpec(memory_space=pltpu.MemorySpace.SMEM),        # scale
            pl.BlockSpec(memory_space=pltpu.MemorySpace.SMEM),        # n_valid
            pl.BlockSpec((block_q, d_pad), lambda qi, ki: (qi, 0)),   # image (query)
            pl.BlockSpec((block_q, d_pad), lambda qi, ki: (qi, 0)),   # text  (query)
            pl.BlockSpec((block_k, d_pad), lambda qi, ki: (ki, 0)),   # text  (key)
            pl.BlockSpec((block_k, d_pad), lambda qi, ki: (ki, 0)),   # image (key)
        ],
        out_specs=pl.BlockSpec((block_q, 1), lambda qi, ki: (qi, 0)),
        scratch_shapes=[
            pltpu.VMEM((block_q, d_pad), mm_dtype),   # scale * normalize(img) queries
            pltpu.VMEM((block_q, d_pad), mm_dtype),   # scale * normalize(txt) queries
        ] + [pltpu.VMEM((block_q, 1), jnp.float32)] * 6,
        compiler_params=pltpu.CompilerParams(
            dimension_semantics=("parallel", "arbitrary"),
            vmem_limit_bytes=vmem_limit_bytes,
        ),
    )(scale, n_valid, img_q, txt_q, txt_k, img_k)

    # Tiny final reduction: mean over the real rows, averaged over directions.
    return 0.5 * jnp.sum(row_losses) / B


def clip_loss_ref(image_embed, text_embed, temperature):
    """Pure-JAX reference mirroring the PyTorch forward (rank 0, f32 math)."""
    img = image_embed.astype(jnp.float32)
    txt = text_embed.astype(jnp.float32)
    img_all, txt_all = img, txt  # single-process: all_gather == identity

    def l2n(x):
        return x / jnp.maximum(jnp.linalg.norm(x, axis=-1, keepdims=True), 1e-12)

    scale = jnp.exp(jnp.log(1.0 / temperature))
    li = scale * l2n(img) @ txt_all.T
    lt = scale * l2n(txt) @ img_all.T
    labels = jnp.arange(img.shape[0])

    def ce(logits):
        logp = jax.nn.log_softmax(logits, axis=-1)
        return -jnp.mean(logp[jnp.arange(logits.shape[0]), labels])

    return 0.5 * (ce(li) + ce(lt))


if __name__ == "__main__":
    temperature = 0.1
    key = jax.random.PRNGKey(0)

    def check(B, D, dtype, tol, **kw):
        k1, k2 = jax.random.split(jax.random.fold_in(key, B * 1000 + D))
        img = jax.random.normal(k1, (B, D), jnp.float32).astype(dtype)
        txt = jax.random.normal(k2, (B, D), jnp.float32).astype(dtype)
        out = jax.block_until_ready(clip_loss(img, txt, temperature, **kw))
        ref = jax.block_until_ready(clip_loss_ref(img, txt, temperature))
        assert jnp.isfinite(out), "loss is not finite"
        err = abs(float(out) - float(ref))
        assert err <= tol * max(1.0, abs(float(ref))), (float(out), float(ref), err)

    # Toy batch implied by the module: single-block grid, row/col padding, f32 MXU.
    check(B=8, D=32, dtype=jnp.float32, tol=2e-3, matmul_dtype=jnp.float32)
    # Multi-block grid: online LSE across key blocks + padding masks, f32 MXU.
    check(B=200, D=160, dtype=jnp.float32, tol=2e-3,
          block_q=128, block_k=128, matmul_dtype=jnp.float32)
    # Default path: f32 inputs, bf16 keys / bf16 MXU operands, f32 accumulation.
    check(B=200, D=160, dtype=jnp.float32, tol=3e-2, block_q=128, block_k=128)
    # bf16 embeddings end-to-end.
    check(B=200, D=160, dtype=jnp.bfloat16, tol=3e-2, block_q=128, block_k=128)

    print("KERNEL_OK")
</pallas_src>

<mosaic_0001>
module attributes {stable_mosaic.version = 11 : i64} {
  func.func @_clip_loss_kernel(%arg0: i32, %arg1: i32, %arg2: memref<1xf32, #tpu.memory_space<smem>>, %arg3: memref<1xi32, #tpu.memory_space<smem>>, %arg4: memref<128x128xf32, #tpu.memory_space<vmem>>, %arg5: memref<128x128xf32, #tpu.memory_space<vmem>>, %arg6: memref<128x128xf32, #tpu.memory_space<vmem>>, %arg7: memref<128x128xf32, #tpu.memory_space<vmem>>, %arg8: memref<128x1xf32, #tpu.memory_space<vmem>>, %arg9: memref<128x128xf32, #tpu.memory_space<vmem>>, %arg10: memref<128x128xf32, #tpu.memory_space<vmem>>, %arg11: memref<128x1xf32, #tpu.memory_space<vmem>>, %arg12: memref<128x1xf32, #tpu.memory_space<vmem>>, %arg13: memref<128x1xf32, #tpu.memory_space<vmem>>, %arg14: memref<128x1xf32, #tpu.memory_space<vmem>>, %arg15: memref<128x1xf32, #tpu.memory_space<vmem>>, %arg16: memref<128x1xf32, #tpu.memory_space<vmem>>) attributes {dimension_semantics = [#tpu.dimension_semantics<parallel>, #tpu.dimension_semantics<arbitrary>], iteration_bounds = array<i64: 1, 1>, scalar_prefetch = 0 : i64, scratch_operands = 8 : i64, tpu.core_type = #tpu.core_type<tc>, window_params = [{transform_indices = @transform_0, window_bounds = array<i64: 1>}, {transform_indices = @transform_1, window_bounds = array<i64: 1>}, {transform_indices = @transform_2, window_bounds = array<i64: 128, 128>}, {transform_indices = @transform_3, window_bounds = array<i64: 128, 128>}, {transform_indices = @transform_4, window_bounds = array<i64: 128, 128>}, {transform_indices = @transform_5, window_bounds = array<i64: 128, 128>}, {transform_indices = @transform_6, window_bounds = array<i64: 128, 1>}]} {
    %c0 = arith.constant 0 : index
    %0 = memref.load %arg3[%c0] : memref<1xi32, #tpu.memory_space<smem>>
    %c0_i32 = arith.constant 0 : i32
    %1 = arith.cmpi eq, %arg1, %c0_i32 : i32
    %2 = arith.extui %1 : i1 to i32
    %c0_i32_0 = arith.constant 0 : i32
    %3 = arith.cmpi ne, %2, %c0_i32_0 : i32
    scf.if %3 {
      %c0_34 = arith.constant 0 : index
      %58 = memref.load %arg2[%c0_34] : memref<1xf32, #tpu.memory_space<smem>>
      %c0_35 = arith.constant 0 : index
      %c0_36 = arith.constant 0 : index
      %59 = vector.load %arg4[%c0_35, %c0_36] : memref<128x128xf32, #tpu.memory_space<vmem>>, vector<128x128xf32>
      %c0_37 = arith.constant 0 : index
      %c0_38 = arith.constant 0 : index
      %60 = vector.load %arg5[%c0_37, %c0_38] : memref<128x128xf32, #tpu.memory_space<vmem>>, vector<128x128xf32>
      %61 = arith.mulf %59, %59 : vector<128x128xf32>
      %cst_39 = arith.constant dense<0.000000e+00> : vector<128xf32>
      %62 = vector.multi_reduction <add>, %61, %cst_39 [1] : vector<128x128xf32> to vector<128xf32>
      %63 = vector.shape_cast %62 : vector<128xf32> to vector<128x1xf32>
      %cst_40 = arith.constant 1.000000e-24 : f32
      %64 = vector.broadcast %cst_40 : f32 to vector<128x1xf32>
      %65 = arith.maximumf %63, %64 : vector<128x1xf32>
      %66 = math.rsqrt %65 : vector<128x1xf32>
      %67 = vector.broadcast %58 : f32 to vector<128x1xf32>
      %68 = arith.mulf %67, %66 : vector<128x1xf32>
      %69 = arith.mulf %60, %60 : vector<128x128xf32>
      %cst_41 = arith.constant dense<0.000000e+00> : vector<128xf32>
      %70 = vector.multi_reduction <add>, %69, %cst_41 [1] : vector<128x128xf32> to vector<128xf32>
      %71 = vector.shape_cast %70 : vector<128xf32> to vector<128x1xf32>
      %cst_42 = arith.constant 1.000000e-24 : f32
      %72 = vector.broadcast %cst_42 : f32 to vector<128x1xf32>
      %73 = arith.maximumf %71, %72 : vector<128x1xf32>
      %74 = math.rsqrt %73 : vector<128x1xf32>
      %75 = vector.broadcast %58 : f32 to vector<128x1xf32>
      %76 = arith.mulf %75, %74 : vector<128x1xf32>
      %77 = vector.broadcast %68 : vector<128x1xf32> to vector<128x128xf32>
      %78 = arith.mulf %59, %77 : vector<128x128xf32>
      %79 = vector.broadcast %76 : vector<128x1xf32> to vector<128x128xf32>
      %80 = arith.mulf %60, %79 : vector<128x128xf32>
      %c0_43 = arith.constant 0 : index
      %c0_44 = arith.constant 0 : index
      %81 = vector.load %arg9[%c0_43, %c0_44] : memref<128x128xf32, #tpu.memory_space<vmem>>, vector<128x128xf32>
      tpu.vector_store %arg9[%c0_43, %c0_44], %78 {strides = array<i32>} : memref<128x128xf32, #tpu.memory_space<vmem>>, vector<128x128xf32>,
      %c0_45 = arith.constant 0 : index
      %c0_46 = arith.constant 0 : index
      %82 = vector.load %arg10[%c0_45, %c0_46] : memref<128x128xf32, #tpu.memory_space<vmem>>, vector<128x128xf32>
      tpu.vector_store %arg10[%c0_45, %c0_46], %80 {strides = array<i32>} : memref<128x128xf32, #tpu.memory_space<vmem>>, vector<128x128xf32>,
      %83 = arith.mulf %78, %60 : vector<128x128xf32>
      %cst_47 = arith.constant dense<0.000000e+00> : vector<128xf32>
      %84 = vector.multi_reduction <add>, %83, %cst_47 [1] : vector<128x128xf32> to vector<128xf32>
      %85 = vector.shape_cast %84 : vector<128xf32> to vector<128x1xf32>
      %c0_48 = arith.constant 0 : index
      %c0_49 = arith.constant 0 : index
      %86 = vector.load %arg15[%c0_48, %c0_49] : memref<128x1xf32, #tpu.memory_space<vmem>>, vector<128x1xf32>
      tpu.vector_store %arg15[%c0_48, %c0_49], %85 {strides = array<i32>} : memref<128x1xf32, #tpu.memory_space<vmem>>, vector<128x1xf32>,
      %87 = arith.mulf %80, %59 : vector<128x128xf32>
      %cst_50 = arith.constant dense<0.000000e+00> : vector<128xf32>
      %88 = vector.multi_reduction <add>, %87, %cst_50 [1] : vector<128x128xf32> to vector<128xf32>
      %89 = vector.shape_cast %88 : vector<128xf32> to vector<128x1xf32>
      %c0_51 = arith.constant 0 : index
      %c0_52 = arith.constant 0 : index
      %90 = vector.load %arg16[%c0_51, %c0_52] : memref<128x1xf32, #tpu.memory_space<vmem>>, vector<128x1xf32>
      tpu.vector_store %arg16[%c0_51, %c0_52], %89 {strides = array<i32>} : memref<128x1xf32, #tpu.memory_space<vmem>>, vector<128x1xf32>,
      %cst_53 = arith.constant 0xFF800000 : f32
      %91 = vector.broadcast %cst_53 : f32 to vector<128x1xf32>
      %c0_54 = arith.constant 0 : index
      %c0_55 = arith.constant 0 : index
      %92 = vector.load %arg11[%c0_54, %c0_55] : memref<128x1xf32, #tpu.memory_space<vmem>>, vector<128x1xf32>
      tpu.vector_store %arg11[%c0_54, %c0_55], %91 {strides = array<i32>} : memref<128x1xf32, #tpu.memory_space<vmem>>, vector<128x1xf32>,
      %cst_56 = arith.constant 0xFF800000 : f32
      %93 = vector.broadcast %cst_56 : f32 to vector<128x1xf32>
      %c0_57 = arith.constant 0 : index
      %c0_58 = arith.constant 0 : index
      %94 = vector.load %arg13[%c0_57, %c0_58] : memref<128x1xf32, #tpu.memory_space<vmem>>, vector<128x1xf32>
      tpu.vector_store %arg13[%c0_57, %c0_58], %93 {strides = array<i32>} : memref<128x1xf32, #tpu.memory_space<vmem>>, vector<128x1xf32>,
      %cst_59 = arith.constant 0.000000e+00 : f32
      %95 = vector.broadcast %cst_59 : f32 to vector<128x1xf32>
      %c0_60 = arith.constant 0 : index
      %c0_61 = arith.constant 0 : index
      %96 = vector.load %arg12[%c0_60, %c0_61] : memref<128x1xf32, #tpu.memory_space<vmem>>, vector<128x1xf32>
      tpu.vector_store %arg12[%c0_60, %c0_61], %95 {strides = array<i32>} : memref<128x1xf32, #tpu.memory_space<vmem>>, vector<128x1xf32>,
      %cst_62 = arith.constant 0.000000e+00 : f32
      %97 = vector.broadcast %cst_62 : f32 to vector<128x1xf32>
      %c0_63 = arith.constant 0 : index
      %c0_64 = arith.constant 0 : index
      %98 = vector.load %arg14[%c0_63, %c0_64] : memref<128x1xf32, #tpu.memory_space<vmem>>, vector<128x1xf32>
      tpu.vector_store %arg14[%c0_63, %c0_64], %97 {strides = array<i32>} : memref<128x1xf32, #tpu.memory_space<vmem>>, vector<128x1xf32>,
    } else {
    }
    %c0_1 = arith.constant 0 : index
    %c0_2 = arith.constant 0 : index
    %4 = vector.load %arg9[%c0_1, %c0_2] : memref<128x128xf32, #tpu.memory_space<vmem>>, vector<128x128xf32>
    %c0_3 = arith.constant 0 : index
    %c0_4 = arith.constant 0 : index
    %5 = vector.load %arg6[%c0_3, %c0_4] : memref<128x128xf32, #tpu.memory_space<vmem>>, vector<128x128xf32>
    %cst = arith.constant dense<0.000000e+00> : vector<128x128xf32>
    %6 = tpu.matmul %4, %5, %cst {dimension_numbers = #tpu.dot_dimension_numbers<[1], [1], [0], [0], [0, 0, 1, 0], [], []>} : vector<128x128xf32>, vector<128x128xf32>, vector<128x128xf32> -> vector<128x128xf32>
    %c0_5 = arith.constant 0 : index
    %c0_6 = arith.constant 0 : index
    %7 = vector.load %arg10[%c0_5, %c0_6] : memref<128x128xf32, #tpu.memory_space<vmem>>, vector<128x128xf32>
    %c0_7 = arith.constant 0 : index
    %c0_8 = arith.constant 0 : index
    %8 = vector.load %arg7[%c0_7, %c0_8] : memref<128x128xf32, #tpu.memory_space<vmem>>, vector<128x128xf32>
    %cst_9 = arith.constant dense<0.000000e+00> : vector<128x128xf32>
    %9 = tpu.matmul %7, %8, %cst_9 {dimension_numbers = #tpu.dot_dimension_numbers<[1], [1], [0], [0], [0, 0, 1, 0], [], []>} : vector<128x128xf32>, vector<128x128xf32>, vector<128x128xf32> -> vector<128x128xf32>
    %10 = tpu.iota {dimensions = array<i32: 1>} : vector<1x128xi32>
    %c128_i32 = arith.constant 128 : i32
    %11 = arith.muli %arg1, %c128_i32 : i32
    %12 = vector.broadcast %11 : i32 to vector<1x128xi32>
    %13 = arith.addi %10, %12 : vector<1x128xi32>
    %14 = vector.broadcast %0 : i32 to vector<1x128xi32>
    %15 = arith.cmpi slt, %13, %14 : vector<1x128xi32>
    %cst_10 = arith.constant 0.000000e+00 : f32
    %cst_11 = arith.constant -1.000000e+30 : f32
    %16 = vector.broadcast %cst_10 : f32 to vector<1x128xf32>
    %17 = vector.broadcast %cst_11 : f32 to vector<1x128xf32>
    %18 = arith.select %15, %16, %17 : vector<1x128xi1>, vector<1x128xf32>
    %19 = vector.broadcast %18 : vector<1x128xf32> to vector<128x128xf32>
    %20 = arith.addf %6, %19 : vector<128x128xf32>
    %21 = vector.broadcast %18 : vector<1x128xf32> to vector<128x128xf32>
    %22 = arith.addf %9, %21 : vector<128x128xf32>
    %c0_12 = arith.constant 0 : index
    %c0_13 = arith.constant 0 : index
    %23 = vector.load %arg11[%c0_12, %c0_13] : memref<128x1xf32, #tpu.memory_space<vmem>>, vector<128x1xf32>
    %cst_14 = arith.constant dense<0xFF800000> : vector<128xf32>
    %24 = vector.multi_reduction <maximumf>, %20, %cst_14 [1] : vector<128x128xf32> to vector<128xf32>
    %25 = vector.shape_cast %24 : vector<128xf32> to vector<128x1xf32>
    %26 = arith.maximumf %23, %25 : vector<128x1xf32>
    %27 = arith.subf %23, %26 : vector<128x1xf32>
    %28 = math.exp %27 : vector<128x1xf32>
    %c0_15 = arith.constant 0 : index
    %c0_16 = arith.constant 0 : index
    %29 = vector.load %arg12[%c0_15, %c0_16] : memref<128x1xf32, #tpu.memory_space<vmem>>, vector<128x1xf32>
    %30 = arith.mulf %28, %29 : vector<128x1xf32>
    %31 = vector.broadcast %26 : vector<128x1xf32> to vector<128x128xf32>
    %32 = arith.subf %20, %31 : vector<128x128xf32>
    %33 = math.exp %32 : vector<128x128xf32>
    %cst_17 = arith.constant dense<0.000000e+00> : vector<128xf32>
    %34 = vector.multi_reduction <add>, %33, %cst_17 [1] : vector<128x128xf32> to vector<128xf32>
    %35 = vector.shape_cast %34 : vector<128xf32> to vector<128x1xf32>
    %36 = arith.addf %30, %35 : vector<128x1xf32>
    %c0_18 = arith.constant 0 : index
    %c0_19 = arith.constant 0 : index
    %37 = vector.load %arg12[%c0_18, %c0_19] : memref<128x1xf32, #tpu.memory_space<vmem>>, vector<128x1xf32>
    tpu.vector_store %arg12[%c0_18, %c0_19], %36 {strides = array<i32>} : memref<128x1xf32, #tpu.memory_space<vmem>>, vector<128x1xf32>,
    %c0_20 = arith.constant 0 : index
    %c0_21 = arith.constant 0 : index
    %38 = vector.load %arg11[%c0_20, %c0_21] : memref<128x1xf32, #tpu.memory_space<vmem>>, vector<128x1xf32>
    tpu.vector_store %arg11[%c0_20, %c0_21], %26 {strides = array<i32>} : memref<128x1xf32, #tpu.memory_space<vmem>>, vector<128x1xf32>,
    %c0_22 = arith.constant 0 : index
    %c0_23 = arith.constant 0 : index
    %39 = vector.load %arg13[%c0_22, %c0_23] : memref<128x1xf32, #tpu.memory_space<vmem>>, vector<128x1xf32>
    %cst_24 = arith.constant dense<0xFF800000> : vector<128xf32>
    %40 = vector.multi_reduction <maximumf>, %22, %cst_24 [1] : vector<128x128xf32> to vector<128xf32>
    %41 = vector.shape_cast %40 : vector<128xf32> to vector<128x1xf32>
    %42 = arith.maximumf %39, %41 : vector<128x1xf32>
    %43 = arith.subf %39, %42 : vector<128x1xf32>
    %44 = math.exp %43 : vector<128x1xf32>
    %c0_25 = arith.constant 0 : index
    %c0_26 = arith.constant 0 : index
    %45 = vector.load %arg14[%c0_25, %c0_26] : memref<128x1xf32, #tpu.memory_space<vmem>>, vector<128x1xf32>
    %46 = arith.mulf %44, %45 : vector<128x1xf32>
    %47 = vector.broadcast %42 : vector<128x1xf32> to vector<128x128xf32>
    %48 = arith.subf %22, %47 : vector<128x128xf32>
    %49 = math.exp %48 : vector<128x128xf32>
    %cst_27 = arith.constant dense<0.000000e+00> : vector<128xf32>
    %50 = vector.multi_reduction <add>, %49, %cst_27 [1] : vector<128x128xf32> to vector<128xf32>
    %51 = vector.shape_cast %50 : vector<128xf32> to vector<128x1xf32>
    %52 = arith.addf %46, %51 : vector<128x1xf32>
    %c0_28 = arith.constant 0 : index
    %c0_29 = arith.constant 0 : index
    %53 = vector.load %arg14[%c0_28, %c0_29] : memref<128x1xf32, #tpu.memory_space<vmem>>, vector<128x1xf32>
    tpu.vector_store %arg14[%c0_28, %c0_29], %52 {strides = array<i32>} : memref<128x1xf32, #tpu.memory_space<vmem>>, vector<128x1xf32>,
    %c0_30 = arith.constant 0 : index
    %c0_31 = arith.constant 0 : index
    %54 = vector.load %arg13[%c0_30, %c0_31] : memref<128x1xf32, #tpu.memory_space<vmem>>, vector<128x1xf32>
    tpu.vector_store %arg13[%c0_30, %c0_31], %42 {strides = array<i32>} : memref<128x1xf32, #tpu.memory_space<vmem>>, vector<128x1xf32>,
    %c0_i32_32 = arith.constant 0 : i32
    %55 = arith.cmpi eq, %arg1, %c0_i32_32 : i32
    %56 = arith.extui %55 : i1 to i32
    %c0_i32_33 = arith.constant 0 : i32
    %57 = arith.cmpi ne, %56, %c0_i32_33 : i32
    scf.if %57 {
      %c0_34 = arith.constant 0 : index
      %c0_35 = arith.constant 0 : index
      %58 = vector.load %arg11[%c0_34, %c0_35] : memref<128x1xf32, #tpu.memory_space<vmem>>, vector<128x1xf32>
      %c0_36 = arith.constant 0 : index
      %c0_37 = arith.constant 0 : index
      %59 = vector.load %arg12[%c0_36, %c0_37] : memref<128x1xf32, #tpu.memory_space<vmem>>, vector<128x1xf32>
      %60 = math.log %59 : vector<128x1xf32>
      %61 = arith.addf %58, %60 : vector<128x1xf32>
      %c0_38 = arith.constant 0 : index
      %c0_39 = arith.constant 0 : index
      %62 = vector.load %arg13[%c0_38, %c0_39] : memref<128x1xf32, #tpu.memory_space<vmem>>, vector<128x1xf32>
      %c0_40 = arith.constant 0 : index
      %c0_41 = arith.constant 0 : index
      %63 = vector.load %arg14[%c0_40, %c0_41] : memref<128x1xf32, #tpu.memory_space<vmem>>, vector<128x1xf32>
      %64 = math.log %63 : vector<128x1xf32>
      %65 = arith.addf %62, %64 : vector<128x1xf32>
      %c0_42 = arith.constant 0 : index
      %c0_43 = arith.constant 0 : index
      %66 = vector.load %arg15[%c0_42, %c0_43] : memref<128x1xf32, #tpu.memory_space<vmem>>, vector<128x1xf32>
      %67 = arith.subf %61, %66 : vector<128x1xf32>
      %c0_44 = arith.constant 0 : index
      %c0_45 = arith.constant 0 : index
      %68 = vector.load %arg16[%c0_44, %c0_45] : memref<128x1xf32, #tpu.memory_space<vmem>>, vector<128x1xf32>
      %69 = arith.subf %65, %68 : vector<128x1xf32>
      %70 = arith.addf %67, %69 : vector<128x1xf32>
      %71 = tpu.iota {dimensions = array<i32: 0>} : vector<128x1xi32>
      %c128_i32_46 = arith.constant 128 : i32
      %72 = arith.muli %arg0, %c128_i32_46 : i32
      %73 = vector.broadcast %72 : i32 to vector<128x1xi32>
      %74 = arith.addi %71, %73 : vector<128x1xi32>
      %75 = vector.broadcast %0 : i32 to vector<128x1xi32>
      %76 = arith.cmpi slt, %74, %75 : vector<128x1xi32>
      %cst_47 = arith.constant 0.000000e+00 : f32
      %77 = vector.broadcast %cst_47 : f32 to vector<128x1xf32>
      %78 = arith.select %76, %70, %77 : vector<128x1xi1>, vector<128x1xf32>
      %c0_48 = arith.constant 0 : index
      %c0_49 = arith.constant 0 : index
      %79 = vector.load %arg8[%c0_48, %c0_49] : memref<128x1xf32, #tpu.memory_space<vmem>>, vector<128x1xf32>
      tpu.vector_store %arg8[%c0_48, %c0_49], %78 {strides = array<i32>} : memref<128x1xf32, #tpu.memory_space<vmem>>, vector<128x1xf32>,
    } else {
    }
    return
  }
  func.func @transform_0(%arg0: i32, %arg1: i32) -> i32 {
    %c0_i32 = arith.constant 0 : i32
    %c0_i32_0 = arith.constant 0 : i32
    return %c0_i32 : i32
  }
  func.func @transform_1(%arg0: i32, %arg1: i32) -> i32 {
    %c0_i32 = arith.constant 0 : i32
    %c0_i32_0 = arith.constant 0 : i32
    return %c0_i32 : i32
  }
  func.func @transform_2(%arg0: i32, %arg1: i32) -> (i32, i32) {
    %c0_i32 = arith.constant 0 : i32
    %c0_i32_0 = arith.constant 0 : i32
    return %arg0, %c0_i32 : i32, i32
  }
  func.func @transform_3(%arg0: i32, %arg1: i32) -> (i32, i32) {
    %c0_i32 = arith.constant 0 : i32
    %c0_i32_0 = arith.constant 0 : i32
    return %arg0, %c0_i32 : i32, i32
  }
  func.func @transform_4(%arg0: i32, %arg1: i32) -> (i32, i32) {
    %c0_i32 = arith.constant 0 : i32
    %c0_i32_0 = arith.constant 0 : i32
    return %arg1, %c0_i32 : i32, i32
  }
  func.func @transform_5(%arg0: i32, %arg1: i32) -> (i32, i32) {
    %c0_i32 = arith.constant 0 : i32
    %c0_i32_0 = arith.constant 0 : i32
    return %arg1, %c0_i32 : i32, i32
  }
  func.func @transform_6(%arg0: i32, %arg1: i32) -> (i32, i32) {
    %c0_i32 = arith.constant 0 : i32
    %c0_i32_0 = arith.constant 0 : i32
    return %arg0, %c0_i32 : i32, i32
  }
}

</mosaic_0001>

<bundles_post_ra>
// kernel: tpu_custom_call.1
= control target key start
LH: loop header
LB: loop body
LE: loop exit
PB: predicated region body
PF: predicated region fallthrough
CT: control target
= control target key end

     0   :  { %13 = vsyncpa [#allocation13], 0  ;;  %s3827_s0 = inlined_call_operand.<no memory space> [shape: f32[1], index: 0, kind: input, shape index: {}]   ;;  %s3828_s1 = inlined_call_operand.<no memory space> [shape: s32[1], index: 1, kind: input, shape index: {}]   ;;  %s3829_s2 = inlined_call_operand.hbm [shape: f32[128,128], index: 2, kind: input, shape index: {}]   ;;  %s3830_s3 = inlined_call_operand.hbm [shape: f32[128,128], index: 3, kind: input, shape index: {}]   ;;  %s3831_s4 = inlined_call_operand.hbm [shape: f32[128,128], index: 4, kind: input, shape index: {}]   ;;  %s3832_s5 = inlined_call_operand.hbm [shape: f32[128,128], index: 5, kind: input, shape index: {}]   ;;  %s3833_s6 = inlined_call_operand.vmem [shape: f32[128,1], index: 6, kind: output, shape index: {}]  }
   0x1   :  { %14 = vsyncpa [#allocation15], 0 }
   0x2   :  { %15 = vsyncpa [#allocation18], 0  ;;  %s2570_s21 = smov [#allocation14]   ;;  %s2571_s23 = smov [#allocation12]  }
   0x3   :  { %s37_s22 = sshll.u32 %s2570_s21, 4  ;;  %s25_s24 = sshll.u32 %s2571_s23, 4  ;;  %s38_s22 = int_to_ptr.vmem [resolvable:$true] %s37_s22  ;;  %s2615_s24 = int_to_ptr.vmem [resolvable:$true] %s25_s24 }
   0x4   :  { %s2476_s27 = scalar_lea.hbm %s3830_s3, 2048 }
   0x5   :  { %p2477_p0 = scmp.ne.s32.totalorder %s3830_s3, %s2476_s27  ;;  %p2480_p1 = scmp.lt.u32.totalorder %s2476_s27, %s3830_s3 }
   0x7   :  { %p2482_p2 = pnand %p2480_p1, %p2477_p0 }
   0x9   :  { %2485 = shalt.err (!%p2482_p2)
}
   0xa   :  { %s2486_s8 = scalar_lea.vmem %s38_s22, 2048  ;;  %p2491_p4 = scmp.lt.s32.totalorder %s38_s22, %s38_s22 }
   0xb   :  { %p2487_p3 = scmp.ne.s32.totalorder %s38_s22, %s2486_s8  ;;  %p2492_p5 = scmp.lt.s32.totalorder %s2486_s8, %s2486_s8 }
   0xd   :  { %p2493_p6 = por %p2492_p5, %p2491_p4 }
   0xf   :  { %p2494_p7 = pnand %p2493_p6, %p2487_p3 }
  0x11   :  { %2497 = shalt.err (!%p2494_p7)
}
  0x12   :  { %s2572_s9 = smov 128   ;;  %s2573_s10 = smov 8  }
  0x13   :  { %43 = dma.hbm_to_vmem [thread:$0]  %s3830_s3, 2048, %s38_s22, [#allocation15], %s2572_s9, %s2572_s9, %s2573_s10  }
  0x14   :  { %s2498_s15 = scalar_lea.hbm %s3829_s2, 2048 }
  0x15   :  { %p2499_p8 = scmp.ne.s32.totalorder %s3829_s2, %s2498_s15  ;;  %p2502_p9 = scmp.lt.u32.totalorder %s2498_s15, %s3829_s2 }
  0x17   :  { %p2504_p10 = pnand %p2502_p9, %p2499_p8 }
  0x19   :  { %2507 = shalt.err (!%p2504_p10)
}
  0x1a   :  { %s2508_s20 = scalar_lea.vmem %s2615_s24, 2048  ;;  %p2513_p12 = scmp.lt.s32.totalorder %s2615_s24, %s2615_s24 }
  0x1b   :  { %p2509_p11 = scmp.ne.s32.totalorder %s2615_s24, %s2508_s20  ;;  %p2514_p13 = scmp.lt.s32.totalorder %s2508_s20, %s2508_s20 }
  0x1d   :  { %p2515_p0 = por %p2514_p13, %p2513_p12 }
  0x1f   :  { %p2516_p1 = pnand %p2515_p0, %p2509_p11 }
  0x21   :  { %2519 = shalt.err (!%p2516_p1)
}
  0x22   :  { %31 = dma.hbm_to_vmem [thread:$0]  %s3829_s2, 2048, %s2615_s24, [#allocation13], %s2572_s9, %s2572_s9, %s2573_s10  }
  0x23   :  { %s2574_s22 = smov [#allocation16]   ;;  %s2575_s25 = smov [#allocation17]  }
  0x24   :  { %s49_s23 = sshll.u32 %s2574_s22, 4  ;;  %s61_s26 = sshll.u32 %s2575_s25, 4  ;;  %s50_s23 = int_to_ptr.vmem [resolvable:$true] %s49_s23  ;;  %s2652_s26 = int_to_ptr.vmem [resolvable:$true] %s61_s26 }
  0x25   :  { %s2520_s29 = scalar_lea.hbm %s3831_s4, 2048 }
  0x26   :  { %p2521_p2 = scmp.ne.s32.totalorder %s3831_s4, %s2520_s29  ;;  %p2524_p3 = scmp.lt.u32.totalorder %s2520_s29, %s3831_s4 }
  0x28   :  { %p2526_p4 = pnand %p2524_p3, %p2521_p2 }
  0x2a   :  { %2529 = shalt.err (!%p2526_p4)
}
  0x2b   :  { %s2530_s2 = scalar_lea.vmem %s50_s23, 2048  ;;  %p2535_p6 = scmp.lt.s32.totalorder %s50_s23, %s50_s23 }
  0x2c   :  { %p2531_p5 = scmp.ne.s32.totalorder %s50_s23, %s2530_s2  ;;  %p2536_p7 = scmp.lt.s32.totalorder %s2530_s2, %s2530_s2 }
  0x2e   :  { %p2537_p8 = por %p2536_p7, %p2535_p6 }
  0x30   :  { %p2538_p9 = pnand %p2537_p8, %p2531_p5 }
  0x32   :  { %2541 = shalt.err (!%p2538_p9)
}
  0x33   :  { %55 = dma.hbm_to_vmem [thread:$0]  %s3831_s4, 2048, %s50_s23, [#allocation15], %s2572_s9, %s2572_s9, %s2573_s10  }
  0x34   :  { %s2542_s15 = scalar_lea.hbm %s3832_s5, 2048 }
  0x35   :  { %p2543_p10 = scmp.ne.s32.totalorder %s3832_s5, %s2542_s15  ;;  %p2546_p11 = scmp.lt.u32.totalorder %s2542_s15, %s3832_s5 }
  0x37   :  { %p2548_p12 = pnand %p2546_p11, %p2543_p10 }
  0x39   :  { %2551 = shalt.err (!%p2548_p12)
}
  0x3a   :  { %s2552_s20 = scalar_lea.vmem %s2652_s26, 2048  ;;  %p2557_p0 = scmp.lt.s32.totalorder %s2652_s26, %s2652_s26 }
  0x3b   :  { %p2553_p13 = scmp.ne.s32.totalorder %s2652_s26, %s2552_s20  ;;  %p2558_p1 = scmp.lt.s32.totalorder %s2552_s20, %s2552_s20 }
  0x3d   :  { %p2559_p2 = por %p2558_p1, %p2557_p0 }
  0x3f   :  { %p2560_p3 = pnand %p2559_p2, %p2553_p13 }
  0x41   :  { %2563 = shalt.err (!%p2560_p3)
}
  0x42   :  { %67 = dma.hbm_to_vmem [thread:$0]  %s3832_s5, 2048, %s2652_s26, [#allocation18], %s2572_s9, %s2572_s9, %s2573_s10  }
  0x43   :  { %2564 = dma.done.wait [#allocation13], 2048  }
  0x44   :  { %2565 = vsyncadd [#allocation13], 4294965248 }
  0x45   :  { %2566 = dma.done.wait [#allocation15], 4096  }
  0x46   :  { %2567 = vsyncadd [#allocation15], 4294963200 }
  0x47   :  { %2568 = dma.done.wait [#allocation18], 2048  }
  0x48   :  { %2569 = vsyncadd [#allocation18], 4294965248  ;;  %v2689_v0 = vld [vmem:[#allocation12] sm:$0xff]  ;;  %v2691_v1 = vld [vmem:[#allocation12 + $0x8] sm:$0xff]  ;;  %vm423_vm0 = vcmask 7168  }
  0x49   :  { %v2693_v2 = vld [vmem:[#allocation14] sm:$0xff]  ;;  %v118_v3 = vmul.f32 %v2689_v0, %v2689_v0  ;;  %v119_v4 = vmul.f32 %v2691_v1, %v2691_v1  ;;  %v2699_v5 = vld [vmem:[#allocation14 + $0x8] sm:$0xff]  ;;  %v2705_v8 = vld [vmem:[#allocation12 + $0x10] sm:$0xff] }
  0x4a   :  { %v215_v6 = vmul.f32 %v2693_v2, %v2693_v2  ;;  %v216_v7 = vmul.f32 %v2699_v5, %v2699_v5  ;;  %v2707_v9 = vld [vmem:[#allocation14 + $0x10] sm:$0xff]  ;;  %v120_v10 = vmul.f32 %v2705_v8, %v2705_v8  ;;  %v2713_v12 = vld [vmem:[#allocation12 + $0x18] sm:$0xff]  ;;  %v2717_v14 = vld [vmem:[#allocation12 + $0x20] sm:$0xff] }
  0x4b   :  { %134 = vadd.xlane.f32.xlu0 %v118_v3  ;;  %136 = vadd.xlane.f32.xlu1 %v119_v4  ;;  %v217_v11 = vmul.f32 %v2707_v9, %v2707_v9  ;;  %v2715_v13 = vld [vmem:[#allocation14 + $0x18] sm:$0xff]  ;;  %v2719_v15 = vld [vmem:[#allocation14 + $0x20] sm:$0xff]  ;;  %v121_v17 = vmul.f32 %v2713_v12, %v2713_v12  ;;  %v585_v19 = vld [vmem:[#allocation16 + $0x8] sm:$0xff]  ;;  %v122_v30 = vmul.f32 %v2717_v14, %v2717_v14 }
  0x4c   :  { %v584_v16 = vld [vmem:[#allocation16] sm:$0xff]  ;;  %v218_v18 = vmul.f32 %v2715_v13, %v2715_v13  ;;  %v617_v21 = vld [vmem:[#allocation17 + $0x8] sm:$0xff]  ;;  %v586_v24 = vld [vmem:[#allocation16 + $0x10] sm:$0xff]  ;;  %v219_v31 = vmul.f32 %v2719_v15, %v2719_v15 }
  0x4d   :  { %v616_v20 = vld [vmem:[#allocation17] sm:$0xff]  ;;  %v2144_v22 = vpack.c.bf16 %v585_v19, %v584_v16  ;;  %v587_v25 = vld [vmem:[#allocation16 + $0x18] sm:$0xff]  ;;  %v618_v26 = vld [vmem:[#allocation17 + $0x10] sm:$0xff] }
  0x4e   :  { %v2176_v23 = vpack.c.bf16 %v617_v21, %v616_v20  ;;  %v2148_v27 = vpack.c.bf16 %v587_v25, %v586_v24  ;;  %v619_v28 = vld [vmem:[#allocation17 + $0x18] sm:$0xff]  ;;  %v2729_v32 = vld [vmem:[#allocation12 + $0x28] sm:$0xff]  ;;  %v588_v34 = vld [vmem:[#allocation16 + $0x20] sm:$0xff] }
  0x4f   :  { %231 = vadd.xlane.f32.xlu0 %v215_v6  ;;  %233 = vadd.xlane.f32.xlu1 %v216_v7  ;;  %v2180_v29 = vpack.c.bf16 %v619_v28, %v618_v26  ;;  %v2731_v33 = vld [vmem:[#allocation14 + $0x28] sm:$0xff]  ;;  %v620_v36 = vld [vmem:[#allocation17 + $0x20] sm:$0xff]  ;;  %v123_v38 = vmul.f32 %v2729_v32, %v2729_v32  ;;  %v2737_v40 = vld [vmem:[#allocation12 + $0x30] sm:$0xff] }
  0x50   :  { %2145 = vmatprep.subr.bf16.mxu0 %v2144_v22  ;;  %2177 = vmatprep.subr.bf16.mxu1 %v2176_v23  ;;  %v589_v35 = vld [vmem:[#allocation16 + $0x28] sm:$0xff]  ;;  %v220_v39 = vmul.f32 %v2731_v33, %v2731_v33  ;;  %v2739_v41 = vld [vmem:[#allocation14 + $0x30] sm:$0xff]  ;;  %v124_v44 = vmul.f32 %v2737_v40, %v2737_v40  ;;  %v2745_v46 = vld [vmem:[#allocation12 + $0x38] sm:$0xff] }
  0x51   :  { %2147 = vmatpush3.bf16.xpose.msra.mxu0 %v2144_v22  ;;  %2179 = vmatpush3.bf16.xpose.msra.mxu1 %v2176_v23  ;;  %v621_v37 = vld [vmem:[#allocation17 + $0x28] sm:$0xff]  ;;  %v2152_v42 = vpack.c.bf16 %v589_v35, %v588_v34  ;;  %v221_v45 = vmul.f32 %v2739_v41, %v2739_v41  ;;  %v2747_v47 = vld [vmem:[#allocation14 + $0x38] sm:$0xff]  ;;  %v590_v48 = vld [vmem:[#allocation16 + $0x30] sm:$0xff]  ;;  %v125_v52 = vmul.f32 %v2745_v46, %v2745_v46 }
  0x52   :  { %2149 = vmatprep.subr.bf16.mxu0 %v2148_v27  ;;  %2181 = vmatprep.subr.bf16.mxu1 %v2180_v29  ;;  %v2184_v43 = vpack.c.bf16 %v621_v37, %v620_v36  ;;  %v591_v49 = vld [vmem:[#allocation16 + $0x38] sm:$0xff]  ;;  %v622_v50 = vld [vmem:[#allocation17 + $0x30] sm:$0xff]  ;;  %v222_v53 = vmul.f32 %v2747_v47, %v2747_v47  ;;  %v2753_v54 = vld [vmem:[#allocation12 + $0x40] sm:$0xff] }
  0x53   :  { %138 = vadd.xlane.f32.xlu0 %v120_v10  ;;  %235 = vadd.xlane.f32.xlu1 %v217_v11  ;;  %v623_v51 = vld [vmem:[#allocation17 + $0x38] sm:$0xff]  ;;  %v2755_v55 = vld [vmem:[#allocation14 + $0x40] sm:$0xff]  ;;  %v2156_v56 = vpack.c.bf16 %v591_v49, %v590_v48  ;;  %v126_v58 = vmul.f32 %v2753_v54, %v2753_v54  ;;  %v2761_v60 = vld [vmem:[#allocation12 + $0x48] sm:$0xff] }
  0x54   :  { %v2188_v57 = vpack.c.bf16 %v623_v51, %v622_v50  ;;  %v223_v59 = vmul.f32 %v2755_v55, %v2755_v55  ;;  %v2763_v61 = vld [vmem:[#allocation14 + $0x48] sm:$0xff]  ;;  %v592_v62 = vld [vmem:[#allocation16 + $0x40] sm:$0xff]  ;;  %v127_v6 = vmul.f32 %v2761_v60, %v2761_v60  ;;  %v2769_v10 = vld [vmem:[#allocation12 + $0x50] sm:$0xff] }
  0x55   :  { %v593_v63 = vld [vmem:[#allocation16 + $0x48] sm:$0xff]  ;;  %v624_v3 = vld [vmem:[#allocation17 + $0x40] sm:$0xff]  ;;  %v224_v7 = vmul.f32 %v2763_v61, %v2763_v61  ;;  %v2771_v11 = vld [vmem:[#allocation14 + $0x50] sm:$0xff] }
  0x56   :  { %v625_v4 = vld [vmem:[#allocation17 + $0x48] sm:$0xff]  ;;  %v2160_v16 = vpack.c.bf16 %v593_v63, %v592_v62  ;;  %v225_v19 = vmul.f32 %v2771_v11, %v2771_v11  ;;  %v2777_v20 = vld [vmem:[#allocation12 + $0x58] sm:$0xff]  ;;  %v594_v22 = vld [vmem:[#allocation16 + $0x50] sm:$0xff] }
  0x57   :  { %140 = vadd.xlane.f32.xlu0 %v121_v17  ;;  %237 = vadd.xlane.f32.xlu1 %v218_v18  ;;  %v2192_v17 = vpack.c.bf16 %v625_v4, %v624_v3  ;;  %v128_v18 = vmul.f32 %v2769_v10, %v2769_v10  ;;  %v2779_v21 = vld [vmem:[#allocation14 + $0x58] sm:$0xff]  ;;  %v626_v24 = vld [vmem:[#allocation17 + $0x50] sm:$0xff]  ;;  %v129_v26 = vmul.f32 %v2777_v20, %v2777_v20  ;;  %v2785_v28 = vld [vmem:[#allocation12 + $0x60] sm:$0xff] }
  0x58   :  { %v595_v23 = vld [vmem:[#allocation16 + $0x58] sm:$0xff]  ;;  %v130_v34 = vmul.f32 %v2785_v28, %v2785_v28  ;;  %v2793_v36 = vld [vmem:[#allocation12 + $0x68] sm:$0xff]  ;;  %v2801_v48 = vld [vmem:[#allocation12 + $0x70] sm:$0xff] }
  0x59   :  { %2151 = vmatpush3.bf16.xpose.msra.mxu0 %v2148_v27  ;;  %2183 = vmatpush3.bf16.xpose.msra.mxu1 %v2180_v29  ;;  %v627_v25 = vld [vmem:[#allocation17 + $0x58] sm:$0xff]  ;;  %v226_v27 = vmul.f32 %v2779_v21, %v2779_v21  ;;  %v2787_v29 = vld [vmem:[#allocation14 + $0x60] sm:$0xff]  ;;  %v2795_v37 = vld [vmem:[#allocation14 + $0x68] sm:$0xff] }
  0x5a   :  { %2153 = vmatprep.subr.bf16.mxu0 %v2152_v42  ;;  %2185 = vmatprep.subr.bf16.mxu1 %v2184_v43  ;;  %v227_v35 = vmul.f32 %v2787_v29, %v2787_v29  ;;  %v2803_v49 = vld [vmem:[#allocation14 + $0x70] sm:$0xff]  ;;  %v631_v63 = vld [vmem:[#allocation17 + $0x78] sm:$0xff] }
  0x5b   :  { %142 = vadd.xlane.f32.xlu0 %v122_v30  ;;  %239 = vadd.xlane.f32.xlu1 %v219_v31  ;;  %v2164_v30 = vpack.c.bf16 %v595_v23, %v594_v22  ;;  %v2196_v31 = vpack.c.bf16 %v627_v25, %v626_v24  ;;  %v630_v62 = vld [vmem:[#allocation17 + $0x70] sm:$0xff] }
  0x5f   :  { %144 = vadd.xlane.f32.xlu0 %v123_v38  ;;  %241 = vadd.xlane.f32.xlu1 %v220_v39  ;;  %v596_v38 = vld [vmem:[#allocation16 + $0x60] sm:$0xff]  ;;  %v597_v39 = vld [vmem:[#allocation16 + $0x68] sm:$0xff] }
  0x60   :  { %v2168_v50 = vpack.c.bf16 %v597_v39, %v596_v38 }
  0x61   :  { %2155 = vmatpush3.bf16.xpose.msra.mxu0 %v2152_v42  ;;  %2187 = vmatpush3.bf16.xpose.msra.mxu1 %v2184_v43  ;;  %v628_v42 = vld [vmem:[#allocation17 + $0x60] sm:$0xff]  ;;  %v629_v43 = vld [vmem:[#allocation17 + $0x68] sm:$0xff] }
  0x62   :  { %2157 = vmatprep.subr.bf16.mxu0 %v2156_v56  ;;  %2189 = vmatprep.subr.bf16.mxu1 %v2188_v57  ;;  %v2200_v51 = vpack.c.bf16 %v629_v43, %v628_v42 }
  0x63   :  { %146 = vadd.xlane.f32.xlu0 %v124_v44  ;;  %243 = vadd.xlane.f32.xlu1 %v221_v45  ;;  %v131_v44 = vmul.f32 %v2793_v36, %v2793_v36  ;;  %v228_v45 = vmul.f32 %v2795_v37, %v2795_v37 }
  0x67   :  { %148 = vadd.xlane.f32.xlu0 %v125_v52  ;;  %245 = vadd.xlane.f32.xlu1 %v222_v53  ;;  %v132_v52 = vmul.f32 %v2801_v48, %v2801_v48  ;;  %v229_v53 = vmul.f32 %v2803_v49, %v2803_v49 }
  0x69   :  { %2159 = vmatpush3.bf16.xpose.msra.mxu0 %v2156_v56  ;;  %2191 = vmatpush3.bf16.xpose.msra.mxu1 %v2188_v57  ;;  %v2809_v56 = vld [vmem:[#allocation12 + $0x78] sm:$0xff] }
  0x6a   :  { %2161 = vmatprep.subr.bf16.mxu0 %v2160_v16  ;;  %2193 = vmatprep.subr.bf16.mxu1 %v2192_v17  ;;  %v2811_v57 = vld [vmem:[#allocation14 + $0x78] sm:$0xff]  ;;  %v133_v3 = vmul.f32 %v2809_v56, %v2809_v56 }
  0x6b   :  { %150 = vadd.xlane.f32.xlu0 %v126_v58  ;;  %247 = vadd.xlane.f32.xlu1 %v223_v59  ;;  %v598_v58 = vld [vmem:[#allocation16 + $0x70] sm:$0xff]  ;;  %v599_v59 = vld [vmem:[#allocation16 + $0x78] sm:$0xff]  ;;  %v230_v4 = vmul.f32 %v2811_v57, %v2811_v57 }
  0x6f   :  { %152 = vadd.xlane.f32.xlu0 %v127_v6  ;;  %249 = vadd.xlane.f32.xlu1 %v224_v7  ;;  %v2172_v6 = vpack.c.bf16 %v599_v59, %v598_v58  ;;  %v2204_v7 = vpack.c.bf16 %v631_v63, %v630_v62 }
  0x71   :  { %2163 = vmatpush3.bf16.xpose.msra.mxu0 %v2160_v16  ;;  %2195 = vmatpush3.bf16.xpose.msra.mxu1 %v2192_v17 }
  0x72   :  { %2165 = vmatprep.subr.bf16.mxu0 %v2164_v30  ;;  %2197 = vmatprep.subr.bf16.mxu1 %v2196_v31 }
  0x73   :  { %154 = vadd.xlane.f32.xlu0 %v128_v18  ;;  %251 = vadd.xlane.f32.xlu1 %v225_v19 }
  0x77   :  { %156 = vadd.xlane.f32.xlu0 %v129_v26  ;;  %253 = vadd.xlane.f32.xlu1 %v226_v27 }
  0x79   :  { %2167 = vmatpush3.bf16.xpose.msra.mxu0 %v2164_v30  ;;  %2199 = vmatpush3.bf16.xpose.msra.mxu1 %v2196_v31 }
  0x7a   :  { %2169 = vmatprep.subr.bf16.mxu0 %v2168_v50  ;;  %2201 = vmatprep.subr.bf16.mxu1 %v2200_v51 }
  0x7b   :  { %158 = vadd.xlane.f32.xlu0 %v130_v34  ;;  %255 = vadd.xlane.f32.xlu1 %v227_v35  ;;  %v2820_v34 = vstv %s3827_s0 }
  0x7f   :  { %160 = vadd.xlane.f32.xlu0 %v131_v44  ;;  %257 = vadd.xlane.f32.xlu1 %v228_v45 }
  0x81   :  { %2171 = vmatpush3.bf16.xpose.msra.mxu0 %v2168_v50  ;;  %2203 = vmatpush3.bf16.xpose.msra.mxu1 %v2200_v51 }
  0x82   :  { %2173 = vmatprep.subr.bf16.mxu0 %v2172_v6  ;;  %2205 = vmatprep.subr.bf16.mxu1 %v2204_v7 }
  0x83   :  { %162 = vadd.xlane.f32.xlu0 %v132_v52  ;;  %259 = vadd.xlane.f32.xlu1 %v229_v53 }
  0x87   :  { %164 = vadd.xlane.f32.xlu0 %v133_v3  ;;  %261 = vadd.xlane.f32.xlu1 %v230_v4 }
  0x89   :  { %2175 = vmatpush3.bf16.xpose.msra.mxu0 %v2172_v6  ;;  %2207 = vmatpush3.bf16.xpose.msra.mxu1 %v2204_v7 }
  0xd8   :  { %v135_v16 = vpop.xlane.xlu0 %134  ;;  %v137_v17 = vpop.xlane.xlu1 %136 }
  0xd9   :  { %v166_v18 = vmax.f32 %v135_v16, 1e-24  ;;  %v167_v19 = vmax.f32 %v137_v17, 1e-24 }
  0xdb   :  { %2220 = vrsqrt.f32 %v166_v18 }
  0xdc   :  { %2222 = vrsqrt.f32 %v167_v19  ;;  %v232_v22 = vpop.xlane.xlu0 %231  ;;  %v234_v23 = vpop.xlane.xlu1 %233 }
  0xdd   :  { %v263_v24 = vmax.f32 %v232_v22, 1e-24  ;;  %v264_v25 = vmax.f32 %v234_v23, 1e-24 }
  0xdf   :  { %2224 = vrsqrt.f32 %v263_v24 }
  0xe0   :  { %2226 = vrsqrt.f32 %v264_v25  ;;  %v139_v26 = vpop.xlane.xlu0 %138  ;;  %v236_v27 = vpop.xlane.xlu1 %235 }
  0xe1   :  { %v168_v30 = vmax.f32 %v139_v26, 1e-24  ;;  %v265_v31 = vmax.f32 %v236_v27, 1e-24 }
  0xe3   :  { %2228 = vrsqrt.f32 %v168_v30 }
  0xe4   :  { %2230 = vrsqrt.f32 %v265_v31  ;;  %v141_v35 = vpop.xlane.xlu0 %140  ;;  %v238_v38 = vpop.xlane.xlu1 %237 }
  0xe5   :  { %v2221_v39 = vpop.eup %2220  ;;  %v169_v42 = vmax.f32 %v141_v35, 1e-24  ;;  %v266_v43 = vmax.f32 %v238_v38, 1e-24 }
  0xe6   :  { %v2223_v44 = vpop.eup %2222  ;;  %v199_v45 = vmul.f32 %v2221_v39, %v2820_v34 }
  0xe7   :  { %2232 = vrsqrt.f32 %v169_v42  ;;  %v200_v50 = vmul.f32 %v2223_v44, %v2820_v34 }
  0xe8   :  { %2234 = vrsqrt.f32 %v266_v43  ;;  %v143_v51 = vpop.xlane.xlu0 %142  ;;  %v311_v52 = vmul.f32 %v199_v45, %v2689_v0  ;;  %v240_v53 = vpop.xlane.xlu1 %239 }
  0xe9   :  { %v2225_v58 = vpop.eup %2224  ;;  %v170_v59 = vmax.f32 %v143_v51, 1e-24  ;;  %v312_v62 = vmul.f32 %v200_v50, %v2691_v1  ;;  %v267_v63 = vmax.f32 %v240_v53, 1e-24 }
  0xea   :  { %v2227_v3 = vpop.eup %2226  ;;  %2064 = vmatprep.mubr.f32.mxu0 %v311_v52  ;;  %v375_v4 = vmul.f32 %v311_v52, %v2693_v2  ;;  %v295_v6 = vmul.f32 %v2225_v58, %v2820_v34 }
  0xeb   :  { %2236 = vrsqrt.f32 %v170_v59  ;;  %2065 = vmatmul.mubr.f32.vlgmr.msra.gmra.mrb[0].mxu0 %v312_v62  ;;  %v376_v7 = vmul.f32 %v312_v62, %v2699_v5  ;;  %v296_v16 = vmul.f32 %v2227_v3, %v2820_v34 }
  0xec   :  { %391 = vadd.xlane.f32.xlu0 %v375_v4  ;;  %v145_v17 = vpop.xlane.xlu0 %144  ;;  %v2831_v18 = vmul.f32 %v295_v6, %v2693_v2  ;;  %2238 = vrsqrt.f32 %v267_v63  ;;  %v242_v19 = vpop.xlane.xlu1 %241 }
  0xed   :  { %v2229_v22 = vpop.eup %2228  ;;  %v171_v23 = vmax.f32 %v145_v17, 1e-24  ;;  %393 = vadd.xlane.f32.xlu1 %v376_v7  ;;  %v2834_v24 = vmul.f32 %v296_v16, %v2699_v5  ;;  %v268_v25 = vmax.f32 %v242_v19, 1e-24 }
  0xee   :  { %v2231_v26 = vpop.eup %2230  ;;  %2120 = vmatprep.mubr.f32.mxu1 %v2831_v18  ;;  %v201_v27 = vmul.f32 %v2229_v22, %v2820_v34 }
  0xef   :  { %2240 = vrsqrt.f32 %v171_v23  ;;  %2121 = vmatmul.mubr.f32.vlgmr.msra.gmra.mrb[0].mxu1 %v2834_v24  ;;  %v297_v2 = vmul.f32 %v2231_v26, %v2820_v34 }
  0xf0   :  { %v147_v30 = vpop.xlane.xlu0 %146  ;;  %v313_v31 = vmul.f32 %v201_v27, %v2705_v8  ;;  %2242 = vrsqrt.f32 %v268_v25  ;;  %v244_v35 = vpop.xlane.xlu1 %243 }
  0xf1   :  { %v2233_v38 = vpop.eup %2232  ;;  %v172_v39 = vmax.f32 %v147_v30, 1e-24  ;;  %v2842_v5 = vmul.f32 %v297_v2, %v2707_v9  ;;  %v269_v42 = vmax.f32 %v244_v35, 1e-24 }
  0xf2   :  { %v2235_v43 = vpop.eup %2234  ;;  %2067 = vmatprep.mubr.f32.mxu0 %v313_v31  ;;  %v377_v44 = vmul.f32 %v313_v31, %v2707_v9  ;;  %v202_v45 = vmul.f32 %v2233_v38, %v2820_v34 }
  0xf3   :  { %2244 = vrsqrt.f32 %v172_v39  ;;  %2123 = vmatprep.mubr.f32.mxu1 %v2842_v5  ;;  %v298_v50 = vmul.f32 %v2235_v43, %v2820_v34 }
  0xf4   :  { %395 = vadd.xlane.f32.xlu0 %v377_v44  ;;  %v149_v51 = vpop.xlane.xlu0 %148  ;;  %v314_v52 = vmul.f32 %v202_v45, %v2713_v12  ;;  %2246 = vrsqrt.f32 %v269_v42  ;;  %v246_v53 = vpop.xlane.xlu1 %245 }
  0xf5   :  { %v2237_v58 = vpop.eup %2236  ;;  %v173_v59 = vmax.f32 %v149_v51, 1e-24  ;;  %v2850_v62 = vmul.f32 %v298_v50, %v2715_v13  ;;  %v270_v63 = vmax.f32 %v246_v53, 1e-24 }
  0xf6   :  { %v2239_v9 = vpop.eup %2238  ;;  %2068 = vmatmul.mubr.f32.gmra.mrb[2].mxu0 %v314_v52  ;;  %v378_v3 = vmul.f32 %v314_v52, %v2715_v13  ;;  %v203_v4 = vmul.f32 %v2237_v58, %v2820_v34 }
  0xf7   :  { %2248 = vrsqrt.f32 %v173_v59  ;;  %2124 = vmatmul.mubr.f32.gmra.mrb[2].mxu1 %v2850_v62  ;;  %v299_v6 = vmul.f32 %v2239_v9, %v2820_v34 }
  0xf8   :  { %397 = vadd.xlane.f32.xlu1 %v378_v3  ;;  %v151_v7 = vpop.xlane.xlu0 %150  ;;  %v315_v16 = vmul.f32 %v203_v4, %v2717_v14  ;;  %2250 = vrsqrt.f32 %v270_v63  ;;  %v248_v17 = vpop.xlane.xlu1 %247 }
  0xf9   :  { %v2241_v19 = vpop.eup %2240  ;;  %v174_v22 = vmax.f32 %v151_v7, 1e-24  ;;  %v2858_v23 = vmul.f32 %v299_v6, %v2719_v15  ;;  %v271_v25 = vmax.f32 %v248_v17, 1e-24 }
  0xfa   :  { %v2243_v13 = vpop.eup %2242  ;;  %2070 = vmatprep.mubr.f32.mxu0 %v315_v16  ;;  %v379_v26 = vmul.f32 %v315_v16, %v2719_v15  ;;  %v204_v27 = vmul.f32 %v2241_v19, %v2820_v34 }
  0xfb   :  { %2252 = vrsqrt.f32 %v174_v22  ;;  %2126 = vmatprep.mubr.f32.mxu1 %v2858_v23  ;;  %v300_v2 = vmul.f32 %v2243_v13, %v2820_v34 }
  0xfc   :  { %v153_v30 = vpop.xlane.xlu0 %152  ;;  %399 = vadd.xlane.f32.xlu0 %v379_v26  ;;  %v316_v31 = vmul.f32 %v204_v27, %v2729_v32  ;;  %2254 = vrsqrt.f32 %v271_v25  ;;  %v250_v35 = vpop.xlane.xlu1 %249 }
  0xfd   :  { %v2245_v38 = vpop.eup %2244  ;;  %v175_v39 = vmax.f32 %v153_v30, 1e-24  ;;  %v2866_v42 = vmul.f32 %v300_v2, %v2731_v33  ;;  %v272_v43 = vmax.f32 %v250_v35, 1e-24 }
  0xfe   :  { %v2247_v15 = vpop.eup %2246  ;;  %2071 = vmatmul.mubr.f32.gmra.mrb[4].mxu0 %v316_v31  ;;  %v380_v44 = vmul.f32 %v316_v31, %v2731_v33  ;;  %v205_v45 = vmul.f32 %v2245_v38, %v2820_v34 }
  0xff   :  { %2256 = vrsqrt.f32 %v175_v39  ;;  %2127 = vmatmul.mubr.f32.gmra.mrb[4].mxu1 %v2866_v42  ;;  %v301_v50 = vmul.f32 %v2247_v15, %v2820_v34 }
 0x100   :  { %v155_v51 = vpop.xlane.xlu0 %154  ;;  %401 = vadd.xlane.f32.xlu1 %v380_v44  ;;  %2258 = vrsqrt.f32 %v272_v43  ;;  %v252_v52 = vpop.xlane.xlu1 %251  ;;  %v317_v53 = vmul.f32 %v205_v45, %v2737_v40 }
 0x101   :  { %v2249_v58 = vpop.eup %2248  ;;  %v176_v59 = vmax.f32 %v155_v51, 1e-24  ;;  %v273_v63 = vmax.f32 %v252_v52, 1e-24  ;;  %v2874_v9 = vmul.f32 %v301_v50, %v2739_v41 }
 0x102   :  { %v2251_v33 = vpop.eup %2250  ;;  %2073 = vmatprep.mubr.f32.mxu0 %v317_v53  ;;  %v206_v3 = vmul.f32 %v2249_v58, %v2820_v34  ;;  %v381_v4 = vmul.f32 %v317_v53, %v2739_v41 }
 0x103   :  { %2260 = vrsqrt.f32 %v176_v59  ;;  %2129 = vmatprep.mubr.f32.mxu1 %v2874_v9  ;;  %v302_v6 = vmul.f32 %v2251_v33, %v2820_v34 }
 0x104   :  { %v157_v7 = vpop.xlane.xlu0 %156  ;;  %2262 = vrsqrt.f32 %v273_v63  ;;  %v318_v16 = vmul.f32 %v206_v3, %v2745_v46  ;;  %v254_v17 = vpop.xlane.xlu1 %253  ;;  %403 = vadd.xlane.f32.xlu0 %v381_v4 }
 0x105   :  { %v2253_v19 = vpop.eup %2252  ;;  %v177_v22 = vmax.f32 %v157_v7, 1e-24  ;;  %v274_v25 = vmax.f32 %v254_v17, 1e-24  ;;  %v2882_v13 = vmul.f32 %v302_v6, %v2747_v47 }
 0x106   :  { %v2255_v26 = vpop.eup %2254  ;;  %2074 = vmatmul.mubr.f32.gmra.mrb[6].mxu0 %v318_v16  ;;  %v382_v41 = vmul.f32 %v318_v16, %v2747_v47  ;;  %v207_v27 = vmul.f32 %v2253_v19, %v2820_v34 }
 0x107   :  { %2264 = vrsqrt.f32 %v177_v22  ;;  %2130 = vmatmul.mubr.f32.gmra.mrb[6].mxu1 %v2882_v13  ;;  %v303_v2 = vmul.f32 %v2255_v26, %v2820_v34 }
 0x108   :  { %v159_v30 = vpop.xlane.xlu0 %158  ;;  %2266 = vrsqrt.f32 %v274_v25  ;;  %v256_v31 = vpop.xlane.xlu1 %255  ;;  %405 = vadd.xlane.f32.xlu1 %v382_v41  ;;  %v319_v35 = vmul.f32 %v207_v27, %v2753_v54 }
 0x109   :  { %v2257_v38 = vpop.eup %2256  ;;  %v178_v39 = vmax.f32 %v159_v30, 1e-24  ;;  %v275_v43 = vmax.f32 %v256_v31, 1e-24  ;;  %v2890_v15 = vmul.f32 %v303_v2, %v2755_v55 }
 0x10a   :  { %v2259_v47 = vpop.eup %2258  ;;  %2076 = vmatprep.mubr.f32.mxu0 %v319_v35  ;;  %v208_v44 = vmul.f32 %v2257_v38, %v2820_v34  ;;  %v383_v45 = vmul.f32 %v319_v35, %v2755_v55 }
 0x10b   :  { %2268 = vrsqrt.f32 %v178_v39  ;;  %2132 = vmatprep.mubr.f32.mxu1 %v2890_v15  ;;  %v304_v50 = vmul.f32 %v2259_v47, %v2820_v34 }
 0x10c   :  { %v161_v51 = vpop.xlane.xlu0 %160  ;;  %2270 = vrsqrt.f32 %v275_v43  ;;  %v320_v52 = vmul.f32 %v208_v44, %v2761_v60  ;;  %v258_v53 = vpop.xlane.xlu1 %257  ;;  %407 = vadd.xlane.f32.xlu0 %v383_v45 }
 0x10d   :  { %v2261_v58 = vpop.eup %2260  ;;  %v179_v59 = vmax.f32 %v161_v51, 1e-24  ;;  %v276_v63 = vmax.f32 %v258_v53, 1e-24  ;;  %v2898_v33 = vmul.f32 %v304_v50, %v2763_v61 }
 0x10e   :  { %v2263_v3 = vpop.eup %2262  ;;  %2077 = vmatmul.mubr.f32.gmra.mrb[8].mxu0 %v320_v52  ;;  %v384_v55 = vmul.f32 %v320_v52, %v2763_v61  ;;  %v209_v4 = vmul.f32 %v2261_v58, %v2820_v34 }
 0x10f   :  { %2272 = vrsqrt.f32 %v179_v59  ;;  %2133 = vmatmul.mubr.f32.gmra.mrb[8].mxu1 %v2898_v33  ;;  %v305_v6 = vmul.f32 %v2263_v3, %v2820_v34 }
 0x110   :  { %v163_v7 = vpop.xlane.xlu0 %162  ;;  %2274 = vrsqrt.f32 %v276_v63  ;;  %v260_v16 = vpop.xlane.xlu1 %259  ;;  %409 = vadd.xlane.f32.xlu1 %v384_v55  ;;  %v321_v17 = vmul.f32 %v209_v4, %v2769_v10 }
 0x111   :  { %v2265_v19 = vpop.eup %2264  ;;  %v180_v22 = vmax.f32 %v163_v7, 1e-24  ;;  %v277_v25 = vmax.f32 %v260_v16, 1e-24  ;;  %v2906_v26 = vmul.f32 %v305_v6, %v2771_v11 }
 0x112   :  { %v2267_v61 = vpop.eup %2266  ;;  %2079 = vmatprep.mubr.f32.mxu0 %v321_v17  ;;  %v385_v41 = vmul.f32 %v321_v17, %v2771_v11  ;;  %v210_v27 = vmul.f32 %v2265_v19, %v2820_v34 }
 0x113   :  { %2276 = vrsqrt.f32 %v180_v22  ;;  %2135 = vmatprep.mubr.f32.mxu1 %v2906_v26  ;;  %v306_v2 = vmul.f32 %v2267_v61, %v2820_v34 }
 0x114   :  { %v165_v30 = vpop.xlane.xlu0 %164  ;;  %2278 = vrsqrt.f32 %v277_v25  ;;  %411 = vadd.xlane.f32.xlu0 %v385_v41  ;;  %v322_v31 = vmul.f32 %v210_v27, %v2777_v20  ;;  %v262_v35 = vpop.xlane.xlu1 %261 }
 0x115   :  { %v2269_v38 = vpop.eup %2268  ;;  %v181_v39 = vmax.f32 %v165_v30, 1e-24  ;;  %v278_v43 = vmax.f32 %v262_v35, 1e-24  ;;  %v2914_v47 = vmul.f32 %v306_v2, %v2779_v21  ;;  %v440_v30 = vmul.f32 %v2831_v18, %v2689_v0 }
 0x116   :  { %v2271_v11 = vpop.eup %2270  ;;  %2080 = vmatmul.mubr.f32.gmra.mrb[10].mxu0 %v322_v31  ;;  %v386_v44 = vmul.f32 %v322_v31, %v2779_v21  ;;  %v211_v45 = vmul.f32 %v2269_v38, %v2820_v34  ;;  %v444_v35 = vmul.f32 %v2858_v23, %v2717_v14  ;;  %v443_v0 = vmul.f32 %v2850_v62, %v2713_v12 }
 0x117   :  { %2280 = vrsqrt.f32 %v181_v39  ;;  %2136 = vmatmul.mubr.f32.gmra.mrb[10].mxu1 %v2914_v47  ;;  %v307_v50 = vmul.f32 %v2271_v11, %v2820_v34  ;;  %v445_v18 = vmul.f32 %v2866_v42, %v2729_v32  ;;  %v450_v12 = vmul.f32 %v2906_v26, %v2769_v10 }
 0x118   :  { %2282 = vrsqrt.f32 %v278_v43  ;;  %413 = vadd.xlane.f32.xlu1 %v386_v44  ;;  %v323_v51 = vmul.f32 %v211_v45, %v2785_v28  ;;  %v449_v14 = vmul.f32 %v2898_v33, %v2761_v60  ;;  %v3834_v38 = vlaneseq }
 0x119   :  { %v2273_v52 = vpop.eup %2272  ;;  %v339_v53 = vmul.f32 %v307_v50, %v2787_v29  ;;  %v3019_v11 = vstv %s3828_s1  ;;  %v2577_v50 = vmov -1e+30  }
 0x11a   :  { %v2275_v58 = vpop.eup %2274  ;;  %v387_v59 = vmul.f32 %v323_v51, %v2787_v29  ;;  %2082 = vmatprep.mubr.f32.mxu0 %v323_v51  ;;  %v212_v21 = vmul.f32 %v2273_v52, %v2820_v34  ;;  %3883 = vst [vmem:[#allocation22_spill] sm:$0xff] %v3019_v11 }
 0x11b   :  { %2138 = vmatprep.mubr.f32.mxu1 %v339_v53  ;;  %v308_v63 = vmul.f32 %v2275_v58, %v2820_v34  ;;  %v452_v32 = vmul.f32 %v339_v53, %v2785_v28 }
 0x11c   :  { %415 = vadd.xlane.f32.xlu0 %v387_v59  ;;  %v324_v3 = vmul.f32 %v212_v21, %v2793_v36 }
 0x11d   :  { %v2277_v55 = vpop.eup %2276  ;;  %v340_v4 = vmul.f32 %v308_v63, %v2795_v37 }
 0x11e   :  { %v2279_v6 = vpop.eup %2278  ;;  %v388_v7 = vmul.f32 %v324_v3, %v2795_v37  ;;  %v213_v16 = vmul.f32 %v2277_v55, %v2820_v34  ;;  %2083 = vmatmul.mubr.f32.gmra.mrb[12].mxu0 %v324_v3 }
 0x11f   :  { %2139 = vmatmul.mubr.f32.gmra.mrb[12].mxu1 %v340_v4  ;;  %v309_v29 = vmul.f32 %v2279_v6, %v2820_v34 }
 0x120   :  { %417 = vadd.xlane.f32.xlu1 %v388_v7  ;;  %v325_v17 = vmul.f32 %v213_v16, %v2801_v48 }
 0x121   :  { %v2281_v19 = vpop.eup %2280  ;;  %v341_v22 = vmul.f32 %v309_v29, %v2803_v49 }
 0x122   :  { %v2283_v25 = vpop.eup %2282  ;;  %v389_v61 = vmul.f32 %v325_v17, %v2803_v49  ;;  %v214_v41 = vmul.f32 %v2281_v19, %v2820_v34  ;;  %2085 = vmatprep.mubr.f32.mxu0 %v325_v17  ;;  %v442_v49 = vmul.f32 %v2842_v5, %v2705_v8  ;;  %v447_v8 = vmul.f32 %v2882_v13, %v2745_v46 }
 0x123   :  { %2141 = vmatprep.mubr.f32.mxu1 %v341_v22  ;;  %v310_v37 = vmul.f32 %v2283_v25, %v2820_v34  ;;  %v441_v34 = vmul.f32 %v2834_v24, %v2691_v1  ;;  %v448_v1 = vmul.f32 %v2890_v15, %v2753_v54  ;;  %v454_v54 = vmul.f32 %v341_v22, %v2801_v48 }
 0x124   :  { %419 = vadd.xlane.f32.xlu0 %v389_v61  ;;  %v326_v27 = vmul.f32 %v214_v41, %v2809_v56  ;;  %v453_v46 = vmul.f32 %v340_v4, %v2793_v36  ;;  %v2576_v36 = vmov -inf  }
 0x125   :  { %v342_v2 = vmul.f32 %v310_v37, %v2811_v57  ;;  %505 = vst.msk [vmem:[#allocation4 + $0x8] sm:$0xff] %vm423_vm0, %v2576_v36  ;;  %504 = vst.msk [vmem:[#allocation4] sm:$0xff] %vm423_vm0, %v2576_v36 }
 0x126   :  { %v390_v31 = vmul.f32 %v326_v27, %v2811_v57  ;;  %2086 = vmatmul.mubr.f32.gmra.mrb[14].mxu0 %v326_v27  ;;  %v446_v57 = vmul.f32 %v2874_v9, %v2737_v40  ;;  %v451_v40 = vmul.f32 %v2914_v47, %v2777_v20  ;;  %506 = vst.msk [vmem:[#allocation4 + $0x10] sm:$0xff] %vm423_vm0, %v2576_v36  ;;  %507 = vst.msk [vmem:[#allocation4 + $0x18] sm:$0xff] %vm423_vm0, %v2576_v36 }
 0x127   :  { %2142 = vmatmul.mubr.f32.gmra.mrb[14].mxu1 %v342_v2  ;;  %v455_v10 = vmul.f32 %v342_v2, %v2809_v56  ;;  %508 = vst.msk [vmem:[#allocation4 + $0x20] sm:$0xff] %vm423_vm0, %v2576_v36  ;;  %509 = vst.msk [vmem:[#allocation4 + $0x28] sm:$0xff] %vm423_vm0, %v2576_v36  ;;  %v633_v47 = vand.u32 127, %v3834_v38 }
 0x128   :  { %456 = vadd.xlane.f32.xlu0 %v440_v30  ;;  %421 = vadd.xlane.f32.xlu1 %v390_v31  ;;  %510 = vst.msk [vmem:[#allocation4 + $0x30] sm:$0xff] %vm423_vm0, %v2576_v36  ;;  %511 = vst.msk [vmem:[#allocation4 + $0x38] sm:$0xff] %vm423_vm0, %v2576_v36 }
 0x129   :  { %512 = vst.msk [vmem:[#allocation4 + $0x40] sm:$0xff] %vm423_vm0, %v2576_v36  ;;  %513 = vst.msk [vmem:[#allocation4 + $0x48] sm:$0xff] %vm423_vm0, %v2576_v36  ;;  %vm638_vm1 = vcmp.lt.s32.totalorder %v633_v47, %v3019_v11 }
 0x12a   :  { %514 = vst.msk [vmem:[#allocation4 + $0x50] sm:$0xff] %vm423_vm0, %v2576_v36  ;;  %515 = vst.msk [vmem:[#allocation4 + $0x58] sm:$0xff] %vm423_vm0, %v2576_v36  ;;  %v3024_v51 = vsel %vm638_vm1, 0.0, %v2577_v50 }
 0x12b   :  { %516 = vst.msk [vmem:[#allocation4 + $0x60] sm:$0xff] %vm423_vm0, %v2576_v36  ;;  %517 = vst.msk [vmem:[#allocation4 + $0x68] sm:$0xff] %vm423_vm0, %v2576_v36 }
 0x12c   :  { %460 = vadd.xlane.f32.xlu0 %v442_v49  ;;  %458 = vadd.xlane.f32.xlu1 %v441_v34  ;;  %518 = vst.msk [vmem:[#allocation4 + $0x70] sm:$0xff] %vm423_vm0, %v2576_v36  ;;  %519 = vst.msk [vmem:[#allocation4 + $0x78] sm:$0xff] %vm423_vm0, %v2576_v36 }
 0x12d   :  { %520 = vst.msk [vmem:[#allocation6] sm:$0xff] %vm423_vm0, %v2576_v36  ;;  %521 = vst.msk [vmem:[#allocation6 + $0x8] sm:$0xff] %vm423_vm0, %v2576_v36 }
 0x12e   :  { %522 = vst.msk [vmem:[#allocation6 + $0x10] sm:$0xff] %vm423_vm0, %v2576_v36  ;;  %523 = vst.msk [vmem:[#allocation6 + $0x18] sm:$0xff] %vm423_vm0, %v2576_v36 }
 0x12f   :  { %524 = vst.msk [vmem:[#allocation6 + $0x20] sm:$0xff] %vm423_vm0, %v2576_v36  ;;  %525 = vst.msk [vmem:[#allocation6 + $0x28] sm:$0xff] %vm423_vm0, %v2576_v36  ;;  %v3324_v11 = vld [vmem:[#allocation4 + $0x38] sm:$0xff] }
 0x130   :  { %464 = vadd.xlane.f32.xlu0 %v444_v35  ;;  %462 = vadd.xlane.f32.xlu1 %v443_v0  ;;  %526 = vst.msk [vmem:[#allocation6 + $0x30] sm:$0xff] %vm423_vm0, %v2576_v36  ;;  %527 = vst.msk [vmem:[#allocation6 + $0x38] sm:$0xff] %vm423_vm0, %v2576_v36  ;;  %v2578_v0 = vmov 0  }
 0x131   :  { %528 = vst.msk [vmem:[#allocation6 + $0x40] sm:$0xff] %vm423_vm0, %v2576_v36  ;;  %529 = vst.msk [vmem:[#allocation6 + $0x48] sm:$0xff] %vm423_vm0, %v2576_v36  ;;  %2218 = vset.pattern.permute.xlu1 %v2578_v0  ;;  %2219 = vset.pattern.permute.xlu0 %v2578_v0 }
 0x132   :  { %530 = vst.msk [vmem:[#allocation6 + $0x50] sm:$0xff] %vm423_vm0, %v2576_v36  ;;  %531 = vst.msk [vmem:[#allocation6 + $0x58] sm:$0xff] %vm423_vm0, %v2576_v36 }
 0x133   :  { %532 = vst.msk [vmem:[#allocation6 + $0x60] sm:$0xff] %vm423_vm0, %v2576_v36  ;;  %533 = vst.msk [vmem:[#allocation6 + $0x68] sm:$0xff] %vm423_vm0, %v2576_v36 }
 0x134   :  { %468 = vadd.xlane.f32.xlu0 %v446_v57  ;;  %466 = vadd.xlane.f32.xlu1 %v445_v18  ;;  %534 = vst.msk [vmem:[#allocation6 + $0x70] sm:$0xff] %vm423_vm0, %v2576_v36  ;;  %535 = vst.msk [vmem:[#allocation6 + $0x78] sm:$0xff] %vm423_vm0, %v2576_v36 }
 0x135   :  { %3893 = vst [vmem:[#allocation32_spill] sm:$0xff] %v3324_v11 }
 0x138   :  { %472 = vadd.xlane.f32.xlu0 %v448_v1  ;;  %470 = vadd.xlane.f32.xlu1 %v447_v8 }
 0x13c   :  { %476 = vadd.xlane.f32.xlu0 %v450_v12  ;;  %474 = vadd.xlane.f32.xlu1 %v449_v14 }
 0x140   :  { %480 = vadd.xlane.f32.xlu0 %v452_v32  ;;  %478 = vadd.xlane.f32.xlu1 %v451_v40 }
 0x144   :  { %484 = vadd.xlane.f32.xlu0 %v454_v54  ;;  %482 = vadd.xlane.f32.xlu1 %v453_v46 }
 0x148   :  { %486 = vadd.xlane.f32.xlu1 %v455_v10 }
 0x179   :  { %v392_v60 = vpop.xlane.xlu0 %391 }
 0x17a   :  { %424 = vst.msk [vmem:[#allocation8] sm:$0xff] %vm423_vm0, %v392_v60  ;;  %v394_v24 = vpop.xlane.xlu1 %393 }
 0x17b   :  { %425 = vst.msk [vmem:[#allocation8 + $0x8] sm:$0xff] %vm423_vm0, %v394_v24 }
 0x181   :  { %v396_v28 = vpop.xlane.xlu0 %395 }
 0x182   :  { %426 = vst.msk [vmem:[#allocation8 + $0x10] sm:$0xff] %vm423_vm0, %v396_v28 }
 0x185   :  { %v398_v20 = vpop.xlane.xlu1 %397 }
 0x186   :  { %427 = vst.msk [vmem:[#allocation8 + $0x18] sm:$0xff] %vm423_vm0, %v398_v20  ;;  %v2579_v20 = vmov 0.0  }
 0x187   :  { %537 = vst.msk [vmem:[#allocation5 + $0x8] sm:$0xff] %vm423_vm0, %v2579_v20  ;;  %536 = vst.msk [vmem:[#allocation5] sm:$0xff] %vm423_vm0, %v2579_v20 }
 0x188   :  { %538 = vst.msk [vmem:[#allocation5 + $0x10] sm:$0xff] %vm423_vm0, %v2579_v20  ;;  %539 = vst.msk [vmem:[#allocation5 + $0x18] sm:$0xff] %vm423_vm0, %v2579_v20 }
 0x189   :  { %v400_v48 = vpop.xlane.xlu0 %399  ;;  %540 = vst.msk [vmem:[#allocation5 + $0x20] sm:$0xff] %vm423_vm0, %v2579_v20  ;;  %541 = vst.msk [vmem:[#allocation5 + $0x28] sm:$0xff] %vm423_vm0, %v2579_v20 }
 0x18a   :  { %428 = vst.msk [vmem:[#allocation8 + $0x20] sm:$0xff] %vm423_vm0, %v400_v48  ;;  %542 = vst.msk [vmem:[#allocation5 + $0x30] sm:$0xff] %vm423_vm0, %v2579_v20 }
 0x18b   :  { %543 = vst.msk [vmem:[#allocation5 + $0x38] sm:$0xff] %vm423_vm0, %v2579_v20  ;;  %544 = vst.msk [vmem:[#allocation5 + $0x40] sm:$0xff] %vm423_vm0, %v2579_v20 }
 0x18c   :  { %545 = vst.msk [vmem:[#allocation5 + $0x48] sm:$0xff] %vm423_vm0, %v2579_v20  ;;  %546 = vst.msk [vmem:[#allocation5 + $0x50] sm:$0xff] %vm423_vm0, %v2579_v20 }
 0x18d   :  { %v402_v56 = vpop.xlane.xlu1 %401  ;;  %547 = vst.msk [vmem:[#allocation5 + $0x58] sm:$0xff] %vm423_vm0, %v2579_v20  ;;  %548 = vst.msk [vmem:[#allocation5 + $0x60] sm:$0xff] %vm423_vm0, %v2579_v20 }
 0x18e   :  { %429 = vst.msk [vmem:[#allocation8 + $0x28] sm:$0xff] %vm423_vm0, %v402_v56  ;;  %549 = vst.msk [vmem:[#allocation5 + $0x68] sm:$0xff] %vm423_vm0, %v2579_v20 }
 0x18f   :  { %550 = vst.msk [vmem:[#allocation5 + $0x70] sm:$0xff] %vm423_vm0, %v2579_v20  ;;  %551 = vst.msk [vmem:[#allocation5 + $0x78] sm:$0xff] %vm423_vm0, %v2579_v20 }
 0x190   :  { %552 = vst.msk [vmem:[#allocation7] sm:$0xff] %vm423_vm0, %v2579_v20  ;;  %553 = vst.msk [vmem:[#allocation7 + $0x8] sm:$0xff] %vm423_vm0, %v2579_v20 }
 0x191   :  { %v404_v5 = vpop.xlane.xlu0 %403  ;;  %554 = vst.msk [vmem:[#allocation7 + $0x10] sm:$0xff] %vm423_vm0, %v2579_v20  ;;  %555 = vst.msk [vmem:[#allocation7 + $0x18] sm:$0xff] %vm423_vm0, %v2579_v20 }
 0x192   :  { %430 = vst.msk [vmem:[#allocation8 + $0x30] sm:$0xff] %vm423_vm0, %v404_v5  ;;  %556 = vst.msk [vmem:[#allocation7 + $0x20] sm:$0xff] %vm423_vm0, %v2579_v20 }
 0x193   :  { %557 = vst.msk [vmem:[#allocation7 + $0x28] sm:$0xff] %vm423_vm0, %v2579_v20  ;;  %558 = vst.msk [vmem:[#allocation7 + $0x30] sm:$0xff] %vm423_vm0, %v2579_v20 }
 0x194   :  { %559 = vst.msk [vmem:[#allocation7 + $0x38] sm:$0xff] %vm423_vm0, %v2579_v20  ;;  %560 = vst.msk [vmem:[#allocation7 + $0x40] sm:$0xff] %vm423_vm0, %v2579_v20 }
 0x195   :  { %v406_v62 = vpop.xlane.xlu1 %405  ;;  %561 = vst.msk [vmem:[#allocation7 + $0x48] sm:$0xff] %vm423_vm0, %v2579_v20  ;;  %562 = vst.msk [vmem:[#allocation7 + $0x50] sm:$0xff] %vm423_vm0, %v2579_v20 }
 0x196   :  { %431 = vst.msk [vmem:[#allocation8 + $0x38] sm:$0xff] %vm423_vm0, %v406_v62  ;;  %563 = vst.msk [vmem:[#allocation7 + $0x58] sm:$0xff] %vm423_vm0, %v2579_v20 }
 0x197   :  { %564 = vst.msk [vmem:[#allocation7 + $0x60] sm:$0xff] %vm423_vm0, %v2579_v20  ;;  %565 = vst.msk [vmem:[#allocation7 + $0x68] sm:$0xff] %vm423_vm0, %v2579_v20 }
 0x198   :  { %566 = vst.msk [vmem:[#allocation7 + $0x70] sm:$0xff] %vm423_vm0, %v2579_v20  ;;  %567 = vst.msk [vmem:[#allocation7 + $0x78] sm:$0xff] %vm423_vm0, %v2579_v20 }
 0x199   :  { %v408_v23 = vpop.xlane.xlu0 %407 }
 0x19a   :  { %432 = vst.msk [vmem:[#allocation8 + $0x40] sm:$0xff] %vm423_vm0, %v408_v23 }
 0x19d   :  { %v410_v42 = vpop.xlane.xlu1 %409 }
 0x19e   :  { %433 = vst.msk [vmem:[#allocation8 + $0x48] sm:$0xff] %vm423_vm0, %v410_v42 }
 0x1a1   :  { %v412_v9 = vpop.xlane.xlu0 %411 }
 0x1a2   :  { %434 = vst.msk [vmem:[#allocation8 + $0x50] sm:$0xff] %vm423_vm0, %v412_v9 }
 0x1a5   :  { %v414_v13 = vpop.xlane.xlu1 %413 }
 0x1a6   :  { %435 = vst.msk [vmem:[#allocation8 + $0x58] sm:$0xff] %vm423_vm0, %v414_v13 }
 0x1a9   :  { %v416_v15 = vpop.xlane.xlu0 %415 }
 0x1aa   :  { %436 = vst.msk [vmem:[#allocation8 + $0x60] sm:$0xff] %vm423_vm0, %v416_v15 }
 0x1ad   :  { %v418_v33 = vpop.xlane.xlu1 %417 }
 0x1ae   :  { %437 = vst.msk [vmem:[#allocation8 + $0x68] sm:$0xff] %vm423_vm0, %v418_v33 }
 0x1b1   :  { %v420_v26 = vpop.xlane.xlu0 %419 }
 0x1b2   :  { %438 = vst.msk [vmem:[#allocation8 + $0x70] sm:$0xff] %vm423_vm0, %v420_v26 }
 0x1b5   :  { %v422_v39 = vpop.xlane.xlu1 %421  ;;  %v457_v43 = vpop.xlane.xlu0 %456 }
 0x1b6   :  { %439 = vst.msk [vmem:[#allocation8 + $0x78] sm:$0xff] %vm423_vm0, %v422_v39  ;;  %488 = vst.msk [vmem:[#allocation9] sm:$0xff] %vm423_vm0, %v457_v43 }
 0x1b9   :  { %v459_v44 = vpop.xlane.xlu1 %458  ;;  %v461_v45 = vpop.xlane.xlu0 %460 }
 0x1ba   :  { %489 = vst.msk [vmem:[#allocation9 + $0x8] sm:$0xff] %vm423_vm0, %v459_v44  ;;  %490 = vst.msk [vmem:[#allocation9 + $0x10] sm:$0xff] %vm423_vm0, %v461_v45 }
 0x1bd   :  { %v463_v52 = vpop.xlane.xlu1 %462  ;;  %v465_v53 = vpop.xlane.xlu0 %464 }
 0x1be   :  { %491 = vst.msk [vmem:[#allocation9 + $0x18] sm:$0xff] %vm423_vm0, %v463_v52  ;;  %492 = vst.msk [vmem:[#allocation9 + $0x20] sm:$0xff] %vm423_vm0, %v465_v53  ;;  %v2066_v58 = vpop.f32.mrb[0].mxu0 }
 0x1bf   :  { %v3029_v59 = vadd.f32 %v2066_v58, %v3024_v51  ;;  %v706_v21 = vpop.f32.mrb[1].mxu0 }
 0x1c0   :  { %v3045_v17 = vadd.f32 %v706_v21, %v3024_v51 }
 0x1c1   :  { %948 = vmax.xlane.f32.xlu1 %v3029_v59  ;;  %v467_v63 = vpop.xlane.xlu1 %466  ;;  %v469_v3 = vpop.xlane.xlu0 %468 }
 0x1c2   :  { %493 = vst.msk [vmem:[#allocation9 + $0x28] sm:$0xff] %vm423_vm0, %v467_v63  ;;  %494 = vst.msk [vmem:[#allocation9 + $0x30] sm:$0xff] %vm423_vm0, %v469_v3  ;;  %v2122_v55 = vpop.f32.mrb[0].mxu1 }
 0x1c3   :  { %v3035_v4 = vadd.f32 %v2122_v55, %v3024_v51  ;;  %v851_v6 = vpop.f32.mrb[1].mxu1 }
 0x1c4   :  { %v3038_v7 = vadd.f32 %v851_v6, %v3024_v51 }
 0x1c5   :  { %1301 = vmax.xlane.f32.xlu0 %v3035_v4  ;;  %v471_v16 = vpop.xlane.xlu1 %470  ;;  %v473_v29 = vpop.xlane.xlu0 %472 }
 0x1c6   :  { %495 = vst.msk [vmem:[#allocation9 + $0x38] sm:$0xff] %vm423_vm0, %v471_v16  ;;  %496 = vst.msk [vmem:[#allocation9 + $0x40] sm:$0xff] %vm423_vm0, %v473_v29  ;;  %1299 = vmax.xlane.f32.xlu1 %v3038_v7 }
 0x1c9   :  { %v2069_v19 = vpop.f32.mrb[2].mxu0  ;;  %946 = vmax.xlane.f32.xlu0 %v3045_v17  ;;  %v475_v22 = vpop.xlane.xlu1 %474 }
 0x1ca   :  { %v3049_v25 = vadd.f32 %v2069_v19, %v3024_v51  ;;  %497 = vst.msk [vmem:[#allocation9 + $0x48] sm:$0xff] %vm423_vm0, %v475_v22  ;;  %v477_v61 = vpop.xlane.xlu0 %476  ;;  %v716_v41 = vpop.f32.mrb[3].mxu0 }
 0x1cb   :  { %498 = vst.msk [vmem:[#allocation9 + $0x50] sm:$0xff] %vm423_vm0, %v477_v61  ;;  %v3054_v37 = vadd.f32 %v716_v41, %v3024_v51  ;;  %v2125_v27 = vpop.f32.mrb[2].mxu1 }
 0x1cc   :  { %v3057_v2 = vadd.f32 %v2125_v27, %v3024_v51  ;;  %952 = vmax.xlane.f32.xlu1 %v3049_v25  ;;  %v861_v30 = vpop.f32.mrb[3].mxu1 }
 0x1cd   :  { %950 = vmax.xlane.f32.xlu0 %v3054_v37  ;;  %v479_v31 = vpop.xlane.xlu1 %478  ;;  %v3065_v57 = vadd.f32 %v861_v30, %v3024_v51 }
 0x1ce   :  { %499 = vst.msk [vmem:[#allocation9 + $0x58] sm:$0xff] %vm423_vm0, %v479_v31  ;;  %v481_v49 = vpop.xlane.xlu0 %480 }
 0x1cf   :  { %500 = vst.msk [vmem:[#allocation9 + $0x60] sm:$0xff] %vm423_vm0, %v481_v49 }
 0x1d0   :  { %1305 = vmax.xlane.f32.xlu1 %v3057_v2 }
 0x1d1   :  { %v483_v34 = vpop.xlane.xlu1 %482  ;;  %v2072_v35 = vpop.f32.mrb[4].mxu0 }
 0x1d2   :  { %501 = vst.msk [vmem:[#allocation9 + $0x68] sm:$0xff] %vm423_vm0, %v483_v34  ;;  %v485_v18 = vpop.xlane.xlu0 %484  ;;  %v726_v1 = vpop.f32.mrb[5].mxu0  ;;  %v3073_v14 = vadd.f32 %v2072_v35, %v3024_v51  ;;  %v3199_v34 = vld [vmem:[#allocation4 + $0x8] sm:$0xff] }
 0x1d3   :  { %502 = vst.msk [vmem:[#allocation9 + $0x70] sm:$0xff] %vm423_vm0, %v485_v18  ;;  %v3070_v8 = vadd.f32 %v726_v1, %v3024_v51  ;;  %v2128_v12 = vpop.f32.mrb[4].mxu1  ;;  %v3204_v18 = vld [vmem:[#allocation6 + $0x8] sm:$0xff]  ;;  %v3211_v1 = vld [vmem:[#allocation6] sm:$0xff] }
 0x1d4   :  { %1303 = vmax.xlane.f32.xlu1 %v3065_v57  ;;  %v871_v32 = vpop.f32.mrb[5].mxu1  ;;  %v3079_v54 = vadd.f32 %v2128_v12, %v3024_v51 }
 0x1d5   :  { %v487_v40 = vpop.xlane.xlu1 %486  ;;  %954 = vmax.xlane.f32.xlu0 %v3070_v8  ;;  %v3123_v36 = vadd.f32 %v871_v32, %v3024_v51 }
 0x1d6   :  { %503 = vst.msk [vmem:[#allocation9 + $0x78] sm:$0xff] %vm423_vm0, %v487_v40 }
 0x1d8   :  { %956 = vmax.xlane.f32.xlu1 %v3073_v14 }
 0x1d9   :  { %v2075_v46 = vpop.f32.mrb[6].mxu0 }
 0x1da   :  { %v736_v10 = vpop.f32.mrb[7].mxu0  ;;  %v2131_v60 = vpop.f32.mrb[6].mxu1  ;;  %v3126_v56 = vadd.f32 %v2075_v46, %v3024_v51 }
 0x1db   :  { %v3083_v24 = vadd.f32 %v736_v10, %v3024_v51  ;;  %v881_v28 = vpop.f32.mrb[7].mxu1  ;;  %v3134_v13 = vadd.f32 %v2131_v60, %v3024_v51  ;;  %v3219_v10 = vld [vmem:[#allocation4] sm:$0xff] }
 0x1dc   :  { %1309 = vmax.xlane.f32.xlu1 %v3079_v54  ;;  %v3120_v48 = vadd.f32 %v881_v28, %v3024_v51  ;;  %v3315_v28 = vld [vmem:[#allocation6 + $0x30] sm:$0xff] }
 0x1dd   :  { %958 = vmax.xlane.f32.xlu0 %v3083_v24  ;;  %3891 = vst [vmem:[#allocation30_spill] sm:$0xff] %v3315_v28 }
 0x1e0   :  { %1307 = vmax.xlane.f32.xlu1 %v3123_v36 }
 0x1e1   :  { %v2078_v5 = vpop.f32.mrb[8].mxu0  ;;  %1311 = vmax.xlane.f32.xlu0 %v3120_v48 }
 0x1e2   :  { %v746_v62 = vpop.f32.mrb[9].mxu0  ;;  %v2134_v23 = vpop.f32.mrb[8].mxu1  ;;  %v3142_v33 = vadd.f32 %v2078_v5, %v3024_v51 }
 0x1e3   :  { %v3131_v42 = vadd.f32 %v746_v62, %v3024_v51  ;;  %v891_v9 = vpop.f32.mrb[9].mxu1  ;;  %v3150_v45 = vadd.f32 %v2134_v23, %v3024_v51  ;;  %v3234_v62 = vld [vmem:[#allocation4 + $0x18] sm:$0xff]  ;;  %v3236_v23 = vld [vmem:[#allocation4 + $0x10] sm:$0xff] }
 0x1e4   :  { %960 = vmax.xlane.f32.xlu1 %v3126_v56  ;;  %v3139_v15 = vadd.f32 %v891_v9, %v3024_v51  ;;  %v3305_v9 = vld [vmem:[#allocation6 + $0x20] sm:$0xff] }
 0x1e5   :  { %962 = vmax.xlane.f32.xlu0 %v3131_v42  ;;  %3889 = vst [vmem:[#allocation28_spill] sm:$0xff] %v3305_v9 }
 0x1e8   :  { %1313 = vmax.xlane.f32.xlu1 %v3134_v13 }
 0x1e9   :  { %v2081_v26 = vpop.f32.mrb[10].mxu0  ;;  %1315 = vmax.xlane.f32.xlu0 %v3139_v15 }
 0x1ea   :  { %v756_v39 = vpop.f32.mrb[11].mxu0  ;;  %v2137_v43 = vpop.f32.mrb[10].mxu1  ;;  %v3158_v52 = vadd.f32 %v2081_v26, %v3024_v51 }
 0x1eb   :  { %v3147_v47 = vadd.f32 %v756_v39, %v3024_v51  ;;  %v901_v44 = vpop.f32.mrb[11].mxu1  ;;  %v3166_v55 = vadd.f32 %v2137_v43, %v3024_v51 }
 0x1ec   :  { %964 = vmax.xlane.f32.xlu1 %v3142_v33  ;;  %v3155_v50 = vadd.f32 %v901_v44, %v3024_v51 }
 0x1ed   :  { %966 = vmax.xlane.f32.xlu0 %v3147_v47 }
 0x1f0   :  { %1317 = vmax.xlane.f32.xlu1 %v3150_v45 }
 0x1f1   :  { %v2084_v53 = vpop.f32.mrb[12].mxu0  ;;  %1319 = vmax.xlane.f32.xlu0 %v3155_v50 }
 0x1f2   :  { %v766_v58 = vpop.f32.mrb[13].mxu0  ;;  %v2140_v21 = vpop.f32.mrb[12].mxu1  ;;  %v3174_v16 = vadd.f32 %v2084_v53, %v3024_v51  ;;  %v3249_v53 = vld [vmem:[#allocation6 + $0x18] sm:$0xff] }
 0x1f3   :  { %v3163_v63 = vadd.f32 %v766_v58, %v3024_v51  ;;  %v911_v3 = vpop.f32.mrb[13].mxu1  ;;  %v3188_v31 = vadd.f32 %v2140_v21, %v3024_v51 }
 0x1f4   :  { %968 = vmax.xlane.f32.xlu1 %v3158_v52  ;;  %v3171_v6 = vadd.f32 %v911_v3, %v3024_v51 }
 0x1f5   :  { %970 = vmax.xlane.f32.xlu0 %v3163_v63 }
 0x1f8   :  { %1321 = vmax.xlane.f32.xlu1 %v3166_v55 }
 0x1f9   :  { %1323 = vmax.xlane.f32.xlu0 %v3171_v6  ;;  %v2087_v29 = vpop.f32.mrb[14].mxu0 }
 0x1fa   :  { %v3179_v19 = vadd.f32 %v2087_v29, %v3024_v51  ;;  %v776_v22 = vpop.f32.mrb[15].mxu0  ;;  %v2143_v61 = vpop.f32.mrb[14].mxu1 }
 0x1fb   :  { %v3182_v41 = vadd.f32 %v776_v22, %v3024_v51  ;;  %v3185_v27 = vadd.f32 %v2143_v61, %v3024_v51  ;;  %v921_v30 = vpop.f32.mrb[15].mxu1  ;;  %v3263_v22 = vld [vmem:[#allocation6 + $0x10] sm:$0xff] }
 0x1fc   :  { %972 = vmax.xlane.f32.xlu1 %v3174_v16  ;;  %v3192_v49 = vadd.f32 %v921_v30, %v3024_v51  ;;  %v3271_v30 = vld [vmem:[#allocation4 + $0x20] sm:$0xff]  ;;  %v3300_v61 = vld [vmem:[#allocation4 + $0x30] sm:$0xff] }
 0x1fd   :  { %974 = vmax.xlane.f32.xlu0 %v3182_v41  ;;  %3884 = vst [vmem:[#allocation23_spill] sm:$0xff] %v3271_v30  ;;  %3887 = vst [vmem:[#allocation26_spill] sm:$0xff] %v3300_v61 }
 0x200   :  { %1325 = vmax.xlane.f32.xlu1 %v3188_v31 }
 0x201   :  { %1327 = vmax.xlane.f32.xlu0 %v3192_v49 }
 0x204   :  { %976 = vmax.xlane.f32.xlu1 %v3179_v19 }
 0x208   :  { %1329 = vmax.xlane.f32.xlu1 %v3185_v27 }
 0x24e   :  { %v949_v35 = vpop.xlane.xlu1 %948 }
 0x24f   :  { %v3202_v0 = vmax.f32 %v3199_v34, %v949_v35 }
 0x251   :  { %1268 = vst.msk [vmem:[#allocation4 + $0x8] sm:$0xff] %vm423_vm0, %v3202_v0  ;;  %1081 = vperm.xlu1 %2218, %v3202_v0  }
 0x252   :  { %v1302_v12 = vpop.xlane.xlu0 %1301 }
 0x253   :  { %v3214_v32 = vmax.f32 %v3204_v18, %v1302_v12  ;;  %v1300_v40 = vpop.xlane.xlu1 %1299 }
 0x254   :  { %v3217_v46 = vmax.f32 %v3211_v1, %v1300_v40 }
 0x255   :  { %1620 = vst.msk [vmem:[#allocation6 + $0x8] sm:$0xff] %vm423_vm0, %v3214_v32  ;;  %1434 = vperm.xlu0 %2219, %v3214_v32  }
 0x256   :  { %1619 = vst.msk [vmem:[#allocation6] sm:$0xff] %vm423_vm0, %v3217_v46  ;;  %1429 = vperm.xlu1 %2218, %v3217_v46   ;;  %v947_v20 = vpop.xlane.xlu0 %946 }
 0x257   :  { %v3232_v5 = vmax.f32 %v3219_v10, %v947_v20  ;;  %v3276_v20 = vld [vmem:[#allocation4 + $0x28] sm:$0xff] }
 0x259   :  { %1267 = vst.msk [vmem:[#allocation4] sm:$0xff] %vm423_vm0, %v3232_v5  ;;  %v953_v26 = vpop.xlane.xlu1 %952  ;;  %1076 = vperm.xlu0 %2219, %v3232_v5  }
 0x25a   :  { %v3244_v39 = vmax.f32 %v3234_v62, %v953_v26  ;;  %v951_v43 = vpop.xlane.xlu0 %950 }
 0x25b   :  { %v3247_v44 = vmax.f32 %v3236_v23, %v951_v43 }
 0x25c   :  { %1270 = vst.msk [vmem:[#allocation4 + $0x18] sm:$0xff] %vm423_vm0, %v3244_v39  ;;  %1091 = vperm.xlu1 %2218, %v3244_v39  }
 0x25d   :  { %1269 = vst.msk [vmem:[#allocation4 + $0x10] sm:$0xff] %vm423_vm0, %v3247_v44  ;;  %v1306_v3 = vpop.xlane.xlu1 %1305 }
 0x25e   :  { %v3261_v29 = vmax.f32 %v3249_v53, %v1306_v3 }
 0x260   :  { %1622 = vst.msk [vmem:[#allocation6 + $0x18] sm:$0xff] %vm423_vm0, %v3261_v29  ;;  %1444 = vperm.xlu0 %2219, %v3261_v29   ;;  %1086 = vperm.xlu1 %2218, %v3247_v44  }
 0x261   :  { %v1304_v35 = vpop.xlane.xlu1 %1303 }
 0x262   :  { %v3274_v12 = vmax.f32 %v3263_v22, %v1304_v35  ;;  %v955_v40 = vpop.xlane.xlu0 %954 }
 0x263   :  { %v3279_v26 = vmax.f32 %v3271_v30, %v955_v40  ;;  %v3293_v40 = vld [vmem:[#allocation6 + $0x28] sm:$0xff] }
 0x264   :  { %1621 = vst.msk [vmem:[#allocation6 + $0x10] sm:$0xff] %vm423_vm0, %v3274_v12  ;;  %1439 = vperm.xlu1 %2218, %v3274_v12   ;;  %3886 = vst [vmem:[#allocation25_spill] sm:$0xff] %v3293_v40 }
 0x265   :  { %3885 = vst [vmem:[#allocation24_spill] sm:$0xff] %v3279_v26  ;;  %v957_v3 = vpop.xlane.xlu1 %956  ;;  %1271 = vst.msk [vmem:[#allocation4 + $0x20] sm:$0xff] %vm423_vm0, %v3279_v26 }
 0x266   :  { %v3291_v35 = vmax.f32 %v3276_v20, %v957_v3 }
 0x268   :  { %1272 = vst.msk [vmem:[#allocation4 + $0x28] sm:$0xff] %vm423_vm0, %v3291_v35  ;;  %1101 = vperm.xlu1 %2218, %v3291_v35  }
 0x269   :  { %v1310_v21 = vpop.xlane.xlu1 %1309 }
 0x26a   :  { %v3303_v38 = vmax.f32 %v3293_v40, %v1310_v21  ;;  %v959_v58 = vpop.xlane.xlu0 %958  ;;  %v3335_v21 = vld [vmem:[#allocation4 + $0x40] sm:$0xff] }
 0x26b   :  { %v3308_v3 = vmax.f32 %v3300_v61, %v959_v58  ;;  %3895 = vst [vmem:[#allocation34_spill] sm:$0xff] %v3335_v21  ;;  %v3355_v61 = vld [vmem:[#allocation6 + $0x40] sm:$0xff] }
 0x26c   :  { %3888 = vst [vmem:[#allocation27_spill] sm:$0xff] %v3303_v38  ;;  %1624 = vst.msk [vmem:[#allocation6 + $0x28] sm:$0xff] %vm423_vm0, %v3303_v38  ;;  %1454 = vperm.xlu0 %2219, %v3303_v38  }
 0x26d   :  { %3890 = vst [vmem:[#allocation29_spill] sm:$0xff] %v3308_v3  ;;  %v1308_v60 = vpop.xlane.xlu1 %1307  ;;  %1273 = vst.msk [vmem:[#allocation4 + $0x30] sm:$0xff] %vm423_vm0, %v3308_v3 }
 0x26e   :  { %v3322_v58 = vmax.f32 %v3305_v9, %v1308_v60  ;;  %v1312_v51 = vpop.xlane.xlu0 %1311  ;;  %v3344_v9 = vld [vmem:[#allocation6 + $0x38] sm:$0xff]  ;;  %3899 = vst [vmem:[#allocation38_spill] sm:$0xff] %v3355_v61 }
 0x26f   :  { %v3327_v43 = vmax.f32 %v3315_v28, %v1312_v51  ;;  %3897 = vst [vmem:[#allocation36_spill] sm:$0xff] %v3344_v9  ;;  %v3375_v28 = vld [vmem:[#allocation4 + $0x50] sm:$0xff] }
 0x270   :  { %3892 = vst [vmem:[#allocation31_spill] sm:$0xff] %v3322_v58  ;;  %1623 = vst.msk [vmem:[#allocation6 + $0x20] sm:$0xff] %vm423_vm0, %v3322_v58  ;;  %1449 = vperm.xlu1 %2218, %v3322_v58   ;;  %1096 = vperm.xlu0 %2219, %v3279_v26  }
 0x271   :  { %3894 = vst [vmem:[#allocation33_spill] sm:$0xff] %v3327_v43  ;;  %v961_v60 = vpop.xlane.xlu1 %960  ;;  %1625 = vst.msk [vmem:[#allocation6 + $0x30] sm:$0xff] %vm423_vm0, %v3327_v43 }
 0x272   :  { %v3342_v51 = vmax.f32 %v3324_v11, %v961_v60  ;;  %v963_v30 = vpop.xlane.xlu0 %962  ;;  %v3364_v11 = vld [vmem:[#allocation4 + $0x48] sm:$0xff]  ;;  %3903 = vst [vmem:[#allocation42_spill] sm:$0xff] %v3375_v28 }
 0x273   :  { %v3347_v38 = vmax.f32 %v3335_v21, %v963_v30  ;;  %3901 = vst [vmem:[#allocation40_spill] sm:$0xff] %v3364_v11  ;;  %v3395_v21 = vld [vmem:[#allocation6 + $0x50] sm:$0xff] }
 0x274   :  { %3896 = vst [vmem:[#allocation35_spill] sm:$0xff] %v3342_v51  ;;  %1274 = vst.msk [vmem:[#allocation4 + $0x38] sm:$0xff] %vm423_vm0, %v3342_v51  ;;  %1111 = vperm.xlu0 %2219, %v3342_v51   ;;  %1106 = vperm.xlu1 %2218, %v3308_v3  }
 0x275   :  { %3898 = vst [vmem:[#allocation37_spill] sm:$0xff] %v3347_v38  ;;  %v1314_v60 = vpop.xlane.xlu1 %1313  ;;  %1275 = vst.msk [vmem:[#allocation4 + $0x40] sm:$0xff] %vm423_vm0, %v3347_v38 }
 0x276   :  { %v3362_v30 = vmax.f32 %v3344_v9, %v1314_v60  ;;  %v1316_v58 = vpop.xlane.xlu0 %1315  ;;  %v3384_v9 = vld [vmem:[#allocation6 + $0x48] sm:$0xff]  ;;  %3907 = vst [vmem:[#allocation46_spill] sm:$0xff] %v3395_v21 }
 0x277   :  { %v3367_v26 = vmax.f32 %v3355_v61, %v1316_v58  ;;  %3905 = vst [vmem:[#allocation44_spill] sm:$0xff] %v3384_v9  ;;  %v3415_v61 = vld [vmem:[#allocation4 + $0x60] sm:$0xff] }
 0x278   :  { %3900 = vst [vmem:[#allocation39_spill] sm:$0xff] %v3362_v30  ;;  %1626 = vst.msk [vmem:[#allocation6 + $0x38] sm:$0xff] %vm423_vm0, %v3362_v30  ;;  %1464 = vperm.xlu0 %2219, %v3362_v30   ;;  %1459 = vperm.xlu1 %2218, %v3327_v43  }
 0x279   :  { %3902 = vst [vmem:[#allocation41_spill] sm:$0xff] %v3367_v26  ;;  %v965_v60 = vpop.xlane.xlu1 %964  ;;  %1627 = vst.msk [vmem:[#allocation6 + $0x40] sm:$0xff] %vm423_vm0, %v3367_v26 }
 0x27a   :  { %v3382_v58 = vmax.f32 %v3364_v11, %v965_v60  ;;  %v967_v51 = vpop.xlane.xlu0 %966  ;;  %v3404_v11 = vld [vmem:[#allocation4 + $0x58] sm:$0xff]  ;;  %3911 = vst [vmem:[#allocation50_spill] sm:$0xff] %v3415_v61 }
 0x27b   :  { %v3387_v3 = vmax.f32 %v3375_v28, %v967_v51  ;;  %3909 = vst [vmem:[#allocation48_spill] sm:$0xff] %v3404_v11  ;;  %v3435_v28 = vld [vmem:[#allocation6 + $0x60] sm:$0xff] }
 0x27c   :  { %3904 = vst [vmem:[#allocation43_spill] sm:$0xff] %v3382_v58  ;;  %1276 = vst.msk [vmem:[#allocation4 + $0x48] sm:$0xff] %vm423_vm0, %v3382_v58  ;;  %1121 = vperm.xlu0 %2219, %v3382_v58   ;;  %1116 = vperm.xlu1 %2218, %v3347_v38  }
 0x27d   :  { %3906 = vst [vmem:[#allocation45_spill] sm:$0xff] %v3387_v3  ;;  %v1318_v60 = vpop.xlane.xlu1 %1317  ;;  %1277 = vst.msk [vmem:[#allocation4 + $0x50] sm:$0xff] %vm423_vm0, %v3387_v3 }
 0x27e   :  { %v3402_v51 = vmax.f32 %v3384_v9, %v1318_v60  ;;  %v1320_v30 = vpop.xlane.xlu0 %1319  ;;  %v3424_v9 = vld [vmem:[#allocation6 + $0x58] sm:$0xff]  ;;  %3915 = vst [vmem:[#allocation54_spill] sm:$0xff] %v3435_v28 }
 0x27f   :  { %v3407_v43 = vmax.f32 %v3395_v21, %v1320_v30  ;;  %3913 = vst [vmem:[#allocation52_spill] sm:$0xff] %v3424_v9  ;;  %v3455_v21 = vld [vmem:[#allocation4 + $0x70] sm:$0xff] }
 0x280   :  { %3908 = vst [vmem:[#allocation47_spill] sm:$0xff] %v3402_v51  ;;  %1628 = vst.msk [vmem:[#allocation6 + $0x48] sm:$0xff] %vm423_vm0, %v3402_v51  ;;  %1474 = vperm.xlu0 %2219, %v3402_v51   ;;  %1469 = vperm.xlu1 %2218, %v3367_v26  }
 0x281   :  { %3910 = vst [vmem:[#allocation49_spill] sm:$0xff] %v3407_v43  ;;  %v969_v60 = vpop.xlane.xlu1 %968  ;;  %1629 = vst.msk [vmem:[#allocation6 + $0x50] sm:$0xff] %vm423_vm0, %v3407_v43 }
 0x282   :  { %v3422_v30 = vmax.f32 %v3404_v11, %v969_v60  ;;  %v971_v58 = vpop.xlane.xlu0 %970  ;;  %v3444_v11 = vld [vmem:[#allocation4 + $0x68] sm:$0xff]  ;;  %3919 = vst [vmem:[#allocation58_spill] sm:$0xff] %v3455_v21 }
 0x283   :  { %v3427_v38 = vmax.f32 %v3415_v61, %v971_v58  ;;  %3917 = vst [vmem:[#allocation56_spill] sm:$0xff] %v3444_v11  ;;  %v3475_v61 = vld [vmem:[#allocation6 + $0x70] sm:$0xff] }
 0x284   :  { %3912 = vst [vmem:[#allocation51_spill] sm:$0xff] %v3422_v30  ;;  %1278 = vst.msk [vmem:[#allocation4 + $0x58] sm:$0xff] %vm423_vm0, %v3422_v30  ;;  %1131 = vperm.xlu0 %2219, %v3422_v30   ;;  %1126 = vperm.xlu1 %2218, %v3387_v3  }
 0x285   :  { %3914 = vst [vmem:[#allocation53_spill] sm:$0xff] %v3427_v38  ;;  %v1322_v60 = vpop.xlane.xlu1 %1321  ;;  %1279 = vst.msk [vmem:[#allocation4 + $0x60] sm:$0xff] %vm423_vm0, %v3427_v38 }
 0x286   :  { %v3442_v58 = vmax.f32 %v3424_v9, %v1322_v60  ;;  %v1324_v51 = vpop.xlane.xlu0 %1323  ;;  %v3464_v9 = vld [vmem:[#allocation6 + $0x68] sm:$0xff]  ;;  %3923 = vst [vmem:[#allocation62_spill] sm:$0xff] %v3475_v61 }
 0x287   :  { %v3447_v26 = vmax.f32 %v3435_v28, %v1324_v51  ;;  %3921 = vst [vmem:[#allocation60_spill] sm:$0xff] %v3464_v9 }
 0x288   :  { %3916 = vst [vmem:[#allocation55_spill] sm:$0xff] %v3442_v58  ;;  %1630 = vst.msk [vmem:[#allocation6 + $0x58] sm:$0xff] %vm423_vm0, %v3442_v58  ;;  %1484 = vperm.xlu0 %2219, %v3442_v58   ;;  %1479 = vperm.xlu1 %2218, %v3407_v43  }
 0x289   :  { %3918 = vst [vmem:[#allocation57_spill] sm:$0xff] %v3447_v26  ;;  %v973_v60 = vpop.xlane.xlu1 %972  ;;  %1631 = vst.msk [vmem:[#allocation6 + $0x60] sm:$0xff] %vm423_vm0, %v3447_v26 }
 0x28a   :  { %v3462_v51 = vmax.f32 %v3444_v11, %v973_v60  ;;  %v975_v30 = vpop.xlane.xlu0 %974  ;;  %v3484_v11 = vld [vmem:[#allocation4 + $0x78] sm:$0xff] }
 0x28b   :  { %v3467_v3 = vmax.f32 %v3455_v21, %v975_v30  ;;  %3925 = vst [vmem:[#allocation64_spill] sm:$0xff] %v3484_v11  ;;  %v3502_v21 = vld [vmem:[#allocation6 + $0x78] sm:$0xff] }
 0x28c   :  { %3920 = vst [vmem:[#allocation59_spill] sm:$0xff] %v3462_v51  ;;  %1280 = vst.msk [vmem:[#allocation4 + $0x68] sm:$0xff] %vm423_vm0, %v3462_v51  ;;  %1141 = vperm.xlu0 %2219, %v3462_v51   ;;  %1136 = vperm.xlu1 %2218, %v3427_v38  }
 0x28d   :  { %3922 = vst [vmem:[#allocation61_spill] sm:$0xff] %v3467_v3  ;;  %v1326_v60 = vpop.xlane.xlu1 %1325  ;;  %1281 = vst.msk [vmem:[#allocation4 + $0x70] sm:$0xff] %vm423_vm0, %v3467_v3 }
 0x28e   :  { %v3482_v30 = vmax.f32 %v3464_v9, %v1326_v60  ;;  %v1328_v58 = vpop.xlane.xlu0 %1327  ;;  %3928 = vst [vmem:[#allocation67_spill] sm:$0xff] %v3502_v21 }
 0x28f   :  { %v3487_v43 = vmax.f32 %v3475_v61, %v1328_v58 }
 0x290   :  { %3924 = vst [vmem:[#allocation63_spill] sm:$0xff] %v3482_v30  ;;  %1632 = vst.msk [vmem:[#allocation6 + $0x68] sm:$0xff] %vm423_vm0, %v3482_v30  ;;  %1494 = vperm.xlu0 %2219, %v3482_v30   ;;  %1489 = vperm.xlu1 %2218, %v3447_v26  }
 0x291   :  { %3926 = vst [vmem:[#allocation65_spill] sm:$0xff] %v3487_v43  ;;  %v977_v28 = vpop.xlane.xlu1 %976  ;;  %1633 = vst.msk [vmem:[#allocation6 + $0x70] sm:$0xff] %vm423_vm0, %v3487_v43 }
 0x292   :  { %v3500_v58 = vmax.f32 %v3484_v11, %v977_v28 }
 0x294   :  { %3927 = vst [vmem:[#allocation66_spill] sm:$0xff] %v3500_v58  ;;  %1282 = vst.msk [vmem:[#allocation4 + $0x78] sm:$0xff] %vm423_vm0, %v3500_v58  ;;  %1151 = vperm.xlu0 %2219, %v3500_v58   ;;  %1146 = vperm.xlu1 %2218, %v3467_v3  }
 0x295   :  { %v1330_v30 = vpop.xlane.xlu1 %1329 }
 0x296   :  { %v3511_v60 = vmax.f32 %v3502_v21, %v1330_v30 }
 0x298   :  { %3929 = vst [vmem:[#allocation68_spill] sm:$0xff] %v3511_v60  ;;  %1634 = vst.msk [vmem:[#allocation6 + $0x78] sm:$0xff] %vm423_vm0, %v3511_v60  ;;  %1504 = vperm.xlu0 %2219, %v3511_v60   ;;  %1499 = vperm.xlu1 %2218, %v3487_v43  }
 0x2d0   :  { %v1082_v51 = vpop.permute.xlu1 %1081 }
 0x2d1   :  { %v1155_v61 = vsub.f32 %v3029_v59, %v1082_v51 }
 0x2d3   :  { %v1172_v58 = vmul.f32 1.442695, %v1155_v61 }
 0x2d4   :  { %v1435_v11 = vpop.permute.xlu0 %1434 }
 0x2d5   :  { %2284 = vpow2.f32 %v1172_v58  ;;  %v1508_v9 = vsub.f32 %v3035_v4, %v1435_v11  ;;  %v1430_v30 = vpop.permute.xlu1 %1429 }
 0x2d6   :  { %v1507_v3 = vsub.f32 %v3038_v7, %v1430_v30 }
 0x2d7   :  { %v1525_v26 = vmul.f32 1.442695, %v1508_v9 }
 0x2d8   :  { %v1523_v28 = vmul.f32 1.442695, %v1507_v3  ;;  %v1077_v21 = vpop.permute.xlu0 %1076 }
 0x2d9   :  { %2286 = vpow2.f32 %v1525_v26  ;;  %v1154_v38 = vsub.f32 %v3045_v17, %v1077_v21 }
 0x2da   :  { %2288 = vpow2.f32 %v1523_v28 }
 0x2db   :  { %v1170_v60 = vmul.f32 1.442695, %v1154_v38  ;;  %v1092_v43 = vpop.permute.xlu1 %1091 }
 0x2dc   :  { %v1157_v40 = vsub.f32 %v3049_v25, %v1092_v43 }
 0x2dd   :  { %2290 = vpow2.f32 %v1170_v60 }
 0x2de   :  { %v1176_v59 = vmul.f32 1.442695, %v1157_v40 }
 0x2df   :  { %v2285_v61 = vpop.eup %2284  ;;  %v1087_v51 = vpop.permute.xlu1 %1086 }
 0x2e0   :  { %v1445_v58 = vpop.permute.xlu0 %1444  ;;  %2292 = vpow2.f32 %v1176_v59  ;;  %v1156_v11 = vsub.f32 %v3054_v37, %v1087_v51  ;;  %1204 = vadd.xlane.f32.xlu0 %v2285_v61 }
 0x2e1   :  { %v1510_v4 = vsub.f32 %v3057_v2, %v1445_v58 }
 0x2e2   :  { %v1174_v7 = vmul.f32 1.442695, %v1156_v11 }
 0x2e3   :  { %v1529_v9 = vmul.f32 1.442695, %v1510_v4  ;;  %v2287_v26 = vpop.eup %2286  ;;  %v1440_v17 = vpop.permute.xlu1 %1439 }
 0x2e4   :  { %v2289_v3 = vpop.eup %2288  ;;  %2294 = vpow2.f32 %v1174_v7  ;;  %v1509_v38 = vsub.f32 %v3065_v57, %v1440_v17  ;;  %1557 = vadd.xlane.f32.xlu1 %v2287_v26 }
 0x2e5   :  { %2296 = vpow2.f32 %v1529_v9  ;;  %1555 = vadd.xlane.f32.xlu0 %v2289_v3 }
 0x2e6   :  { %v1527_v25 = vmul.f32 1.442695, %v1509_v38 }
 0x2e7   :  { %v2291_v43 = vpop.eup %2290  ;;  %v1102_v40 = vpop.permute.xlu1 %1101 }
 0x2e8   :  { %2298 = vpow2.f32 %v1527_v25  ;;  %v1159_v37 = vsub.f32 %v3073_v14, %v1102_v40  ;;  %1202 = vadd.xlane.f32.xlu1 %v2291_v43 }
 0x2ea   :  { %v2293_v2 = vpop.eup %2292  ;;  %v1180_v21 = vmul.f32 1.442695, %v1159_v37 }
 0x2eb   :  { %v1455_v60 = vpop.permute.xlu0 %1454 }
 0x2ec   :  { %2300 = vpow2.f32 %v1180_v21  ;;  %v1512_v28 = vsub.f32 %v3079_v54, %v1455_v60  ;;  %1208 = vadd.xlane.f32.xlu1 %v2293_v2 }
 0x2ee   :  { %v2295_v30 = vpop.eup %2294  ;;  %v1533_v59 = vmul.f32 1.442695, %v1512_v28 }
 0x2ef   :  { %v2297_v57 = vpop.eup %2296  ;;  %v1450_v61 = vpop.permute.xlu1 %1449  ;;  %1206 = vadd.xlane.f32.xlu0 %v2295_v30 }
 0x2f0   :  { %v1097_v51 = vpop.permute.xlu0 %1096  ;;  %2302 = vpow2.f32 %v1533_v59  ;;  %v1511_v58 = vsub.f32 %v3123_v36, %v1450_v61  ;;  %1561 = vadd.xlane.f32.xlu1 %v2297_v57 }
 0x2f1   :  { %v1158_v11 = vsub.f32 %v3070_v8, %v1097_v51 }
 0x2f2   :  { %v2299_v14 = vpop.eup %2298  ;;  %v1531_v26 = vmul.f32 1.442695, %v1511_v58 }
 0x2f3   :  { %v1178_v4 = vmul.f32 1.442695, %v1158_v11  ;;  %1559 = vadd.xlane.f32.xlu0 %v2299_v14  ;;  %v1107_v7 = vpop.permute.xlu1 %1106 }
 0x2f4   :  { %v1112_v9 = vpop.permute.xlu0 %1111  ;;  %v1160_v54 = vsub.f32 %v3083_v24, %v1107_v7 }
 0x2f5   :  { %v1161_v17 = vsub.f32 %v3126_v56, %v1112_v9  ;;  %2304 = vpow2.f32 %v1178_v4 }
 0x2f6   :  { %v2301_v3 = vpop.eup %2300  ;;  %2306 = vpow2.f32 %v1531_v26  ;;  %v1182_v36 = vmul.f32 1.442695, %v1160_v54 }
 0x2f7   :  { %v1184_v38 = vmul.f32 1.442695, %v1161_v17  ;;  %v1460_v25 = vpop.permute.xlu1 %1459  ;;  %1212 = vadd.xlane.f32.xlu1 %v2301_v3 }
 0x2f8   :  { %v1465_v43 = vpop.permute.xlu0 %1464  ;;  %v1513_v8 = vsub.f32 %v3120_v48, %v1460_v25 }
 0x2f9   :  { %v1514_v40 = vsub.f32 %v3134_v13, %v1465_v43  ;;  %2308 = vpow2.f32 %v1184_v38 }
 0x2fa   :  { %v2303_v37 = vpop.eup %2302  ;;  %2310 = vpow2.f32 %v1182_v36  ;;  %v1535_v56 = vmul.f32 1.442695, %v1513_v8 }
 0x2fb   :  { %v1537_v2 = vmul.f32 1.442695, %v1514_v40  ;;  %v1117_v21 = vpop.permute.xlu1 %1116  ;;  %1565 = vadd.xlane.f32.xlu1 %v2303_v37 }
 0x2fc   :  { %v1122_v24 = vpop.permute.xlu0 %1121  ;;  %v1162_v60 = vsub.f32 %v3131_v42, %v1117_v21 }
 0x2fd   :  { %v1163_v28 = vsub.f32 %v3142_v33, %v1122_v24  ;;  %2312 = vpow2.f32 %v1537_v2 }
 0x2fe   :  { %2314 = vpow2.f32 %v1535_v56  ;;  %v1186_v48 = vmul.f32 1.442695, %v1162_v60 }
 0x2ff   :  { %v1188_v30 = vmul.f32 1.442695, %v1163_v28  ;;  %v2305_v59 = vpop.eup %2304  ;;  %v1470_v57 = vpop.permute.xlu1 %1469 }
 0x300   :  { %v1475_v61 = vpop.permute.xlu0 %1474  ;;  %v1515_v13 = vsub.f32 %v3139_v15, %v1470_v57  ;;  %1210 = vadd.xlane.f32.xlu0 %v2305_v59  ;;  %v2307_v58 = vpop.eup %2306 }
 0x301   :  { %v1516_v51 = vsub.f32 %v3150_v45, %v1475_v61  ;;  %2316 = vpow2.f32 %v1188_v30 }
 0x302   :  { %2318 = vpow2.f32 %v1186_v48  ;;  %v1539_v33 = vmul.f32 1.442695, %v1515_v13 }
 0x303   :  { %v1541_v11 = vmul.f32 1.442695, %v1516_v51  ;;  %v2309_v14 = vpop.eup %2308  ;;  %v1127_v4 = vpop.permute.xlu1 %1126 }
 0x304   :  { %v1132_v42 = vpop.permute.xlu0 %1131  ;;  %v1164_v7 = vsub.f32 %v3147_v47, %v1127_v4  ;;  %1563 = vadd.xlane.f32.xlu0 %v2307_v58  ;;  %1216 = vadd.xlane.f32.xlu1 %v2309_v14  ;;  %v2311_v26 = vpop.eup %2310 }
 0x305   :  { %v1165_v9 = vsub.f32 %v3158_v52, %v1132_v42  ;;  %2320 = vpow2.f32 %v1541_v11 }
 0x306   :  { %2322 = vpow2.f32 %v1539_v33  ;;  %v1190_v3 = vmul.f32 1.442695, %v1164_v7 }
 0x307   :  { %v1192_v15 = vmul.f32 1.442695, %v1165_v9  ;;  %v2313_v54 = vpop.eup %2312  ;;  %v1480_v17 = vpop.permute.xlu1 %1479 }
 0x308   :  { %v1485_v45 = vpop.permute.xlu0 %1484  ;;  %v1517_v38 = vsub.f32 %v3155_v50, %v1480_v17  ;;  %1214 = vadd.xlane.f32.xlu0 %v2311_v26  ;;  %1569 = vadd.xlane.f32.xlu1 %v2313_v54  ;;  %v2315_v47 = vpop.eup %2314 }
 0x309   :  { %v1518_v25 = vsub.f32 %v3166_v55, %v1485_v45  ;;  %2324 = vpow2.f32 %v1192_v15 }
 0x30a   :  { %2326 = vpow2.f32 %v1190_v3  ;;  %v1543_v40 = vmul.f32 1.442695, %v1517_v38  ;;  %v3930_v3 = vsub.f32 %v3199_v34, %v3202_v0  ;;  %v3934_v34 = vsub.f32 %v3234_v62, %v3244_v39 }
 0x30b   :  { %v1545_v43 = vmul.f32 1.442695, %v1518_v25  ;;  %v2317_v36 = vpop.eup %2316  ;;  %v1137_v8 = vpop.permute.xlu1 %1136  ;;  %v3931_v25 = vsub.f32 %v3204_v18, %v3214_v32  ;;  %v3935_v18 = vsub.f32 %v3236_v23, %v3247_v44  ;;  %v3937_v62 = vsub.f32 %v3263_v22, %v3274_v12 }
 0x30c   :  { %v1142_v52 = vpop.permute.xlu0 %1141  ;;  %v1166_v37 = vsub.f32 %v3163_v63, %v1137_v8  ;;  %1567 = vadd.xlane.f32.xlu0 %v2315_v47  ;;  %1220 = vadd.xlane.f32.xlu1 %v2317_v36  ;;  %v2319_v50 = vpop.eup %2318  ;;  %v1012_v38 = vmul.f32 1.442695, %v3930_v3  ;;  %v3933_v8 = vsub.f32 %v3219_v10, %v3232_v5  ;;  %v1016_v0 = vmul.f32 1.442695, %v3934_v34 }
 0x30d   :  { %v1167_v2 = vsub.f32 %v3174_v16, %v1142_v52  ;;  %2328 = vpow2.f32 %v1545_v43  ;;  %v1365_v47 = vmul.f32 1.442695, %v3931_v25  ;;  %v3932_v43 = vsub.f32 %v3211_v1, %v3217_v46  ;;  %v1397_v25 = vld [vmem:[#allocation7 + $0x10] sm:$0xff] }
 0x30e   :  { %2330 = vpow2.f32 %v1543_v40  ;;  %v1194_v60 = vmul.f32 1.442695, %v1166_v37  ;;  %v1010_v52 = vmul.f32 1.442695, %v3933_v8  ;;  %v1043_v37 = vld [vmem:[#allocation5 + $0x8] sm:$0xff]  ;;  %v3936_v1 = vsub.f32 %v3249_v53, %v3261_v29  ;;  %v1042_v29 = vld [vmem:[#allocation5] sm:$0xff] }
 0x30f   :  { %v1196_v21 = vmul.f32 1.442695, %v1167_v2  ;;  %v2321_v24 = vpop.eup %2320  ;;  %v1490_v56 = vpop.permute.xlu1 %1489  ;;  %v1363_v36 = vmul.f32 1.442695, %v3932_v43  ;;  %v1014_v32 = vmul.f32 1.442695, %v3935_v18 }
 0x310   :  { %v1495_v55 = vpop.permute.xlu0 %1494  ;;  %v1519_v28 = vsub.f32 %v3171_v6, %v1490_v56  ;;  %1218 = vadd.xlane.f32.xlu0 %v2319_v50  ;;  %1573 = vadd.xlane.f32.xlu1 %v2321_v24  ;;  %v2323_v63 = vpop.eup %2322  ;;  %v1369_v46 = vmul.f32 1.442695, %v3936_v1  ;;  %v1396_v50 = vld [vmem:[#allocation7 + $0x8] sm:$0xff]  ;;  %v1367_v39 = vmul.f32 1.442695, %v3937_v62  ;;  %v1395_v56 = vld [vmem:[#allocation7] sm:$0xff] }
 0x311   :  { %v1520_v30 = vsub.f32 %v3188_v31, %v1495_v55  ;;  %2332 = vpow2.f32 %v1196_v21  ;;  %v3949_v43 = vld [vmem:[#allocation31_spill] sm:$0xff]  ;;  %v3954_v1 = vld [vmem:[#allocation32_spill] sm:$0xff] }
 0x312   :  { %2334 = vpow2.f32 %v1194_v60  ;;  %v1547_v48 = vmul.f32 1.442695, %v1519_v28  ;;  %v3938_v60 = vsub.f32 %v3276_v20, %v3291_v35 }
 0x313   :  { %v1549_v59 = vmul.f32 1.442695, %v1520_v30  ;;  %v2325_v57 = vpop.eup %2324  ;;  %v1147_v61 = vpop.permute.xlu1 %1146 }
 0x314   :  { %v1152_v16 = vpop.permute.xlu0 %1151  ;;  %v1168_v13 = vsub.f32 %v3182_v41, %v1147_v61  ;;  %1571 = vadd.xlane.f32.xlu0 %v2323_v63  ;;  %1224 = vadd.xlane.f32.xlu1 %v2325_v57  ;;  %v2327_v6 = vpop.eup %2326  ;;  %v1020_v28 = vmul.f32 1.442695, %v3938_v60  ;;  %v1045_v61 = vld [vmem:[#allocation5 + $0x18] sm:$0xff]  ;;  %v3961_v60 = vld [vmem:[#allocation39_spill] sm:$0xff] }
 0x315   :  { %v1169_v51 = vsub.f32 %v3179_v19, %v1152_v16  ;;  %2336 = vpow2.f32 %v1549_v59  ;;  %v3939_v16 = vld [vmem:[#allocation25_spill] sm:$0xff] }
 0x316   :  { %2338 = vpow2.f32 %v1547_v48  ;;  %v1198_v4 = vmul.f32 1.442695, %v1168_v13  ;;  %v3940_v48 = vld [vmem:[#allocation27_spill] sm:$0xff] }
 0x317   :  { %v1200_v58 = vmul.f32 1.442695, %v1169_v51  ;;  %v2329_v11 = vpop.eup %2328  ;;  %v1500_v14 = vpop.permute.xlu1 %1499  ;;  %v3941_v13 = vsub.f32 %v3939_v16, %v3940_v48  ;;  %v1400_v48 = vld [vmem:[#allocation7 + $0x28] sm:$0xff] }
 0x318   :  { %v1505_v31 = vpop.permute.xlu0 %1504  ;;  %1222 = vadd.xlane.f32.xlu0 %v2327_v6  ;;  %1577 = vadd.xlane.f32.xlu1 %v2329_v11  ;;  %v1521_v33 = vsub.f32 %v3192_v49, %v1500_v14  ;;  %v2331_v41 = vpop.eup %2330  ;;  %v1044_v11 = vld [vmem:[#allocation5 + $0x10] sm:$0xff] }
 0x319   :  { %v1522_v42 = vsub.f32 %v3185_v27, %v1505_v31  ;;  %2340 = vpow2.f32 %v1200_v58  ;;  %v1373_v51 = vmul.f32 1.442695, %v3941_v13  ;;  %v3964_v13 = vld [vmem:[#allocation38_spill] sm:$0xff] }
 0x31a   :  { %2342 = vpow2.f32 %v1198_v4  ;;  %v1551_v19 = vmul.f32 1.442695, %v1521_v33  ;;  %v1398_v4 = vld [vmem:[#allocation7 + $0x18] sm:$0xff]  ;;  %v3943_v33 = vld [vmem:[#allocation24_spill] sm:$0xff] }
 0x31b   :  { %v1553_v7 = vmul.f32 1.442695, %v1522_v42  ;;  %v2333_v9 = vpop.eup %2332  ;;  %v3942_v42 = vld [vmem:[#allocation23_spill] sm:$0xff] }
 0x31c   :  { %1575 = vadd.xlane.f32.xlu0 %v2331_v41  ;;  %1228 = vadd.xlane.f32.xlu1 %v2333_v9  ;;  %v2335_v26 = vpop.eup %2334  ;;  %v3944_v41 = vsub.f32 %v3942_v42, %v3943_v33 }
 0x31d   :  { %2344 = vpow2.f32 %v1553_v7 }
 0x31e   :  { %2346 = vpow2.f32 %v1551_v19  ;;  %v1018_v7 = vmul.f32 1.442695, %v3944_v41  ;;  %v3945_v19 = vld [vmem:[#allocation26_spill] sm:$0xff] }
 0x31f   :  { %v2337_v15 = vpop.eup %2336  ;;  %2348 = vpow2.f32 %v1012_v38 }
 0x320   :  { %1226 = vadd.xlane.f32.xlu0 %v2335_v26  ;;  %1581 = vadd.xlane.f32.xlu1 %v2337_v15  ;;  %v2339_v54 = vpop.eup %2338  ;;  %2350 = vpow2.f32 %v1365_v47  ;;  %v3946_v26 = vld [vmem:[#allocation29_spill] sm:$0xff]  ;;  %v3948_v47 = vld [vmem:[#allocation28_spill] sm:$0xff] }
 0x321   :  { %2352 = vpow2.f32 %v1363_v36  ;;  %v3947_v15 = vsub.f32 %v3945_v19, %v3946_v26  ;;  %v3950_v36 = vsub.f32 %v3948_v47, %v3949_v43  ;;  %v1718_v43 = vld [vmem:[#allocation6] sm:$0xff] }
 0x322   :  { %2354 = vpow2.f32 %v1010_v52 }
 0x323   :  { %v2341_v17 = vpop.eup %2340  ;;  %2356 = vpow2.f32 %v1016_v0  ;;  %v1371_v8 = vmul.f32 1.442695, %v3950_v36  ;;  %v3951_v0 = vld [vmem:[#allocation30_spill] sm:$0xff]  ;;  %v3973_v36 = vld [vmem:[#allocation44_spill] sm:$0xff] }
 0x324   :  { %1579 = vadd.xlane.f32.xlu0 %v2339_v54  ;;  %1232 = vadd.xlane.f32.xlu1 %v2341_v17  ;;  %v2343_v27 = vpop.eup %2342  ;;  %2358 = vpow2.f32 %v1014_v32  ;;  %v1022_v54 = vmul.f32 1.442695, %v3947_v15 }
 0x325   :  { %2360 = vpow2.f32 %v1369_v46  ;;  %v3955_v46 = vld [vmem:[#allocation35_spill] sm:$0xff] }
 0x326   :  { %2362 = vpow2.f32 %v1367_v39  ;;  %v1047_v39 = vld [vmem:[#allocation5 + $0x28] sm:$0xff] }
 0x327   :  { %v2345_v45 = vpop.eup %2344  ;;  %2364 = vpow2.f32 %v1020_v28 }
 0x328   :  { %1230 = vadd.xlane.f32.xlu0 %v2343_v27  ;;  %1585 = vadd.xlane.f32.xlu1 %v2345_v45  ;;  %v2347_v49 = vpop.eup %2346 }
 0x329   :  { %v2349_v40 = vpop.eup %2348 }
 0x32a   :  { %v1059_v2 = vmul.f32 %v2349_v40, %v1043_v37  ;;  %v2351_v10 = vpop.eup %2350  ;;  %v3952_v40 = vld [vmem:[#allocation33_spill] sm:$0xff] }
 0x32b   :  { %v2353_v21 = vpop.eup %2352  ;;  %v1412_v23 = vmul.f32 %v2351_v10, %v1396_v50  ;;  %v3953_v37 = vsub.f32 %v3951_v0, %v3952_v40 }
 0x32c   :  { %1583 = vadd.xlane.f32.xlu0 %v2347_v49  ;;  %v2355_v44 = vpop.eup %2354  ;;  %v1411_v53 = vmul.f32 %v2353_v21, %v1395_v56  ;;  %v3958_v56 = vld [vmem:[#allocation37_spill] sm:$0xff] }
 0x32d   :  { %v1058_v22 = vmul.f32 %v2355_v44, %v1042_v29  ;;  %v2357_v12 = vpop.eup %2356  ;;  %v1375_v18 = vmul.f32 1.442695, %v3953_v37  ;;  %v3960_v29 = vld [vmem:[#allocation36_spill] sm:$0xff]  ;;  %v1046_v37 = vld [vmem:[#allocation5 + $0x20] sm:$0xff] }
 0x32e   :  { %v2359_v20 = vpop.eup %2358  ;;  %v1061_v35 = vmul.f32 %v2357_v12, %v1045_v61  ;;  %v3962_v28 = vsub.f32 %v3960_v29, %v3961_v60  ;;  %v3980_v29 = vld [vmem:[#allocation51_spill] sm:$0xff] }
 0x32f   :  { %v2361_v14 = vpop.eup %2360  ;;  %v1060_v27 = vmul.f32 %v2359_v20, %v1044_v11  ;;  %v1639_v11 = vld [vmem:[#allocation4 + $0x8] sm:$0xff] }
 0x330   :  { %v2363_v45 = vpop.eup %2362  ;;  %v1414_v38 = vmul.f32 %v2361_v14, %v1398_v4  ;;  %v3967_v14 = vld [vmem:[#allocation40_spill] sm:$0xff] }
 0x331   :  { %v1413_v50 = vmul.f32 %v2363_v45, %v1397_v25  ;;  %v2365_v21 = vpop.eup %2364 }
 0x36d   :  { %v1205_v5 = vpop.xlane.xlu0 %1204 }
 0x36e   :  { %v1235_v24 = vadd.f32 %v1205_v5, %v1059_v2  ;;  %v3956_v2 = vsub.f32 %v3954_v1, %v3955_v46  ;;  %v1831_v1 = vld [vmem:[#allocation9 + $0x8] sm:$0xff]  ;;  %v3976_v46 = vld [vmem:[#allocation46_spill] sm:$0xff] }
 0x370   :  { %1252 = vst.msk [vmem:[#allocation5 + $0x8] sm:$0xff] %vm423_vm0, %v1235_v24  ;;  %v1024_v10 = vmul.f32 1.442695, %v3956_v2  ;;  %v3957_v24 = vld [vmem:[#allocation34_spill] sm:$0xff]  ;;  %v3977_v2 = vld [vmem:[#allocation49_spill] sm:$0xff] }
 0x371   :  { %v1558_v55 = vpop.xlane.xlu1 %1557 }
 0x372   :  { %v1588_v30 = vadd.f32 %v1558_v55, %v1412_v23  ;;  %v1556_v63 = vpop.xlane.xlu0 %1555  ;;  %v3959_v23 = vsub.f32 %v3957_v24, %v3958_v56 }
 0x373   :  { %v1587_v59 = vadd.f32 %v1556_v63, %v1411_v53 }
 0x374   :  { %1604 = vst.msk [vmem:[#allocation7 + $0x8] sm:$0xff] %vm423_vm0, %v1588_v30  ;;  %v1026_v44 = vmul.f32 1.442695, %v3959_v23  ;;  %v1377_v30 = vmul.f32 1.442695, %v3962_v28  ;;  %v1399_v23 = vld [vmem:[#allocation7 + $0x20] sm:$0xff] }
 0x375   :  { %1603 = vst.msk [vmem:[#allocation7] sm:$0xff] %vm423_vm0, %v1587_v59  ;;  %v1203_v57 = vpop.xlane.xlu1 %1202 }
 0x376   :  { %v1234_v6 = vadd.f32 %v1203_v57, %v1058_v22  ;;  %v1063_v22 = vmul.f32 %v2365_v21, %v1047_v39  ;;  %v3963_v57 = vlaneseq }
 0x377   :  { %v1655_v58 = vld [vmem:[#allocation5 + $0x8] sm:$0xff] }
 0x378   :  { %2366 = vlog2.f32 %v1655_v58  ;;  %1251 = vst.msk [vmem:[#allocation5] sm:$0xff] %vm423_vm0, %v1234_v6  ;;  %v3611_v61 = vshrl.u32 %v3963_v57, 7  ;;  %v3984_v57 = vld [vmem:[#allocation53_spill] sm:$0xff] }
 0x379   :  { %v1209_v31 = vpop.xlane.xlu1 %1208  ;;  %2368 = vpow2.f32 %v1373_v51  ;;  %v3965_v51 = vld [vmem:[#allocation41_spill] sm:$0xff] }
 0x37a   :  { %v1237_v9 = vadd.f32 %v1209_v31, %v1061_v35  ;;  %v3966_v6 = vsub.f32 %v3964_v13, %v3965_v51  ;;  %v3968_v31 = vld [vmem:[#allocation43_spill] sm:$0xff] }
 0x37b   :  { %v1735_v17 = vld [vmem:[#allocation7 + $0x8] sm:$0xff]  ;;  %v3969_v4 = vsub.f32 %v3967_v14, %v3968_v31 }
 0x37c   :  { %2370 = vlog2.f32 %v1735_v17  ;;  %v1734_v49 = vld [vmem:[#allocation7] sm:$0xff]  ;;  %1254 = vst.msk [vmem:[#allocation5 + $0x18] sm:$0xff] %vm423_vm0, %v1237_v9  ;;  %v1207_v3 = vpop.xlane.xlu0 %1206  ;;  %v1379_v58 = vmul.f32 1.442695, %v3966_v6 }
 0x37d   :  { %2372 = vlog2.f32 %v1734_v49  ;;  %v1236_v52 = vadd.f32 %v1207_v3, %v1060_v27  ;;  %v1562_v34 = vpop.xlane.xlu1 %1561  ;;  %v1028_v42 = vmul.f32 1.442695, %v3969_v4  ;;  %v3970_v17 = vld [vmem:[#allocation42_spill] sm:$0xff]  ;;  %v3971_v27 = vld [vmem:[#allocation45_spill] sm:$0xff]  ;;  %v1880_v3 = vadd.s32 8, %v3611_v61 }
 0x37e   :  { %2374 = vpow2.f32 %v1018_v7  ;;  %v1590_v32 = vadd.f32 %v1562_v34, %v1414_v38  ;;  %v3972_v45 = vsub.f32 %v3970_v17, %v3971_v27 }
 0x37f   :  { %2376 = vpow2.f32 %v1022_v54  ;;  %v1654_v5 = vld [vmem:[#allocation5] sm:$0xff]  ;;  %1253 = vst.msk [vmem:[#allocation5 + $0x10] sm:$0xff] %vm423_vm0, %v1236_v52  ;;  %v1719_v54 = vld [vmem:[#allocation6 + $0x8] sm:$0xff] }
 0x380   :  { %2378 = vlog2.f32 %v1654_v5  ;;  %1606 = vst.msk [vmem:[#allocation7 + $0x18] sm:$0xff] %vm423_vm0, %v1590_v32  ;;  %v1560_v62 = vpop.xlane.xlu0 %1559  ;;  %v1030_v49 = vmul.f32 1.442695, %v3972_v45  ;;  %v1799_v32 = vld [vmem:[#allocation8 + $0x8] sm:$0xff] }
 0x381   :  { %2380 = vpow2.f32 %v1371_v8  ;;  %v1589_v55 = vadd.f32 %v1560_v62, %v1413_v50  ;;  %v3974_v8 = vld [vmem:[#allocation47_spill] sm:$0xff] }
 0x382   :  { %v2367_v53 = vpop.eup %2366  ;;  %2382 = vpow2.f32 %v1375_v18  ;;  %v3975_v52 = vsub.f32 %v3973_v36, %v3974_v8 }
 0x383   :  { %2384 = vpow2.f32 %v1024_v10  ;;  %v1673_v63 = vmul.f32 0.6931472, %v2367_v53  ;;  %v1657_v59 = vld [vmem:[#allocation5 + $0x18] sm:$0xff]  ;;  %1605 = vst.msk [vmem:[#allocation7 + $0x10] sm:$0xff] %vm423_vm0, %v1589_v55  ;;  %v2369_v12 = vpop.eup %2368  ;;  %v3978_v10 = vsub.f32 %v3976_v46, %v3977_v2  ;;  %v1638_v55 = vld [vmem:[#allocation4] sm:$0xff]  ;;  %v3979_v53 = vld [vmem:[#allocation48_spill] sm:$0xff] }
 0x384   :  { %2386 = vlog2.f32 %v1657_v59  ;;  %v1213_v16 = vpop.xlane.xlu1 %1212  ;;  %v1416_v26 = vmul.f32 %v2369_v12, %v1400_v48  ;;  %v1381_v34 = vmul.f32 1.442695, %v3975_v52  ;;  %v3981_v60 = vsub.f32 %v3979_v53, %v3980_v29  ;;  %v3983_v12 = vld [vmem:[#allocation50_spill] sm:$0xff]  ;;  %v1402_v52 = vld [vmem:[#allocation7 + $0x38] sm:$0xff] }
 0x385   :  { %2388 = vpow2.f32 %v1026_v44  ;;  %v1239_v20 = vadd.f32 %v1213_v16, %v1063_v22  ;;  %v1703_v7 = vadd.f32 %v1673_v63, %v1639_v11  ;;  %v1383_v5 = vmul.f32 1.442695, %v3978_v10  ;;  %v1830_v22 = vld [vmem:[#allocation9] sm:$0xff] }
 0x386   :  { %v2371_v35 = vpop.eup %2370  ;;  %2390 = vpow2.f32 %v1377_v30  ;;  %v1656_v33 = vld [vmem:[#allocation5 + $0x10] sm:$0xff]  ;;  %v1032_v28 = vmul.f32 1.442695, %v3981_v60  ;;  %v3982_v30 = vld [vmem:[#allocation22_spill] sm:$0xff]  ;;  %v3985_v16 = vsub.f32 %v3983_v12, %v3984_v57 }
 0x387   :  { %v2373_v41 = vpop.eup %2372  ;;  %v1753_v9 = vmul.f32 0.6931472, %v2371_v35  ;;  %2392 = vlog2.f32 %v1656_v33  ;;  %v1737_v19 = vld [vmem:[#allocation7 + $0x18] sm:$0xff]  ;;  %1256 = vst.msk [vmem:[#allocation5 + $0x28] sm:$0xff] %vm423_vm0, %v1239_v20  ;;  %v1815_v39 = vsub.f32 %v1703_v7, %v1799_v32  ;;  %vm1914_vm2 = vcmp.lt.s32.totalorder %v1880_v3, %v3982_v30  ;;  %v1798_v35 = vld [vmem:[#allocation8] sm:$0xff]  ;;  %v3993_v32 = vld [vmem:[#allocation59_spill] sm:$0xff] }
 0x388   :  { %v2375_v15 = vpop.eup %2374  ;;  %v1751_v38 = vmul.f32 0.6931472, %v2373_v41  ;;  %2394 = vlog2.f32 %v1737_v19  ;;  %v1566_v25 = vpop.xlane.xlu1 %1565  ;;  %v1034_v48 = vmul.f32 1.442695, %v3985_v16  ;;  %vm1913_vm3 = vcmp.lt.s32.totalorder %v3611_v61, %v3982_v30  ;;  %v3990_v3 = vld [vmem:[#allocation57_spill] sm:$0xff] }
 0x389   :  { %v2377_v47 = vpop.eup %2376  ;;  %2396 = vpow2.f32 %v1379_v58  ;;  %v1783_v0 = vadd.f32 %v1753_v9, %v1719_v54  ;;  %v1592_v40 = vadd.f32 %v1566_v25, %v1416_v26  ;;  %v1062_v63 = vmul.f32 %v2375_v15, %v1046_v37  ;;  %v1049_v58 = vld [vmem:[#allocation5 + $0x38] sm:$0xff]  ;;  %v3986_v26 = vld [vmem:[#allocation52_spill] sm:$0xff]  ;;  %v3987_v15 = vld [vmem:[#allocation55_spill] sm:$0xff] }
 0x38a   :  { %v2379_v18 = vpop.eup %2378  ;;  %2398 = vpow2.f32 %v1028_v42  ;;  %v1782_v50 = vadd.f32 %v1751_v38, %v1718_v43  ;;  %v1736_v21 = vld [vmem:[#allocation7 + $0x10] sm:$0xff]  ;;  %v3988_v54 = vsub.f32 %v3986_v26, %v3987_v15  ;;  %v1641_v37 = vld [vmem:[#allocation4 + $0x18] sm:$0xff] }
 0x38b   :  { %v2381_v62 = vpop.eup %2380  ;;  %v1847_v24 = vsub.f32 %v1783_v0, %v1831_v1  ;;  %v1671_v56 = vmul.f32 0.6931472, %v2379_v18  ;;  %2400 = vlog2.f32 %v1736_v21  ;;  %1608 = vst.msk [vmem:[#allocation7 + $0x28] sm:$0xff] %vm423_vm0, %v1592_v40  ;;  %v1048_v42 = vld [vmem:[#allocation5 + $0x30] sm:$0xff] }
 0x38c   :  { %v3631_v44 = vpop.eup %2382  ;;  %2402 = vpow2.f32 %v1030_v49  ;;  %v1846_v11 = vsub.f32 %v1782_v50, %v1830_v22  ;;  %v1415_v4 = vmul.f32 %v2381_v62, %v1399_v23  ;;  %v1385_v17 = vmul.f32 1.442695, %v3988_v54  ;;  %v3989_v49 = vld [vmem:[#allocation54_spill] sm:$0xff]  ;;  %v1401_v0 = vld [vmem:[#allocation7 + $0x30] sm:$0xff]  ;;  %v1721_v23 = vld [vmem:[#allocation6 + $0x18] sm:$0xff] }
 0x38d   :  { %v2385_v59 = vpop.eup %2384  ;;  %2404 = vpow2.f32 %v1381_v34  ;;  %v1863_v13 = vadd.f32 %v1847_v24, %v1815_v39  ;;  %v1702_v51 = vadd.f32 %v1671_v56, %v1638_v55  ;;  %v1211_v6 = vpop.xlane.xlu0 %1210  ;;  %v3991_v38 = vsub.f32 %v3989_v49, %v3990_v3  ;;  %v3992_v18 = vld [vmem:[#allocation56_spill] sm:$0xff] }
 0x38e   :  { %v2387_v20 = vpop.eup %2386  ;;  %2406 = vpow2.f32 %v1383_v5  ;;  %v1659_v14 = vld [vmem:[#allocation5 + $0x28] sm:$0xff]  ;;  %v1238_v31 = vadd.f32 %v1211_v6, %v1062_v63  ;;  %v1065_v27 = vmul.f32 %v2385_v59, %v1049_v58  ;;  %v1064_v34 = vmul.f32 %v2377_v47, %v1048_v42  ;;  %v1640_v56 = vld [vmem:[#allocation4 + $0x10] sm:$0xff]  ;;  %v3996_v63 = vld [vmem:[#allocation61_spill] sm:$0xff] }
 0x38f   :  { %v3640_v33 = vpop.eup %2388  ;;  %v1930_v41 = vsel %vm1914_vm2, %v1863_v13, 0.0  ;;  %v1814_v7 = vsub.f32 %v1702_v51, %v1798_v35  ;;  %v1677_v9 = vmul.f32 0.6931472, %v2387_v20  ;;  %2408 = vlog2.f32 %v1659_v14  ;;  %v1051_v13 = vld [vmem:[#allocation5 + $0x48] sm:$0xff]  ;;  %v1801_v6 = vld [vmem:[#allocation8 + $0x18] sm:$0xff]  ;;  %v1720_v14 = vld [vmem:[#allocation6 + $0x10] sm:$0xff] }
 0x390   :  { %v2391_v19 = vpop.eup %2390  ;;  %2410 = vpow2.f32 %v1032_v28  ;;  %1946 = vst.msk [vmem:[%s3833_s6 + $0x8] sm:$0xff] %vm423_vm0, %v1930_v41  ;;  %1255 = vst.msk [vmem:[#allocation5 + $0x20] sm:$0xff] %vm423_vm0, %v1238_v31  ;;  %v1387_v25 = vmul.f32 1.442695, %v3991_v38  ;;  %v3994_v1 = vsub.f32 %v3992_v18, %v3993_v32  ;;  %v1882_v55 = vadd.s32 24, %v3611_v61  ;;  %v3995_v28 = vld [vmem:[#allocation58_spill] sm:$0xff] }
 0x391   :  { %v2393_v45 = vpop.eup %2392  ;;  %2412 = vpow2.f32 %v1034_v48  ;;  %v1862_v43 = vadd.f32 %v1846_v11, %v1814_v7  ;;  %v1217_v36 = vpop.xlane.xlu1 %1216  ;;  %v1705_v39 = vadd.f32 %v1677_v9, %v1641_v37  ;;  %v1418_v53 = vmul.f32 %v2391_v19, %v1402_v52  ;;  %v1833_v58 = vld [vmem:[#allocation9 + $0x18] sm:$0xff]  ;;  %v3998_v31 = vld [vmem:[#allocation60_spill] sm:$0xff]  ;;  %v1050_v37 = vld [vmem:[#allocation5 + $0x40] sm:$0xff] }
 0x392   :  { %v1564_v8 = vpop.xlane.xlu0 %1563  ;;  %v2395_v40 = vpop.eup %2394  ;;  %v1036_v46 = vmul.f32 1.442695, %v3994_v1  ;;  %v1675_v2 = vmul.f32 0.6931472, %v2393_v45  ;;  %v1739_v10 = vld [vmem:[#allocation7 + $0x28] sm:$0xff]  ;;  %v1241_v5 = vadd.f32 %v1217_v36, %v1065_v27  ;;  %v1417_v29 = vmul.f32 %v3631_v44, %v1401_v0  ;;  %v1800_v54 = vld [vmem:[#allocation8 + $0x10] sm:$0xff] }
 0x393   :  { %v1591_v50 = vadd.f32 %v1564_v8, %v1415_v4  ;;  %v3660_v21 = vpop.eup %2396  ;;  %v1929_v62 = vsel %vm1913_vm3, %v1862_v43, 0.0  ;;  %v1757_v24 = vmul.f32 0.6931472, %v2395_v40  ;;  %2414 = vlog2.f32 %v1739_v10  ;;  %v3999_v4 = vld [vmem:[#allocation63_spill] sm:$0xff]  ;;  %v1832_v49 = vld [vmem:[#allocation9 + $0x10] sm:$0xff]  ;;  %v4002_v1 = vld [vmem:[#allocation66_spill] sm:$0xff] }
 0x394   :  { %v2399_v47 = vpop.eup %2398  ;;  %2416 = vpow2.f32 %v1385_v17  ;;  %1945 = vst.msk [vmem:[%s3833_s6] sm:$0xff] %vm423_vm0, %v1929_v62  ;;  %1258 = vst.msk [vmem:[#allocation5 + $0x38] sm:$0xff] %vm423_vm0, %v1241_v5  ;;  %v3997_v59 = vsub.f32 %v3995_v28, %v3996_v63  ;;  %v1704_v12 = vadd.f32 %v1675_v2, %v1640_v56  ;;  %v4000_v42 = vsub.f32 %v3998_v31, %v3999_v4  ;;  %v1404_v36 = vld [vmem:[#allocation7 + $0x48] sm:$0xff]  ;;  %v4001_v32 = vld [vmem:[#allocation64_spill] sm:$0xff] }
 0x395   :  { %1607 = vst.msk [vmem:[#allocation7 + $0x20] sm:$0xff] %vm423_vm0, %v1591_v50  ;;  %v2401_v60 = vpop.eup %2400  ;;  %2418 = vpow2.f32 %v1387_v25  ;;  %v1785_v57 = vadd.f32 %v1757_v24, %v1721_v23  ;;  %v1570_v16 = vpop.xlane.xlu1 %1569  ;;  %v1817_v7 = vsub.f32 %v1705_v39, %v1801_v6  ;;  %v1881_v19 = vadd.s32 16, %v3611_v61  ;;  %v1052_v4 = vld [vmem:[#allocation5 + $0x50] sm:$0xff] }
 0x396   :  { %v1038_v22 = vmul.f32 1.442695, %v3997_v59  ;;  %v1215_v48 = vpop.xlane.xlu0 %1214  ;;  %v3676_v51 = vpop.eup %2402  ;;  %2420 = vpow2.f32 %v1036_v46  ;;  %v1755_v20 = vmul.f32 0.6931472, %v2401_v60  ;;  %v1594_v35 = vadd.f32 %v1570_v16, %v1418_v53  ;;  %v1053_v53 = vld [vmem:[#allocation5 + $0x58] sm:$0xff]  ;;  %v4004_v16 = vld [vmem:[#allocation67_spill] sm:$0xff] }
 0x397   :  { %v1240_v11 = vadd.f32 %v1215_v48, %v1064_v34  ;;  %v2405_v44 = vpop.eup %2404  ;;  %v1389_v41 = vmul.f32 1.442695, %v4000_v42  ;;  %v1849_v9 = vsub.f32 %v1785_v57, %v1833_v58  ;;  %v1658_v26 = vld [vmem:[#allocation5 + $0x20] sm:$0xff]  ;;  %vm1916_vm4 = vcmp.lt.s32.totalorder %v1882_v55, %v3982_v30  ;;  %v1723_v57 = vld [vmem:[#allocation6 + $0x28] sm:$0xff]  ;;  %v4005_v48 = vld [vmem:[#allocation68_spill] sm:$0xff] }
 0x398   :  { %v3682_v15 = vpop.eup %2406  ;;  %v1784_v17 = vadd.f32 %v1755_v20, %v1720_v14  ;;  %2422 = vlog2.f32 %v1658_v26  ;;  %1610 = vst.msk [vmem:[#allocation7 + $0x38] sm:$0xff] %vm423_vm0, %v1594_v35  ;;  %v1067_v27 = vmul.f32 %v2399_v47, %v1051_v13  ;;  %v1816_v3 = vsub.f32 %v1704_v12, %v1800_v54  ;;  %v1643_v47 = vld [vmem:[#allocation4 + $0x28] sm:$0xff] }
 0x399   :  { %1257 = vst.msk [vmem:[#allocation5 + $0x30] sm:$0xff] %vm423_vm0, %v1240_v11  ;;  %v2409_v45 = vpop.eup %2408  ;;  %2424 = vpow2.f32 %v1038_v22  ;;  %v1865_v38 = vadd.f32 %v1849_v9, %v1817_v7  ;;  %v1221_v25 = vpop.xlane.xlu1 %1220  ;;  %v4003_v46 = vsub.f32 %v4001_v32, %v4002_v1  ;;  %vm1915_vm5 = vcmp.lt.s32.totalorder %v1881_v19, %v3982_v30  ;;  %v1803_v42 = vld [vmem:[#allocation8 + $0x28] sm:$0xff]  ;;  %v1406_v19 = vld [vmem:[#allocation7 + $0x58] sm:$0xff] }
 0x39a   :  { %v1568_v43 = vpop.xlane.xlu0 %1567  ;;  %v2411_v8 = vpop.eup %2410  ;;  %v1848_v52 = vsub.f32 %v1784_v17, %v1832_v49  ;;  %v1681_v34 = vmul.f32 0.6931472, %v2409_v45  ;;  %v1243_v0 = vadd.f32 %v1221_v25, %v1067_v27  ;;  %2426 = vpow2.f32 %v1389_v41  ;;  %v1835_v41 = vld [vmem:[#allocation9 + $0x28] sm:$0xff] }
 0x39b   :  { %v1593_v40 = vadd.f32 %v1568_v43, %v1417_v29  ;;  %v3687_v18 = vpop.eup %2412  ;;  %v1040_v2 = vmul.f32 1.442695, %v4003_v46  ;;  %v1932_v10 = vsel %vm1916_vm4, %v1865_v38, 0.0  ;;  %v1661_v5 = vld [vmem:[#allocation5 + $0x38] sm:$0xff]  ;;  %v1420_v39 = vmul.f32 %v2405_v44, %v1404_v36  ;;  %v1403_v29 = vld [vmem:[#allocation7 + $0x40] sm:$0xff]  ;;  %v1055_v46 = vld [vmem:[#allocation5 + $0x68] sm:$0xff] }
 0x39c   :  { %v1738_v50 = vld [vmem:[#allocation7 + $0x20] sm:$0xff]  ;;  %1948 = vst.msk [vmem:[%s3833_s6 + $0x18] sm:$0xff] %vm423_vm0, %v1932_v10  ;;  %v1864_v62 = vadd.f32 %v1848_v52, %v1816_v3  ;;  %2428 = vlog2.f32 %v1661_v5  ;;  %1260 = vst.msk [vmem:[#allocation5 + $0x48] sm:$0xff] %vm423_vm0, %v1243_v0  ;;  %v1066_v23 = vmul.f32 %v3640_v33, %v1050_v37  ;;  %v1707_v63 = vadd.f32 %v1681_v34, %v1643_v47  ;;  %v4008_v38 = vld [vmem:[#allocation65_spill] sm:$0xff] }
 0x39d   :  { %1609 = vst.msk [vmem:[#allocation7 + $0x30] sm:$0xff] %vm423_vm0, %v1593_v40  ;;  %v2415_v24 = vpop.eup %2414  ;;  %2430 = vlog2.f32 %v1738_v50  ;;  %v1574_v56 = vpop.xlane.xlu1 %1573  ;;  %v4006_v13 = vsub.f32 %v4004_v16, %v4005_v48  ;;  %v1884_v33 = vadd.s32 40, %v3611_v61  ;;  %v1069_v14 = vmul.f32 %v2411_v8, %v1053_v53  ;;  %v4007_v3 = vld [vmem:[#allocation62_spill] sm:$0xff]  ;;  %v1405_v40 = vld [vmem:[#allocation7 + $0x50] sm:$0xff] }
 0x39e   :  { %v1219_v55 = vpop.xlane.xlu0 %1218  ;;  %v2417_v60 = vpop.eup %2416  ;;  %v1931_v28 = vsel %vm1915_vm5, %v1864_v62, 0.0  ;;  %v1761_v59 = vmul.f32 0.6931472, %v2415_v24  ;;  %v1596_v22 = vadd.f32 %v1574_v56, %v1420_v39  ;;  %2432 = vpow2.f32 %v1040_v2  ;;  %v1642_v62 = vld [vmem:[#allocation4 + $0x20] sm:$0xff] }
 0x39f   :  { %v3704_v12 = vpop.eup %2418  ;;  %v1393_v6 = vmul.f32 1.442695, %v4006_v13  ;;  %1947 = vst.msk [vmem:[%s3833_s6 + $0x10] sm:$0xff] %vm423_vm0, %v1931_v28  ;;  %v1741_v58 = vld [vmem:[#allocation7 + $0x38] sm:$0xff]  ;;  %v1242_v35 = vadd.f32 %v1219_v55, %v1066_v23  ;;  %v1419_v31 = vmul.f32 %v3660_v21, %v1403_v29  ;;  %v1819_v54 = vsub.f32 %v1707_v63, %v1803_v42  ;;  %v1054_v56 = vld [vmem:[#allocation5 + $0x60] sm:$0xff] }
 0x3a0   :  { %v1660_v20 = vld [vmem:[#allocation5 + $0x30] sm:$0xff]  ;;  %v2421_v11 = vpop.eup %2420  ;;  %v1787_v44 = vadd.f32 %v1761_v59, %v1723_v57  ;;  %2434 = vlog2.f32 %v1741_v58  ;;  %1612 = vst.msk [vmem:[#allocation7 + $0x48] sm:$0xff] %vm423_vm0, %v1596_v22  ;;  %v4009_v21 = vsub.f32 %v4007_v3, %v4008_v38  ;;  %vm1918_vm6 = vcmp.lt.s32.totalorder %v1884_v33, %v3982_v30  ;;  %v1802_v63 = vld [vmem:[#allocation8 + $0x20] sm:$0xff]  ;;  %v1645_v13 = vld [vmem:[#allocation4 + $0x38] sm:$0xff] }
 0x3a1   :  { %2436 = vlog2.f32 %v1660_v20  ;;  %1259 = vst.msk [vmem:[#allocation5 + $0x40] sm:$0xff] %vm423_vm0, %v1242_v35  ;;  %v1225_v7 = vpop.xlane.xlu1 %1224  ;;  %v1068_v8 = vmul.f32 %v3676_v51, %v1052_v4  ;;  %v1422_v0 = vmul.f32 %v2417_v60, %v1406_v19  ;;  %v1421_v47 = vmul.f32 %v3682_v15, %v1405_v40  ;;  %v1408_v60 = vld [vmem:[#allocation7 + $0x68] sm:$0xff]  ;;  %v1722_v59 = vld [vmem:[#allocation6 + $0x20] sm:$0xff] }
 0x3a2   :  { %v1572_v9 = vpop.xlane.xlu0 %1571  ;;  %v2423_v26 = vpop.eup %2422  ;;  %v1851_v17 = vsub.f32 %v1787_v44, %v1835_v41  ;;  %v1245_v27 = vadd.f32 %v1225_v7, %v1069_v14  ;;  %2438 = vpow2.f32 %v1393_v6  ;;  %v1391_v25 = vmul.f32 1.442695, %v4009_v21  ;;  %v1834_v48 = vld [vmem:[#allocation9 + $0x20] sm:$0xff]  ;;  %v1057_v7 = vld [vmem:[#allocation5 + $0x78] sm:$0xff] }
 0x3a3   :  { %v1595_v45 = vadd.f32 %v1572_v9, %v1419_v31  ;;  %v3717_v49 = vpop.eup %2424  ;;  %v1663_v43 = vld [vmem:[#allocation5 + $0x48] sm:$0xff]  ;;  %v1679_v34 = vmul.f32 0.6931472, %v2423_v26  ;;  %v1071_v29 = vmul.f32 %v2421_v11, %v1055_v46  ;;  %v1883_v22 = vadd.s32 32, %v3611_v61  ;;  %v1407_v35 = vld [vmem:[#allocation7 + $0x60] sm:$0xff]  ;;  %v1725_v9 = vld [vmem:[#allocation6 + $0x38] sm:$0xff] }
 0x3a4   :  { %v1740_v36 = vld [vmem:[#allocation7 + $0x30] sm:$0xff]  ;;  %v1867_v52 = vadd.f32 %v1851_v17, %v1819_v54  ;;  %2440 = vlog2.f32 %v1663_v43  ;;  %1262 = vst.msk [vmem:[#allocation5 + $0x58] sm:$0xff] %vm423_vm0, %v1245_v27  ;;  %v2427_v37 = vpop.eup %2426  ;;  %v1070_v20 = vmul.f32 %v3687_v18, %v1054_v56  ;;  %v3738_v14 = vadd.s32 56, %v3611_v61  ;;  %v1805_v17 = vld [vmem:[#allocation8 + $0x38] sm:$0xff] }
 0x3a5   :  { %1611 = vst.msk [vmem:[#allocation7 + $0x40] sm:$0xff] %vm423_vm0, %v1595_v45  ;;  %2442 = vlog2.f32 %v1740_v36  ;;  %v1578_v32 = vpop.xlane.xlu1 %1577  ;;  %v1706_v23 = vadd.f32 %v1679_v34, %v1642_v62  ;;  %v1424_v41 = vmul.f32 %v2427_v37, %v1408_v60  ;;  %vm1917_vm7 = vcmp.lt.s32.totalorder %v1883_v22, %v3982_v30  ;;  %v1410_v34 = vld [vmem:[#allocation7 + $0x78] sm:$0xff]  ;;  %v1644_v37 = vld [vmem:[#allocation4 + $0x30] sm:$0xff]  ;;  %v1647_v60 = vld [vmem:[#allocation4 + $0x48] sm:$0xff] }
 0x3a6   :  { %v1223_v1 = vpop.xlane.xlu0 %1222  ;;  %v2429_v2 = vpop.eup %2428  ;;  %v1934_v10 = vsel %vm1918_vm6, %v1867_v52, 0.0  ;;  %v1598_v5 = vadd.f32 %v1578_v32, %v1422_v0  ;;  %2444 = vpow2.f32 %v1391_v25  ;;  %v1423_v38 = vmul.f32 %v3704_v12, %v1407_v35  ;;  %v1837_v25 = vld [vmem:[#allocation9 + $0x38] sm:$0xff]  ;;  %v1056_v0 = vld [vmem:[#allocation5 + $0x70] sm:$0xff] }
 0x3a7   :  { %v1244_v51 = vadd.f32 %v1223_v1, %v1068_v8  ;;  %v2431_v50 = vpop.eup %2430  ;;  %1950 = vst.msk [vmem:[%s3833_s6 + $0x28] sm:$0xff] %vm423_vm0, %v1934_v10  ;;  %v1685_v39 = vmul.f32 0.6931472, %v2429_v2  ;;  %v1743_v24 = vld [vmem:[#allocation7 + $0x48] sm:$0xff]  ;;  %v1818_v19 = vsub.f32 %v1706_v23, %v1802_v63  ;;  %vm1920_vm8 = vcmp.lt.s32.totalorder %v3738_v14, %v3982_v30  ;;  %v1804_v62 = vld [vmem:[#allocation8 + $0x30] sm:$0xff] }
 0x3a8   :  { %v1759_v55 = vmul.f32 0.6931472, %v2431_v50  ;;  %2446 = vlog2.f32 %v1743_v24  ;;  %v1662_v53 = vld [vmem:[#allocation5 + $0x40] sm:$0xff]  ;;  %1614 = vst.msk [vmem:[#allocation7 + $0x58] sm:$0xff] %vm423_vm0, %v1598_v5  ;;  %v2433_v28 = vpop.eup %2432 }
 0x3a9   :  { %1261 = vst.msk [vmem:[#allocation5 + $0x50] sm:$0xff] %vm423_vm0, %v1244_v51  ;;  %2448 = vlog2.f32 %v1662_v53  ;;  %v1229_v57 = vpop.xlane.xlu1 %1228  ;;  %v1709_v11 = vadd.f32 %v1685_v39, %v1645_v13  ;;  %v1073_v52 = vmul.f32 %v2433_v28, %v1057_v7  ;;  %v1724_v39 = vld [vmem:[#allocation6 + $0x30] sm:$0xff]  ;;  %v1888_v13 = vadd.s32 72, %v3611_v61 }
 0x3aa   :  { %v1576_v16 = vpop.xlane.xlu0 %1575  ;;  %v2435_v15 = vpop.eup %2434  ;;  %v1786_v6 = vadd.f32 %v1759_v55, %v1722_v59  ;;  %v1247_v33 = vadd.f32 %v1229_v57, %v1071_v29  ;;  %v1072_v55 = vmul.f32 %v3717_v49, %v1056_v0  ;;  %v1836_v29 = vld [vmem:[#allocation9 + $0x30] sm:$0xff]  ;;  %v1727_v49 = vld [vmem:[#allocation6 + $0x48] sm:$0xff] }
 0x3ab   :  { %v1597_v58 = vadd.f32 %v1576_v16, %v1421_v47  ;;  %v2437_v44 = vpop.eup %2436  ;;  %v1765_v31 = vmul.f32 0.6931472, %v2435_v15  ;;  %v1665_v4 = vld [vmem:[#allocation5 + $0x58] sm:$0xff]  ;;  %v1821_v32 = vsub.f32 %v1709_v11, %v1805_v17  ;;  %v1885_v47 = vadd.s32 48, %v3611_v61  ;;  %v1409_v57 = vld [vmem:[#allocation7 + $0x70] sm:$0xff] }
 0x3ac   :  { %v1742_v42 = vld [vmem:[#allocation7 + $0x40] sm:$0xff]  ;;  %v1850_v26 = vsub.f32 %v1786_v6, %v1834_v48  ;;  %v1683_v54 = vmul.f32 0.6931472, %v2437_v44  ;;  %2450 = vlog2.f32 %v1665_v4  ;;  %1264 = vst.msk [vmem:[#allocation5 + $0x68] sm:$0xff] %vm423_vm0, %v1247_v33  ;;  %v2439_v18 = vpop.eup %2438  ;;  %vm1922_vm10 = vcmp.lt.s32.totalorder %v1888_v13, %v3982_v30 }
 0x3ad   :  { %1613 = vst.msk [vmem:[#allocation7 + $0x50] sm:$0xff] %vm423_vm0, %v1597_v58  ;;  %v1789_v27 = vadd.f32 %v1765_v31, %v1725_v9  ;;  %2452 = vlog2.f32 %v1742_v42  ;;  %v1582_v45 = vpop.xlane.xlu1 %1581  ;;  %v1426_v22 = vmul.f32 %v2439_v18, %v1410_v34  ;;  %vm1919_vm9 = vcmp.lt.s32.totalorder %v1885_v47, %v3982_v30  ;;  %v1807_v42 = vld [vmem:[#allocation8 + $0x48] sm:$0xff]  ;;  %v1646_v18 = vld [vmem:[#allocation4 + $0x40] sm:$0xff] }
 0x3ae   :  { %v1227_v3 = vpop.xlane.xlu0 %1226  ;;  %v2441_v21 = vpop.eup %2440  ;;  %v1866_v43 = vadd.f32 %v1850_v26, %v1818_v19  ;;  %v1600_v36 = vadd.f32 %v1582_v45, %v1424_v41  ;;  %v1708_v5 = vadd.f32 %v1683_v54, %v1644_v37  ;;  %v1839_v41 = vld [vmem:[#allocation9 + $0x48] sm:$0xff]  ;;  %v1838_v37 = vld [vmem:[#allocation9 + $0x40] sm:$0xff] }
 0x3af   :  { %v1246_v8 = vadd.f32 %v1227_v3, %v1070_v20  ;;  %v2443_v40 = vpop.eup %2442  ;;  %v1853_v1 = vsub.f32 %v1789_v27, %v1837_v25  ;;  %v1689_v46 = vmul.f32 0.6931472, %v2441_v21  ;;  %v1745_v2 = vld [vmem:[#allocation7 + $0x58] sm:$0xff] }
 0x3b0   :  { %v1664_v10 = vld [vmem:[#allocation5 + $0x50] sm:$0xff]  ;;  %v1933_v12 = vsel %vm1917_vm7, %v1866_v43, 0.0  ;;  %v1763_v51 = vmul.f32 0.6931472, %v2443_v40  ;;  %2454 = vlog2.f32 %v1745_v2  ;;  %1616 = vst.msk [vmem:[#allocation7 + $0x68] sm:$0xff] %vm423_vm0, %v1600_v36  ;;  %v2445_v50 = vpop.eup %2444  ;;  %v1820_v20 = vsub.f32 %v1708_v5, %v1804_v62  ;;  %v1726_v36 = vld [vmem:[#allocation6 + $0x40] sm:$0xff] }
 0x3b1   :  { %1263 = vst.msk [vmem:[#allocation5 + $0x60] sm:$0xff] %vm423_vm0, %v1246_v8  ;;  %1949 = vst.msk [vmem:[%s3833_s6 + $0x20] sm:$0xff] %vm423_vm0, %v1933_v12  ;;  %v1869_v24 = vadd.f32 %v1853_v1, %v1821_v32  ;;  %2456 = vlog2.f32 %v1664_v10  ;;  %v1233_v56 = vpop.xlane.xlu1 %1232  ;;  %v1711_v48 = vadd.f32 %v1689_v46, %v1647_v60  ;;  %v1425_v26 = vmul.f32 %v2445_v50, %v1409_v57  ;;  %v1806_v40 = vld [vmem:[#allocation8 + $0x40] sm:$0xff]  ;;  %v1649_v32 = vld [vmem:[#allocation4 + $0x58] sm:$0xff] }
 0x3b2   :  { %v1580_v23 = vpop.xlane.xlu0 %1579  ;;  %v2447_v53 = vpop.eup %2446  ;;  %v1788_v28 = vadd.f32 %v1763_v51, %v1724_v39  ;;  %v1249_v63 = vadd.f32 %v1233_v56, %v1073_v52  ;;  %v1887_v52 = vadd.s32 64, %v3611_v61  ;;  %v1890_v5 = vadd.s32 88, %v3611_v61  ;;  %v1729_v39 = vld [vmem:[#allocation6 + $0x58] sm:$0xff] }
 0x3b3   :  { %v1599_v59 = vadd.f32 %v1580_v23, %v1423_v38  ;;  %v2449_v16 = vpop.eup %2448  ;;  %v1936_v15 = vsel %vm1920_vm8, %v1869_v24, 0.0  ;;  %v1769_v6 = vmul.f32 0.6931472, %v2447_v53  ;;  %v1667_v33 = vld [vmem:[#allocation5 + $0x68] sm:$0xff]  ;;  %v1823_v17 = vsub.f32 %v1711_v48, %v1807_v42  ;;  %v1809_v53 = vld [vmem:[#allocation8 + $0x58] sm:$0xff] }
 0x3b4   :  { %v1744_v58 = vld [vmem:[#allocation7 + $0x50] sm:$0xff]  ;;  %1952 = vst.msk [vmem:[%s3833_s6 + $0x38] sm:$0xff] %vm423_vm0, %v1936_v15  ;;  %v1852_v35 = vsub.f32 %v1788_v28, %v1836_v29  ;;  %v1687_v44 = vmul.f32 0.6931472, %v2449_v16  ;;  %2458 = vlog2.f32 %v1667_v33  ;;  %1266 = vst.msk [vmem:[#allocation5 + $0x78] sm:$0xff] %vm423_vm0, %v1249_v63  ;;  %vm1921_vm11 = vcmp.lt.s32.totalorder %v1887_v52, %v3982_v30  ;;  %v1841_v29 = vld [vmem:[#allocation9 + $0x58] sm:$0xff] }
 0x3b5   :  { %1615 = vst.msk [vmem:[#allocation7 + $0x60] sm:$0xff] %vm423_vm0, %v1599_v59  ;;  %v1791_v11 = vadd.f32 %v1769_v6, %v1727_v49  ;;  %2460 = vlog2.f32 %v1744_v58  ;;  %v1586_v14 = vpop.xlane.xlu1 %1585  ;;  %v1648_v63 = vld [vmem:[#allocation4 + $0x50] sm:$0xff]  ;;  %vm1924_vm12 = vcmp.lt.s32.totalorder %v1890_v5, %v3982_v30  ;;  %v1889_v49 = vadd.s32 80, %v3611_v61  ;;  %v1842_v5 = vld [vmem:[#allocation9 + $0x60] sm:$0xff] }
 0x3b6   :  { %v1231_v31 = vpop.xlane.xlu0 %1230  ;;  %v2451_v4 = vpop.eup %2450  ;;  %v1868_v7 = vadd.f32 %v1852_v35, %v1820_v20  ;;  %v1602_v9 = vadd.f32 %v1586_v14, %v1426_v22  ;;  %v1710_v25 = vadd.f32 %v1687_v44, %v1646_v18  ;;  %v1728_v33 = vld [vmem:[#allocation6 + $0x50] sm:$0xff]  ;;  %v1651_v44 = vld [vmem:[#allocation4 + $0x68] sm:$0xff] }
 0x3b7   :  { %v1248_v19 = vadd.f32 %v1231_v31, %v1072_v55  ;;  %v2453_v54 = vpop.eup %2452  ;;  %v1855_v27 = vsub.f32 %v1791_v11, %v1839_v41  ;;  %v1693_v45 = vmul.f32 0.6931472, %v2451_v4  ;;  %v1747_v3 = vld [vmem:[#allocation7 + $0x68] sm:$0xff]  ;;  %v1808_v35 = vld [vmem:[#allocation8 + $0x50] sm:$0xff]  ;;  %v1892_v41 = vadd.s32 104, %v3611_v61 }
 0x3b8   :  { %v1666_v38 = vld [vmem:[#allocation5 + $0x60] sm:$0xff]  ;;  %v1935_v21 = vsel %vm1919_vm9, %v1868_v7, 0.0  ;;  %v1767_v43 = vmul.f32 0.6931472, %v2453_v54  ;;  %2462 = vlog2.f32 %v1747_v3  ;;  %1618 = vst.msk [vmem:[#allocation7 + $0x78] sm:$0xff] %vm423_vm0, %v1602_v9  ;;  %v1822_v24 = vsub.f32 %v1710_v25, %v1806_v40  ;;  %v1840_v31 = vld [vmem:[#allocation9 + $0x50] sm:$0xff] }
 0x3b9   :  { %1265 = vst.msk [vmem:[#allocation5 + $0x70] sm:$0xff] %vm423_vm0, %v1248_v19  ;;  %1951 = vst.msk [vmem:[%s3833_s6 + $0x30] sm:$0xff] %vm423_vm0, %v1935_v21  ;;  %v1871_v8 = vadd.f32 %v1855_v27, %v1823_v17  ;;  %2464 = vlog2.f32 %v1666_v38  ;;  %v1713_v12 = vadd.f32 %v1693_v45, %v1649_v32  ;;  %v1731_v19 = vld [vmem:[#allocation6 + $0x68] sm:$0xff]  ;;  %vm1923_vm13 = vcmp.lt.s32.totalorder %v1889_v49, %v3982_v30  ;;  %v1650_v25 = vld [vmem:[#allocation4 + $0x60] sm:$0xff] }
 0x3ba   :  { %v1584_v34 = vpop.xlane.xlu0 %1583  ;;  %v2455_v0 = vpop.eup %2454  ;;  %v1790_v1 = vadd.f32 %v1767_v43, %v1726_v36  ;;  %v1811_v45 = vld [vmem:[#allocation8 + $0x68] sm:$0xff]  ;;  %vm1926_vm14 = vcmp.lt.s32.totalorder %v1892_v41, %v3982_v30  ;;  %v1730_v40 = vld [vmem:[#allocation6 + $0x60] sm:$0xff]  ;;  %v1891_v32 = vadd.s32 96, %v3611_v61  ;;  %v1844_v49 = vld [vmem:[#allocation9 + $0x70] sm:$0xff] }
 0x3bb   :  { %v1601_v46 = vadd.f32 %v1584_v34, %v1425_v26  ;;  %v2457_v2 = vpop.eup %2456  ;;  %v1938_v10 = vsel %vm1922_vm10, %v1871_v8, 0.0  ;;  %v1773_v51 = vmul.f32 0.6931472, %v2455_v0  ;;  %v1669_v50 = vld [vmem:[#allocation5 + $0x78] sm:$0xff]  ;;  %v1825_v59 = vsub.f32 %v1713_v12, %v1809_v53  ;;  %v1843_v3 = vld [vmem:[#allocation9 + $0x68] sm:$0xff]  ;;  %v1810_v12 = vld [vmem:[#allocation8 + $0x60] sm:$0xff] }
 0x3bc   :  { %v1746_v62 = vld [vmem:[#allocation7 + $0x60] sm:$0xff]  ;;  %1954 = vst.msk [vmem:[%s3833_s6 + $0x48] sm:$0xff] %vm423_vm0, %v1938_v10  ;;  %v1854_v47 = vsub.f32 %v1790_v1, %v1838_v37  ;;  %v1691_v56 = vmul.f32 0.6931472, %v2457_v2  ;;  %2466 = vlog2.f32 %v1669_v50  ;;  %vm1925_vm15 = vcmp.lt.s32.totalorder %v1891_v32, %v3982_v30 }
 0x3bd   :  { %1617 = vst.msk [vmem:[#allocation7 + $0x70] sm:$0xff] %vm423_vm0, %v1601_v46  ;;  %v1793_v23 = vadd.f32 %v1773_v51, %v1729_v39  ;;  %2468 = vlog2.f32 %v1746_v62  ;;  %v1653_v46 = vld [vmem:[#allocation4 + $0x78] sm:$0xff] }
 0x3be   :  { %v2459_v55 = vpop.eup %2458  ;;  %v1870_v60 = vadd.f32 %v1854_v47, %v1822_v24  ;;  %v1712_v13 = vadd.f32 %v1691_v56, %v1648_v63  ;;  %v1733_v39 = vld [vmem:[#allocation6 + $0x78] sm:$0xff]  ;;  %v1894_v56 = vadd.s32 120, %v3611_v61 }
 0x3bf   :  { %v2461_v28 = vpop.eup %2460  ;;  %v1857_v22 = vsub.f32 %v1793_v23, %v1841_v29  ;;  %v1697_v57 = vmul.f32 0.6931472, %v2459_v55  ;;  %v1749_v16 = vld [vmem:[#allocation7 + $0x78] sm:$0xff] }
 0x3c0   :  { %v1668_v15 = vld [vmem:[#allocation5 + $0x70] sm:$0xff]  ;;  %v1937_v48 = vsel %vm1921_vm11, %v1870_v60, 0.0  ;;  %v1771_v6 = vmul.f32 0.6931472, %v2461_v28  ;;  %2470 = vlog2.f32 %v1749_v16  ;;  %v1824_v26 = vsub.f32 %v1712_v13, %v1808_v35  ;;  %v1813_v29 = vld [vmem:[#allocation8 + $0x78] sm:$0xff] }
 0x3c1   :  { %1953 = vst.msk [vmem:[%s3833_s6 + $0x40] sm:$0xff] %vm423_vm0, %v1937_v48  ;;  %v1873_v58 = vadd.f32 %v1857_v22, %v1825_v59  ;;  %2472 = vlog2.f32 %v1668_v15  ;;  %v1715_v42 = vadd.f32 %v1697_v57, %v1651_v44  ;;  %v1845_v60 = vld [vmem:[#allocation9 + $0x78] sm:$0xff]  ;;  %v1652_v28 = vld [vmem:[#allocation4 + $0x70] sm:$0xff]  ;;  %vm1928_vm1 = vcmp.lt.s32.totalorder %v1894_v56, %v3982_v30 }
 0x3c2   :  { %v2463_v20 = vpop.eup %2462  ;;  %v1792_v11 = vadd.f32 %v1771_v6, %v1728_v33  ;;  %v1732_v15 = vld [vmem:[#allocation6 + $0x70] sm:$0xff]  ;;  %v1893_v13 = vadd.s32 112, %v3611_v61 }
 0x3c3   :  { %v2465_v14 = vpop.eup %2464  ;;  %v1940_v4 = vsel %vm1924_vm12, %v1873_v58, 0.0  ;;  %v1777_v7 = vmul.f32 0.6931472, %v2463_v20  ;;  %v1827_v43 = vsub.f32 %v1715_v42, %v1811_v45  ;;  %v1812_v58 = vld [vmem:[#allocation8 + $0x70] sm:$0xff] }
 0x3c4   :  { %v1748_v9 = vld [vmem:[#allocation7 + $0x70] sm:$0xff]  ;;  %1956 = vst.msk [vmem:[%s3833_s6 + $0x58] sm:$0xff] %vm423_vm0, %v1940_v4  ;;  %v1856_v54 = vsub.f32 %v1792_v11, %v1840_v31  ;;  %v1695_v18 = vmul.f32 0.6931472, %v2465_v14  ;;  %vm1927_vm2 = vcmp.lt.s32.totalorder %v1893_v13, %v3982_v30 }
 0x3c5   :  { %2474 = vlog2.f32 %v1748_v9  ;;  %v1795_v17 = vadd.f32 %v1777_v7, %v1731_v19 }
 0x3c6   :  { %v2467_v27 = vpop.eup %2466  ;;  %v1872_v38 = vadd.f32 %v1856_v54, %v1824_v26  ;;  %v1714_v34 = vadd.f32 %v1695_v18, %v1650_v25 }
 0x3c7   :  { %v2469_v21 = vpop.eup %2468  ;;  %v1859_v36 = vsub.f32 %v1795_v17, %v1843_v3  ;;  %v1701_v8 = vmul.f32 0.6931472, %v2467_v27 }
 0x3c8   :  { %v1939_v52 = vsel %vm1923_vm13, %v1872_v38, 0.0  ;;  %v1775_v0 = vmul.f32 0.6931472, %v2469_v21  ;;  %v1826_v24 = vsub.f32 %v1714_v34, %v1810_v12 }
 0x3c9   :  { %1955 = vst.msk [vmem:[%s3833_s6 + $0x50] sm:$0xff] %vm423_vm0, %v1939_v52  ;;  %v1875_v37 = vadd.f32 %v1859_v36, %v1827_v43  ;;  %v1717_v50 = vadd.f32 %v1701_v8, %v1653_v46 }
 0x3ca   :  { %v2471_v1 = vpop.eup %2470  ;;  %v1794_v2 = vadd.f32 %v1775_v0, %v1730_v40 }
 0x3cb   :  { %v2473_v10 = vpop.eup %2472  ;;  %v1942_v51 = vsel %vm1926_vm14, %v1875_v37, 0.0  ;;  %v1781_v62 = vmul.f32 0.6931472, %v2471_v1  ;;  %v1829_v59 = vsub.f32 %v1717_v50, %v1813_v29 }
 0x3cc   :  { %1958 = vst.msk [vmem:[%s3833_s6 + $0x68] sm:$0xff] %vm423_vm0, %v1942_v51  ;;  %v1858_v47 = vsub.f32 %v1794_v2, %v1842_v5  ;;  %v1699_v23 = vmul.f32 0.6931472, %v2473_v10 }
 0x3cd   :  { %v1797_v55 = vadd.f32 %v1781_v62, %v1733_v39 }
 0x3ce   :  { %v1874_v63 = vadd.f32 %v1858_v47, %v1826_v24  ;;  %v1716_v57 = vadd.f32 %v1699_v23, %v1652_v28 }
 0x3cf   :  { %v2475_v53 = vpop.eup %2474  ;;  %v1861_v22 = vsub.f32 %v1797_v55, %v1845_v60 }
 0x3d0   :  { %v1779_v16 = vmul.f32 0.6931472, %v2475_v53  ;;  %v1941_v48 = vsel %vm1925_vm15, %v1874_v63, 0.0  ;;  %v1828_v35 = vsub.f32 %v1716_v57, %v1812_v58 }
 0x3d1   :  { %1957 = vst.msk [vmem:[%s3833_s6 + $0x60] sm:$0xff] %vm423_vm0, %v1941_v48  ;;  %v1877_v6 = vadd.f32 %v1861_v22, %v1829_v59 }
 0x3d2   :  { %v1796_v33 = vadd.f32 %v1779_v16, %v1732_v15 }
 0x3d3   :  { %v1944_v20 = vsel %vm1928_vm1, %v1877_v6, 0.0 }
 0x3d4   :  { %v1860_v44 = vsub.f32 %v1796_v33, %v1844_v49  ;;  %1960 = vst.msk [vmem:[%s3833_s6 + $0x78] sm:$0xff] %vm423_vm0, %v1944_v20 }
 0x3d6   :  { %v1876_v61 = vadd.f32 %v1860_v44, %v1828_v35 }
 0x3d8   :  { %v1943_v11 = vsel %vm1927_vm2, %v1876_v61, 0.0 }
 0x3d9   :  { %1959 = vst.msk [vmem:[%s3833_s6 + $0x70] sm:$0xff] %vm423_vm0, %v1943_v11 }
 0x3da   :  { %1965 = vsyncpa [#allocation13], 1 }
 0x3db   :  { %1966 = vsyncpa [#allocation15], 1 }
 0x3dc   :  { %1967 = vsyncpa [#allocation18], 1 }

</bundles_post_ra>
